<compile_context>
chip_gen: v7x
topology: tpu7x:2x2x1
jax: 0.10.0
libtpu: 0.0.40
codegen_flags: <defaults>
</compile_context>

<pallas_src>
import math
from functools import partial

import jax
import jax.numpy as jnp
from jax import lax
from jax.experimental import pallas as pl
from jax.experimental.pallas import tpu as pltpu

NEG_INF = -1e9                      # plain Python float (NOT a jnp constant)
VMEM_LIMIT = 48 * 1024 * 1024       # explicit scoped-VMEM ceiling (v7x-safe)


# ----------------------------------------------------------------------------
# Tile helpers
# ----------------------------------------------------------------------------
def _tile(dim, target, align=128):
    """Largest multiple of `align` dividing `dim` that is <= target, else dim."""
    if dim <= target:
        return dim
    best = None
    t = align
    while t <= target:
        if dim % t == 0:
            best = t
        t += align
    return best if best is not None else dim


def _tile_m(M, target):
    """Row tile: multiple of 16 (bf16 packs (16,128)/vreg), divides M, <= target,
    and (when M allows) <= M//2 so the parallel M axis has >= 2 grid points."""
    if M <= 16 or M % 16 != 0:
        return M
    cap = min(target, M // 2) if M >= 32 else min(target, M)
    best = None
    t = 16
    while t <= cap:
        if M % t == 0:
            best = t
        t += 16
    return best if best is not None else M


# ----------------------------------------------------------------------------
# Kernel 1: general tiled matmul (+optional bias, ReLU, residual in epilogue)
# ----------------------------------------------------------------------------
def _matmul_kernel(*refs, has_bias, has_residual, activation):
    i = 0
    x_ref = refs[i]; i += 1
    w_ref = refs[i]; i += 1
    b_ref = None
    res_ref = None
    if has_bias:
        b_ref = refs[i]; i += 1
    if has_residual:
        res_ref = refs[i]; i += 1
    o_ref = refs[i]; i += 1
    acc_ref = refs[i]

    k = pl.program_id(2)

    @pl.when(k == 0)
    def _():
        acc_ref[...] = jnp.zeros_like(acc_ref)

    acc_ref[...] += jnp.dot(
        x_ref[...].astype(jnp.bfloat16),
        w_ref[...].astype(jnp.bfloat16),
        preferred_element_type=jnp.float32)

    @pl.when(k == pl.num_programs(2) - 1)
    def _():
        y = acc_ref[...]
        if has_bias:
            y = y + b_ref[...].astype(jnp.float32)
        if activation == "relu":
            y = jnp.maximum(y, 0.0)
        if has_residual:
            y = y + res_ref[...].astype(jnp.float32)
        o_ref[...] = y.astype(o_ref.dtype)


def matmul(x, w, bias=None, residual=None, activation=None,
           out_dtype=jnp.bfloat16, tm=512, tn=512, tk=512):
    """out = act(x @ w [+ bias]) [+ residual], tiled over (M, N, K)."""
    M, K = x.shape
    K2, N = w.shape
    assert K == K2
    tm = _tile_m(M, tm)
    tn = _tile(N, tn, 128)
    tk = _tile(K, tk, 128)
    grid = (M // tm, N // tn, K // tk)

    in_specs = [
        pl.BlockSpec((tm, tk), lambda i, j, k: (i, k)),
        pl.BlockSpec((tk, tn), lambda i, j, k: (k, j)),
    ]
    args = [x, w]
    if bias is not None:
        in_specs.append(pl.BlockSpec((1, tn), lambda i, j, k: (0, j)))
        args.append(bias)
    if residual is not None:
        in_specs.append(pl.BlockSpec((tm, tn), lambda i, j, k: (i, j)))
        args.append(residual)

    return pl.pallas_call(
        partial(_matmul_kernel, has_bias=bias is not None,
                has_residual=residual is not None, activation=activation),
        out_shape=jax.ShapeDtypeStruct((M, N), out_dtype),
        grid=grid,
        in_specs=in_specs,
        out_specs=pl.BlockSpec((tm, tn), lambda i, j, k: (i, j)),
        scratch_shapes=[pltpu.VMEM((tm, tn), jnp.float32)],
        compiler_params=pltpu.CompilerParams(
            dimension_semantics=("parallel", "parallel", "arbitrary"),
            vmem_limit_bytes=VMEM_LIMIT),
    )(*args)


# ----------------------------------------------------------------------------
# Kernel 2: fused RMSNorm prologue + matmul (norm hoisted to j == 0)
# ----------------------------------------------------------------------------
def _ln_matmul_kernel(x_ref, g_ref, w_ref, o_ref, h_ref, *, activation):
    @pl.when(pl.program_id(1) == 0)
    def _():
        x = x_ref[...].astype(jnp.float32)
        var = jnp.mean(x * x, axis=-1, keepdims=True)
        h_ref[...] = (x * lax.rsqrt(var + 1e-6)
                      * g_ref[...].astype(jnp.float32)).astype(jnp.bfloat16)

    y = jnp.dot(h_ref[...], w_ref[...].astype(jnp.bfloat16),
                preferred_element_type=jnp.float32)
    if activation == "relu":
        y = jnp.maximum(y, 0.0)
    o_ref[...] = y.astype(o_ref.dtype)


def ln_matmul(x, g, w, activation=None, out_dtype=jnp.bfloat16, tm=256, tn=512):
    M, K = x.shape
    _, N = w.shape
    tm = _tile_m(M, tm)
    tn = _tile(N, tn, 128)
    return pl.pallas_call(
        partial(_ln_matmul_kernel, activation=activation),
        out_shape=jax.ShapeDtypeStruct((M, N), out_dtype),
        grid=(M // tm, N // tn),
        in_specs=[
            pl.BlockSpec((tm, K), lambda i, j: (i, 0)),
            pl.BlockSpec((1, K), lambda i, j: (0, 0)),
            pl.BlockSpec((K, tn), lambda i, j: (0, j)),
        ],
        out_specs=pl.BlockSpec((tm, tn), lambda i, j: (i, j)),
        scratch_shapes=[pltpu.VMEM((tm, K), jnp.bfloat16)],
        compiler_params=pltpu.CompilerParams(
            # j must sweep sequentially per i so the j==0 norm hoist is valid
            # even when the parallel i axis is sharded across megacore TCs.
            dimension_semantics=("parallel", "arbitrary"),
            vmem_limit_bytes=VMEM_LIMIT),
    )(x, g, w)


# ----------------------------------------------------------------------------
# Kernel 3: fused FFN block  out = x + relu(rmsnorm(x)*g @ W1) @ W2
# ----------------------------------------------------------------------------
def _ffn_kernel(x_ref, g_ref, w1_ref, w2_ref, o_ref):
    x = x_ref[...].astype(jnp.float32)
    var = jnp.mean(x * x, axis=-1, keepdims=True)
    h = (x * lax.rsqrt(var + 1e-6) * g_ref[...].astype(jnp.float32)
         ).astype(jnp.bfloat16)
    a = jnp.dot(h, w1_ref[...], preferred_element_type=jnp.float32)
    a = jnp.maximum(a, 0.0).astype(jnp.bfloat16)     # keep intermediate in bf16
    y = jnp.dot(a, w2_ref[...], preferred_element_type=jnp.float32)
    o_ref[...] = (x + y).astype(o_ref.dtype)


def ffn(x, g, w1, w2, out_dtype=jnp.bfloat16, tm=128):
    M, D = x.shape
    _, DFF = w1.shape
    tm = _tile_m(M, tm)     # small row tile: bounds the (tm, DFF) f32 intermediate
    return pl.pallas_call(
        _ffn_kernel,
        out_shape=jax.ShapeDtypeStruct((M, D), out_dtype),
        grid=(M // tm,),
        in_specs=[
            pl.BlockSpec((tm, D), lambda i: (i, 0)),
            pl.BlockSpec((1, D), lambda i: (0, 0)),
            pl.BlockSpec((D, DFF), lambda i: (0, 0)),
            pl.BlockSpec((DFF, D), lambda i: (0, 0)),
        ],
        out_specs=pl.BlockSpec((tm, D), lambda i: (i, 0)),
        compiler_params=pltpu.CompilerParams(
            dimension_semantics=("parallel",),
            vmem_limit_bytes=VMEM_LIMIT),
    )(x, g, w1, w2)


# ----------------------------------------------------------------------------
# Kernel 4: standalone RMSNorm (final layer norms)
# ----------------------------------------------------------------------------
def _rmsnorm_kernel(x_ref, g_ref, o_ref):
    x = x_ref[...].astype(jnp.float32)
    var = jnp.mean(x * x, axis=-1, keepdims=True)
    o_ref[...] = (x * lax.rsqrt(var + 1e-6)
                  * g_ref[...].astype(jnp.float32)).astype(o_ref.dtype)


def rmsnorm(x, g, out_dtype=jnp.bfloat16, tm=512):
    M, D = x.shape
    tm = _tile_m(M, tm)
    return pl.pallas_call(
        _rmsnorm_kernel,
        out_shape=jax.ShapeDtypeStruct((M, D), out_dtype),
        grid=(M // tm,),
        in_specs=[pl.BlockSpec((tm, D), lambda i: (i, 0)),
                  pl.BlockSpec((1, D), lambda i: (0, 0))],
        out_specs=pl.BlockSpec((tm, D), lambda i: (i, 0)),
        compiler_params=pltpu.CompilerParams(
            dimension_semantics=("parallel",),
            vmem_limit_bytes=VMEM_LIMIT),
    )(x, g)


# ----------------------------------------------------------------------------
# Kernel 5: attention with in-kernel pad/causal bias, fused wo proj + residual
# ----------------------------------------------------------------------------
def _attn_kernel(mask_ref, q_ref, k_ref, v_ref, wo_ref, res_ref, o_ref, *,
                 scale, causal):
    q = q_ref[...]                               # (Sq, D)  bf16
    k = k_ref[...]                               # (Skv, D) bf16
    v = v_ref[...]                               # (Skv, D) bf16
    # Contract on D directly (no explicit K transpose).
    s = lax.dot_general(q, k, (((1,), (1,)), ((), ())),
                        preferred_element_type=jnp.float32) * scale
    s = s + (1.0 - mask_ref[0].astype(jnp.float32)) * NEG_INF       # (1, Skv)
    if causal:
        row = lax.broadcasted_iota(jnp.int32, s.shape, 0)
        col = lax.broadcasted_iota(jnp.int32, s.shape, 1)
        s = jnp.where(row >= col, s, NEG_INF)
    m = jnp.max(s, axis=-1, keepdims=True)
    p = jnp.exp(s - m)
    l = jnp.sum(p, axis=-1, keepdims=True)
    o = jnp.dot(p.astype(v.dtype), v, preferred_element_type=jnp.float32) / l
    # fused epilogue: output projection + residual
    y = jnp.dot(o.astype(jnp.bfloat16), wo_ref[...],
                preferred_element_type=jnp.float32)
    o_ref[...] = (y + res_ref[...].astype(jnp.float32)).astype(o_ref.dtype)


def attention_block(q_arr, q_col, k_arr, k_col, v_arr, v_col, mask3, wo,
                    residual, *, B, S, D, causal, out_dtype=jnp.bfloat16):
    """out = softmax(Q K^T * scale + pad/causal bias) V @ wo + residual.

    Q/K/V are read directly out of the fused projection tensors via
    column-offset BlockSpecs (q_arr/k_arr/v_arr have shape (B*S, n*D); *_col
    picks the D-wide column block), so no wrapper-side slice copies are made.
    """
    M = B * S
    scale = 1.0 / math.sqrt(D)

    def col_map(c):
        return lambda b, c=c: (b, c)

    return pl.pallas_call(
        partial(_attn_kernel, scale=scale, causal=causal),
        out_shape=jax.ShapeDtypeStruct((M, D), out_dtype),
        grid=(B,),
        in_specs=[
            pl.BlockSpec((1, 1, S), lambda b: (b, 0, 0)),   # pad mask row (B,1,S)
            pl.BlockSpec((S, D), col_map(q_col)),           # Q
            pl.BlockSpec((S, D), col_map(k_col)),           # K
            pl.BlockSpec((S, D), col_map(v_col)),           # V
            pl.BlockSpec((D, D), lambda b: (0, 0)),         # wo
            pl.BlockSpec((S, D), lambda b: (b, 0)),         # residual
        ],
        out_specs=pl.BlockSpec((S, D), lambda b: (b, 0)),
        compiler_params=pltpu.CompilerParams(
            dimension_semantics=("parallel",),
            vmem_limit_bytes=VMEM_LIMIT),
    )(mask3, q_arr, k_arr, v_arr, wo, residual)


# ----------------------------------------------------------------------------
# Kernel 6: reparameterize + masked Gaussian KL + wae_enc_out * noise (fused)
# ----------------------------------------------------------------------------
def _reparam_kl_kernel(mu_ref, lv_ref, eps_ref, m_ref, enc_ref,
                       dec_in_ref, kl_ref, num_acc, den_acc, *, prior_logvar):
    i = pl.program_id(0)

    @pl.when(i == 0)
    def _():
        num_acc[...] = jnp.zeros_like(num_acc)
        den_acc[...] = jnp.zeros_like(den_acc)

    mu = mu_ref[...]
    lv = lv_ref[...]
    z = mu + eps_ref[...] * jnp.exp(0.5 * lv)                 # noise = zs
    dec_in_ref[...] = (enc_ref[...].astype(jnp.float32) * z).astype(dec_in_ref.dtype)

    # GaussianKLLoss between N(mu, exp(lv)) and N(1, exp(prior_logvar));
    # prior_logvar follows the PyTorch code verbatim: log(sqrt(0.1 / 0.9)).
    prior_mu = 1.0
    fraction = (jnp.exp(lv) + (mu - prior_mu) ** 2) * jnp.exp(-prior_logvar)
    kl_row = 0.5 * jnp.sum(prior_logvar - lv + fraction - 1.0,
                           axis=-1, keepdims=True)            # (tm, 1)
    m = m_ref[...]                                            # (tm, 1)
    num_acc[...] += jnp.sum(kl_row * m, keepdims=True)
    den_acc[...] += jnp.sum(m, keepdims=True)

    @pl.when(i == pl.num_programs(0) - 1)
    def _():
        kl_ref[...] = num_acc[...] / jnp.maximum(den_acc[...], 1.0)


def reparameterize_kl(mu_logvar, eps, mask_rows, enc_out, tm=512):
    """mu_logvar (M, 2H) is split into mu / log_var by column-offset BlockSpecs
    (no wrapper slices).  Returns (wae_dec_in = enc_out * z (M,H) bf16, kl)."""
    M, H2 = mu_logvar.shape
    H = H2 // 2
    prior_logvar = float(math.log(math.sqrt(0.1 / (1.0 - 0.1))))
    tm = _tile_m(M, tm)
    dec_in, kl = pl.pallas_call(
        partial(_reparam_kl_kernel, prior_logvar=prior_logvar),
        out_shape=(jax.ShapeDtypeStruct((M, H), jnp.bfloat16),
                   jax.ShapeDtypeStruct((1, 1), jnp.float32)),
        grid=(M // tm,),
        in_specs=[
            pl.BlockSpec((tm, H), lambda i: (i, 0)),   # mu      = cols [0, H)
            pl.BlockSpec((tm, H), lambda i: (i, 1)),   # log_var = cols [H, 2H)
            pl.BlockSpec((tm, H), lambda i: (i, 0)),   # eps
            pl.BlockSpec((tm, 1), lambda i: (i, 0)),   # row mask
            pl.BlockSpec((tm, H), lambda i: (i, 0)),   # wae_enc_out
        ],
        out_specs=(
            pl.BlockSpec((tm, H), lambda i: (i, 0)),
            pl.BlockSpec((1, 1), lambda i: (0, 0)),
        ),
        scratch_shapes=[pltpu.VMEM((1, 1), jnp.float32),
                        pltpu.VMEM((1, 1), jnp.float32)],
        compiler_params=pltpu.CompilerParams(
            dimension_semantics=("arbitrary",),
            vmem_limit_bytes=VMEM_LIMIT),
    )(mu_logvar, mu_logvar, eps, mask_rows, enc_out)
    return dec_in, kl[0, 0]


# ----------------------------------------------------------------------------
# Parameter initialization (deterministic, synthetic), bf16 matmul weights
# ----------------------------------------------------------------------------
class _KeyGen:
    def __init__(self, key):
        self._key = key

    def __call__(self):
        self._key, sub = jax.random.split(self._key)
        return sub


def _w(kg, shape, scale=0.02, dtype=jnp.bfloat16):
    return (scale * jax.random.normal(kg(), shape, dtype=jnp.float32)).astype(dtype)


def _enc_layer_params(kg, d, d_ff):
    return {
        "ln1": jnp.ones((1, d), jnp.float32),
        "w_qkv": _w(kg, (d, 3 * d)),        # fused Q|K|V projection
        "wo": _w(kg, (d, d)),
        "ln2": jnp.ones((1, d), jnp.float32),
        "wf1": _w(kg, (d, d_ff)),
        "wf2": _w(kg, (d_ff, d)),
    }


def _dec_layer_params(kg, d, d_ff):
    p = _enc_layer_params(kg, d, d_ff)
    p.update({
        "ln_c": jnp.ones((1, d), jnp.float32),
        "cq": _w(kg, (d, d)),
        "c_kv": _w(kg, (d, 2 * d)),         # fused cross K|V projection
        "co": _w(kg, (d, d)),
    })
    return p


def init_params(key, vocab_size, d_hidden, d_ff, n_layers):
    kg = _KeyGen(key)
    return {
        "embed": _w(kg, (vocab_size, d_hidden)),
        "enc1": [_enc_layer_params(kg, d_hidden, d_ff) for _ in range(n_layers)],
        "enc1_final_ln": jnp.ones((1, d_hidden), jnp.float32),
        "enc2": [_enc_layer_params(kg, d_hidden, d_ff) for _ in range(n_layers)],
        "enc2_final_ln": jnp.ones((1, d_hidden), jnp.float32),
        "dec": [_dec_layer_params(kg, d_hidden, d_ff) for _ in range(n_layers)],
        "dec_final_ln": jnp.ones((1, d_hidden), jnp.float32),
        # noise_net: Linear(d,d) -> ReLU -> Linear(d, 2d)
        "noise_w1": _w(kg, (d_hidden, d_hidden)),
        "noise_b1": jnp.zeros((1, d_hidden), jnp.float32),
        "noise_w2": _w(kg, (d_hidden, 2 * d_hidden)),
        "noise_b2": jnp.zeros((1, 2 * d_hidden), jnp.float32),
        # lm_head: Linear(d, vocab), no bias
        "lm_head": _w(kg, (d_hidden, vocab_size)),
    }


# ----------------------------------------------------------------------------
# Model orchestration
# ----------------------------------------------------------------------------
def _self_attn_block(x, p, mask3, B, S, D, causal):
    qkv = ln_matmul(x, p["ln1"], p["w_qkv"])              # rmsnorm + fused QKV
    return attention_block(qkv, 0, qkv, 1, qkv, 2, mask3, p["wo"], x,
                           B=B, S=S, D=D, causal=causal)  # attn + wo + residual


def _cross_attn_block(x, enc, p, mask3, B, S, D):
    q = ln_matmul(x, p["ln_c"], p["cq"])                  # (M, D)
    kv = matmul(enc, p["c_kv"])                           # fused cross K|V (M, 2D)
    return attention_block(q, 0, kv, 0, kv, 1, mask3, p["co"], x,
                           B=B, S=S, D=D, causal=False)


def encoder_stack(x, mask3, layers, final_ln, B, S, D):
    for p in layers:
        x = _self_attn_block(x, p, mask3, B, S, D, causal=False)
        x = ffn(x, p["ln2"], p["wf1"], p["wf2"])
    return rmsnorm(x, final_ln)


def decoder_stack(x, enc, mask3, layers, final_ln, B, S, D):
    for p in layers:
        x = _self_attn_block(x, p, mask3, B, S, D, causal=True)
        x = _cross_attn_block(x, enc, p, mask3, B, S, D)
        x = ffn(x, p["ln2"], p["wf1"], p["wf2"])
    return rmsnorm(x, final_ln)


def transformer_vae_forward(params, input_ids, attention_mask, eps_key,
                            B, S, D, V):
    """Mirrors TransformerVAE.forward (T5 branch)."""
    mask_f = attention_mask.astype(jnp.float32)              # (B, S)
    mask3 = mask_f.reshape(B, 1, S)                          # in-kernel bias source

    # --- encoder1: embedding (XLA gather glue) + blocks + final LN (+dropout=id)
    x = params["embed"][input_ids].reshape(B * S, D)
    wae_enc_out_flat = encoder_stack(x, mask3, params["enc1"],
                                     params["enc1_final_ln"], B, S, D)

    # --- noise_net -> (mu | log_var); reparameterize; masked KL; enc_out*noise
    h1 = matmul(wae_enc_out_flat, params["noise_w1"],
                bias=params["noise_b1"], activation="relu")
    mu_logvar = matmul(h1, params["noise_w2"], bias=params["noise_b2"],
                       out_dtype=jnp.float32)                # f32 for KL math
    eps = jax.random.normal(eps_key, (B * S, D), dtype=jnp.float32)
    mask_rows = mask_f.reshape(B * S, 1)
    wae_dec_in, kl = reparameterize_kl(mu_logvar, eps, mask_rows,
                                       wae_enc_out_flat)

    # --- encoder2 on wae_enc_out * noise
    wae_dec_out_flat = encoder_stack(wae_dec_in, mask3, params["enc2"],
                                     params["enc2_final_ln"], B, S, D)

    # --- decoder (causal self-attn + cross-attn to wae_dec_out) + lm_head
    dec_flat = decoder_stack(wae_enc_out_flat, wae_dec_out_flat, mask3,
                             params["dec"], params["dec_final_ln"], B, S, D)
    # logits kept in bf16: the largest single writeback at real vocab sizes.
    logits_flat = matmul(dec_flat, params["lm_head"], out_dtype=jnp.bfloat16)

    wae_enc_out = wae_enc_out_flat.astype(jnp.float32).reshape(B, S, D)
    wae_dec_out = wae_dec_out_flat.astype(jnp.float32).reshape(B, S, D)
    model_out = logits_flat.reshape(B, S, V)
    return wae_enc_out, wae_dec_out, model_out, kl


# ----------------------------------------------------------------------------
if __name__ == "__main__":
    # Small synthetic t5-like config; lane-dense dims (D, DFF, V multiples of
    # 128, M = B*S = 128 so row tiles of 64 give every kernel >= 2 grid points).
    B, S, D, DFF, V, L = 2, 64, 128, 256, 256, 2

    root = jax.random.PRNGKey(0)
    k_ids, k_eps, k_params = jax.random.split(root, 3)

    input_ids = jax.random.randint(k_ids, (B, S), 0, V, dtype=jnp.int32)
    attention_mask = jnp.ones((B, S), jnp.int32).at[:, S - 8:].set(0)  # pad tail

    params = init_params(k_params, vocab_size=V, d_hidden=D, d_ff=DFF, n_layers=L)

    fwd = jax.jit(partial(transformer_vae_forward, B=B, S=S, D=D, V=V))
    outs = fwd(params, input_ids, attention_mask, k_eps)
    outs = jax.block_until_ready(outs)

    wae_enc_out, wae_dec_out, model_out, kl = outs
    assert wae_enc_out.shape == (B, S, D)
    assert wae_dec_out.shape == (B, S, D)
    assert model_out.shape == (B, S, V)
    assert kl.shape == ()
    assert all(bool(jnp.all(jnp.isfinite(o))) for o in (wae_enc_out, wae_dec_out,
                                                        model_out, kl))
    print("KERNEL_OK")
</pallas_src>

<mosaic_0001>
module attributes {stable_mosaic.version = 11 : i64} {
  func.func @_ffn_kernel(%arg0: i32, %arg1: memref<64x128xbf16, #tpu.memory_space<vmem>>, %arg2: memref<1x128xf32, #tpu.memory_space<vmem>>, %arg3: memref<128x256xbf16, #tpu.memory_space<vmem>>, %arg4: memref<256x128xbf16, #tpu.memory_space<vmem>>, %arg5: memref<64x128xbf16, #tpu.memory_space<vmem>>) attributes {dimension_semantics = [#tpu.dimension_semantics<parallel>], iteration_bounds = array<i64: 2>, scalar_prefetch = 0 : i64, scratch_operands = 0 : i64, tpu.core_type = #tpu.core_type<tc>, window_params = [{transform_indices = @transform_0, window_bounds = array<i64: 64, 128>}, {pipeline_mode = #tpu.pipeline_mode<synchronous>, transform_indices = @transform_1, window_bounds = array<i64: 1, 128>}, {pipeline_mode = #tpu.pipeline_mode<synchronous>, transform_indices = @transform_2, window_bounds = array<i64: 128, 256>}, {pipeline_mode = #tpu.pipeline_mode<synchronous>, transform_indices = @transform_3, window_bounds = array<i64: 256, 128>}, {transform_indices = @transform_4, window_bounds = array<i64: 64, 128>}]} {
    %c0 = arith.constant 0 : index
    %c0_0 = arith.constant 0 : index
    %0 = vector.load %arg1[%c0, %c0_0] : memref<64x128xbf16, #tpu.memory_space<vmem>>, vector<64x128xbf16>
    %1 = arith.extf %0 : vector<64x128xbf16> to vector<64x128xf32>
    %2 = arith.mulf %1, %1 : vector<64x128xf32>
    %cst = arith.constant dense<0.000000e+00> : vector<64xf32>
    %3 = vector.multi_reduction <add>, %2, %cst [1] : vector<64x128xf32> to vector<64xf32>
    %4 = vector.shape_cast %3 : vector<64xf32> to vector<64x1xf32>
    %cst_1 = arith.constant 1.280000e+02 : f32
    %5 = vector.broadcast %cst_1 : f32 to vector<64x1xf32>
    %6 = arith.divf %4, %5 : vector<64x1xf32>
    %cst_2 = arith.constant 9.99999997E-7 : f32
    %7 = vector.broadcast %cst_2 : f32 to vector<64x1xf32>
    %8 = arith.addf %6, %7 : vector<64x1xf32>
    %9 = math.rsqrt %8 : vector<64x1xf32>
    %10 = vector.broadcast %9 : vector<64x1xf32> to vector<64x128xf32>
    %11 = arith.mulf %1, %10 : vector<64x128xf32>
    %c0_3 = arith.constant 0 : index
    %c0_4 = arith.constant 0 : index
    %12 = vector.load %arg2[%c0_3, %c0_4] : memref<1x128xf32, #tpu.memory_space<vmem>>, vector<1x128xf32>
    %13 = vector.broadcast %12 : vector<1x128xf32> to vector<64x128xf32>
    %14 = arith.mulf %11, %13 : vector<64x128xf32>
    %15 = arith.truncf %14 : vector<64x128xf32> to vector<64x128xbf16>
    %c0_5 = arith.constant 0 : index
    %c0_6 = arith.constant 0 : index
    %16 = vector.load %arg3[%c0_5, %c0_6] : memref<128x256xbf16, #tpu.memory_space<vmem>>, vector<128x256xbf16>
    %cst_7 = arith.constant dense<0.000000e+00> : vector<64x256xf32>
    %17 = tpu.matmul %15, %16, %cst_7 {dimension_numbers = #tpu.dot_dimension_numbers<[1], [0], [0], [1], [0, 0, 1, 1], [], []>} : vector<64x128xbf16>, vector<128x256xbf16>, vector<64x256xf32> -> vector<64x256xf32>
    %cst_8 = arith.constant 0.000000e+00 : f32
    %18 = vector.broadcast %cst_8 : f32 to vector<64x256xf32>
    %19 = arith.maximumf %17, %18 : vector<64x256xf32>
    %20 = arith.truncf %19 : vector<64x256xf32> to vector<64x256xbf16>
    %c0_9 = arith.constant 0 : index
    %c0_10 = arith.constant 0 : index
    %21 = vector.load %arg4[%c0_9, %c0_10] : memref<256x128xbf16, #tpu.memory_space<vmem>>, vector<256x128xbf16>
    %cst_11 = arith.constant dense<0.000000e+00> : vector<64x128xf32>
    %22 = tpu.matmul %20, %21, %cst_11 {dimension_numbers = #tpu.dot_dimension_numbers<[1], [0], [0], [1], [0, 0, 1, 1], [], []>} : vector<64x256xbf16>, vector<256x128xbf16>, vector<64x128xf32> -> vector<64x128xf32>
    %23 = arith.addf %1, %22 : vector<64x128xf32>
    %24 = arith.truncf %23 : vector<64x128xf32> to vector<64x128xbf16>
    %c0_12 = arith.constant 0 : index
    %c0_13 = arith.constant 0 : index
    %25 = vector.load %arg5[%c0_12, %c0_13] : memref<64x128xbf16, #tpu.memory_space<vmem>>, vector<64x128xbf16>
    tpu.vector_store %arg5[%c0_12, %c0_13], %24 {strides = array<i32>} : memref<64x128xbf16, #tpu.memory_space<vmem>>, vector<64x128xbf16>,
    return
  }
  func.func @transform_0(%arg0: i32) -> (i32, i32) {
    %c0_i32 = arith.constant 0 : i32
    %c0_i32_0 = arith.constant 0 : i32
    return %arg0, %c0_i32 : i32, i32
  }
  func.func @transform_1(%arg0: i32) -> (i32, i32) {
    %c0_i32 = arith.constant 0 : i32
    %c0_i32_0 = arith.constant 0 : i32
    %c0_i32_1 = arith.constant 0 : i32
    return %c0_i32, %c0_i32_0 : i32, i32
  }
  func.func @transform_2(%arg0: i32) -> (i32, i32) {
    %c0_i32 = arith.constant 0 : i32
    %c0_i32_0 = arith.constant 0 : i32
    %c0_i32_1 = arith.constant 0 : i32
    return %c0_i32, %c0_i32_0 : i32, i32
  }
  func.func @transform_3(%arg0: i32) -> (i32, i32) {
    %c0_i32 = arith.constant 0 : i32
    %c0_i32_0 = arith.constant 0 : i32
    %c0_i32_1 = arith.constant 0 : i32
    return %c0_i32, %c0_i32_0 : i32, i32
  }
  func.func @transform_4(%arg0: i32) -> (i32, i32) {
    %c0_i32 = arith.constant 0 : i32
    %c0_i32_0 = arith.constant 0 : i32
    return %arg0, %c0_i32 : i32, i32
  }
}

module attributes {stable_mosaic.version = 11 : i64} {
  func.func @_ln_matmul_kernel(%arg0: i32, %arg1: i32, %arg2: memref<64x128xbf16, #tpu.memory_space<vmem>>, %arg3: memref<1x128xf32, #tpu.memory_space<vmem>>, %arg4: memref<128x384xbf16, #tpu.memory_space<vmem>>, %arg5: memref<64x384xbf16, #tpu.memory_space<vmem>>, %arg6: memref<64x128xbf16, #tpu.memory_space<vmem>>) attributes {dimension_semantics = [#tpu.dimension_semantics<parallel>, #tpu.dimension_semantics<arbitrary>], iteration_bounds = array<i64: 2, 1>, scalar_prefetch = 0 : i64, scratch_operands = 1 : i64, tpu.core_type = #tpu.core_type<tc>, window_params = [{transform_indices = @transform_0, window_bounds = array<i64: 64, 128>}, {pipeline_mode = #tpu.pipeline_mode<synchronous>, transform_indices = @transform_1, window_bounds = array<i64: 1, 128>}, {transform_indices = @transform_2, window_bounds = array<i64: 128, 384>}, {transform_indices = @transform_3, window_bounds = array<i64: 64, 384>}]} {
    %c0_i32 = arith.constant 0 : i32
    %0 = arith.cmpi eq, %arg1, %c0_i32 : i32
    %1 = arith.extui %0 : i1 to i32
    %c0_i32_0 = arith.constant 0 : i32
    %2 = arith.cmpi ne, %1, %c0_i32_0 : i32
    scf.if %2 {
      %c0_6 = arith.constant 0 : index
      %c0_7 = arith.constant 0 : index
      %8 = vector.load %arg2[%c0_6, %c0_7] : memref<64x128xbf16, #tpu.memory_space<vmem>>, vector<64x128xbf16>
      %9 = arith.extf %8 : vector<64x128xbf16> to vector<64x128xf32>
      %10 = arith.mulf %9, %9 : vector<64x128xf32>
      %cst_8 = arith.constant dense<0.000000e+00> : vector<64xf32>
      %11 = vector.multi_reduction <add>, %10, %cst_8 [1] : vector<64x128xf32> to vector<64xf32>
      %12 = vector.shape_cast %11 : vector<64xf32> to vector<64x1xf32>
      %cst_9 = arith.constant 1.280000e+02 : f32
      %13 = vector.broadcast %cst_9 : f32 to vector<64x1xf32>
      %14 = arith.divf %12, %13 : vector<64x1xf32>
      %cst_10 = arith.constant 9.99999997E-7 : f32
      %15 = vector.broadcast %cst_10 : f32 to vector<64x1xf32>
      %16 = arith.addf %14, %15 : vector<64x1xf32>
      %17 = math.rsqrt %16 : vector<64x1xf32>
      %18 = vector.broadcast %17 : vector<64x1xf32> to vector<64x128xf32>
      %19 = arith.mulf %9, %18 : vector<64x128xf32>
      %c0_11 = arith.constant 0 : index
      %c0_12 = arith.constant 0 : index
      %20 = vector.load %arg3[%c0_11, %c0_12] : memref<1x128xf32, #tpu.memory_space<vmem>>, vector<1x128xf32>
      %21 = vector.broadcast %20 : vector<1x128xf32> to vector<64x128xf32>
      %22 = arith.mulf %19, %21 : vector<64x128xf32>
      %23 = arith.truncf %22 : vector<64x128xf32> to vector<64x128xbf16>
      %c0_13 = arith.constant 0 : index
      %c0_14 = arith.constant 0 : index
      %24 = vector.load %arg6[%c0_13, %c0_14] : memref<64x128xbf16, #tpu.memory_space<vmem>>, vector<64x128xbf16>
      tpu.vector_store %arg6[%c0_13, %c0_14], %23 {strides = array<i32>} : memref<64x128xbf16, #tpu.memory_space<vmem>>, vector<64x128xbf16>,
    } else {
    }
    %c0 = arith.constant 0 : index
    %c0_1 = arith.constant 0 : index
    %3 = vector.load %arg6[%c0, %c0_1] : memref<64x128xbf16, #tpu.memory_space<vmem>>, vector<64x128xbf16>
    %c0_2 = arith.constant 0 : index
    %c0_3 = arith.constant 0 : index
    %4 = vector.load %arg4[%c0_2, %c0_3] : memref<128x384xbf16, #tpu.memory_space<vmem>>, vector<128x384xbf16>
    %cst = arith.constant dense<0.000000e+00> : vector<64x384xf32>
    %5 = tpu.matmul %3, %4, %cst {dimension_numbers = #tpu.dot_dimension_numbers<[1], [0], [0], [1], [0, 0, 1, 1], [], []>} : vector<64x128xbf16>, vector<128x384xbf16>, vector<64x384xf32> -> vector<64x384xf32>
    %6 = arith.truncf %5 : vector<64x384xf32> to vector<64x384xbf16>
    %c0_4 = arith.constant 0 : index
    %c0_5 = arith.constant 0 : index
    %7 = vector.load %arg5[%c0_4, %c0_5] : memref<64x384xbf16, #tpu.memory_space<vmem>>, vector<64x384xbf16>
    tpu.vector_store %arg5[%c0_4, %c0_5], %6 {strides = array<i32>} : memref<64x384xbf16, #tpu.memory_space<vmem>>, vector<64x384xbf16>,
    return
  }
  func.func @transform_0(%arg0: i32, %arg1: i32) -> (i32, i32) {
    %c0_i32 = arith.constant 0 : i32
    %c0_i32_0 = arith.constant 0 : i32
    return %arg0, %c0_i32 : i32, i32
  }
  func.func @transform_1(%arg0: i32, %arg1: i32) -> (i32, i32) {
    %c0_i32 = arith.constant 0 : i32
    %c0_i32_0 = arith.constant 0 : i32
    %c0_i32_1 = arith.constant 0 : i32
    return %c0_i32, %c0_i32_0 : i32, i32
  }
  func.func @transform_2(%arg0: i32, %arg1: i32) -> (i32, i32) {
    %c0_i32 = arith.constant 0 : i32
    %c0_i32_0 = arith.constant 0 : i32
    return %c0_i32, %arg1 : i32, i32
  }
  func.func @transform_3(%arg0: i32, %arg1: i32) -> (i32, i32) {
    %c0_i32 = arith.constant 0 : i32
    return %arg0, %arg1 : i32, i32
  }
}

module attributes {stable_mosaic.version = 11 : i64} {
  func.func @_attn_kernel(%arg0: i32, %arg1: memref<1x1x64xf32, #tpu.memory_space<vmem>>, %arg2: memref<64x128xbf16, #tpu.memory_space<vmem>>, %arg3: memref<64x128xbf16, #tpu.memory_space<vmem>>, %arg4: memref<64x128xbf16, #tpu.memory_space<vmem>>, %arg5: memref<128x128xbf16, #tpu.memory_space<vmem>>, %arg6: memref<64x128xbf16, #tpu.memory_space<vmem>>, %arg7: memref<64x128xbf16, #tpu.memory_space<vmem>>) attributes {dimension_semantics = [#tpu.dimension_semantics<parallel>], iteration_bounds = array<i64: 2>, scalar_prefetch = 0 : i64, scratch_operands = 0 : i64, tpu.core_type = #tpu.core_type<tc>, window_params = [{transform_indices = @transform_0, window_bounds = array<i64: 1, 1, 64>}, {transform_indices = @transform_1, window_bounds = array<i64: 64, 128>}, {transform_indices = @transform_2, window_bounds = array<i64: 64, 128>}, {transform_indices = @transform_3, window_bounds = array<i64: 64, 128>}, {pipeline_mode = #tpu.pipeline_mode<synchronous>, transform_indices = @transform_4, window_bounds = array<i64: 128, 128>}, {transform_indices = @transform_5, window_bounds = array<i64: 64, 128>}, {transform_indices = @transform_6, window_bounds = array<i64: 64, 128>}]} {
    %c0 = arith.constant 0 : index
    %c0_0 = arith.constant 0 : index
    %0 = vector.load %arg2[%c0, %c0_0] : memref<64x128xbf16, #tpu.memory_space<vmem>>, vector<64x128xbf16>
    %c0_1 = arith.constant 0 : index
    %c0_2 = arith.constant 0 : index
    %1 = vector.load %arg3[%c0_1, %c0_2] : memref<64x128xbf16, #tpu.memory_space<vmem>>, vector<64x128xbf16>
    %c0_3 = arith.constant 0 : index
    %c0_4 = arith.constant 0 : index
    %2 = vector.load %arg4[%c0_3, %c0_4] : memref<64x128xbf16, #tpu.memory_space<vmem>>, vector<64x128xbf16>
    %cst = arith.constant dense<0.000000e+00> : vector<64x64xf32>
    %3 = tpu.matmul %0, %1, %cst {dimension_numbers = #tpu.dot_dimension_numbers<[1], [1], [0], [0], [0, 0, 1, 0], [], []>} : vector<64x128xbf16>, vector<64x128xbf16>, vector<64x64xf32> -> vector<64x64xf32>
    %cst_5 = arith.constant 0.0883883461 : f32
    %4 = vector.broadcast %cst_5 : f32 to vector<64x64xf32>
    %5 = arith.mulf %3, %4 : vector<64x64xf32>
    %c0_6 = arith.constant 0 : index
    %c0_7 = arith.constant 0 : index
    %c0_8 = arith.constant 0 : index
    %6 = vector.load %arg1[%c0_6, %c0_7, %c0_8] : memref<1x1x64xf32, #tpu.memory_space<vmem>>, vector<1x1x64xf32>
    %7 = vector.shape_cast %6 : vector<1x1x64xf32> to vector<1x64xf32>
    %cst_9 = arith.constant 1.000000e+00 : f32
    %8 = vector.broadcast %cst_9 : f32 to vector<1x64xf32>
    %9 = arith.subf %8, %7 : vector<1x64xf32>
    %cst_10 = arith.constant -1.000000e+09 : f32
    %10 = vector.broadcast %cst_10 : f32 to vector<1x64xf32>
    %11 = arith.mulf %9, %10 : vector<1x64xf32>
    %12 = vector.broadcast %11 : vector<1x64xf32> to vector<64x64xf32>
    %13 = arith.addf %5, %12 : vector<64x64xf32>
    %cst_11 = arith.constant dense<0xFF800000> : vector<64xf32>
    %14 = vector.multi_reduction <maximumf>, %13, %cst_11 [1] : vector<64x64xf32> to vector<64xf32>
    %15 = vector.shape_cast %14 : vector<64xf32> to vector<64x1xf32>
    %16 = vector.broadcast %15 : vector<64x1xf32> to vector<64x64xf32>
    %17 = arith.subf %13, %16 : vector<64x64xf32>
    %18 = math.exp %17 : vector<64x64xf32>
    %cst_12 = arith.constant dense<0.000000e+00> : vector<64xf32>
    %19 = vector.multi_reduction <add>, %18, %cst_12 [1] : vector<64x64xf32> to vector<64xf32>
    %20 = vector.shape_cast %19 : vector<64xf32> to vector<64x1xf32>
    %21 = arith.truncf %18 : vector<64x64xf32> to vector<64x64xbf16>
    %cst_13 = arith.constant dense<0.000000e+00> : vector<64x128xf32>
    %22 = tpu.matmul %21, %2, %cst_13 {dimension_numbers = #tpu.dot_dimension_numbers<[1], [0], [0], [1], [0, 0, 1, 1], [], []>} : vector<64x64xbf16>, vector<64x128xbf16>, vector<64x128xf32> -> vector<64x128xf32>
    %23 = vector.broadcast %20 : vector<64x1xf32> to vector<64x128xf32>
    %24 = arith.divf %22, %23 : vector<64x128xf32>
    %25 = arith.truncf %24 : vector<64x128xf32> to vector<64x128xbf16>
    %c0_14 = arith.constant 0 : index
    %c0_15 = arith.constant 0 : index
    %26 = vector.load %arg5[%c0_14, %c0_15] : memref<128x128xbf16, #tpu.memory_space<vmem>>, vector<128x128xbf16>
    %cst_16 = arith.constant dense<0.000000e+00> : vector<64x128xf32>
    %27 = tpu.matmul %25, %26, %cst_16 {dimension_numbers = #tpu.dot_dimension_numbers<[1], [0], [0], [1], [0, 0, 1, 1], [], []>} : vector<64x128xbf16>, vector<128x128xbf16>, vector<64x128xf32> -> vector<64x128xf32>
    %c0_17 = arith.constant 0 : index
    %c0_18 = arith.constant 0 : index
    %28 = vector.load %arg6[%c0_17, %c0_18] : memref<64x128xbf16, #tpu.memory_space<vmem>>, vector<64x128xbf16>
    %29 = arith.extf %28 : vector<64x128xbf16> to vector<64x128xf32>
    %30 = arith.addf %27, %29 : vector<64x128xf32>
    %31 = arith.truncf %30 : vector<64x128xf32> to vector<64x128xbf16>
    %c0_19 = arith.constant 0 : index
    %c0_20 = arith.constant 0 : index
    %32 = vector.load %arg7[%c0_19, %c0_20] : memref<64x128xbf16, #tpu.memory_space<vmem>>, vector<64x128xbf16>
    tpu.vector_store %arg7[%c0_19, %c0_20], %31 {strides = array<i32>} : memref<64x128xbf16, #tpu.memory_space<vmem>>, vector<64x128xbf16>,
    return
  }
  func.func @transform_0(%arg0: i32) -> (i32, i32, i32) {
    %c0_i32 = arith.constant 0 : i32
    %c0_i32_0 = arith.constant 0 : i32
    %c0_i32_1 = arith.constant 0 : i32
    return %arg0, %c0_i32, %c0_i32_0 : i32, i32, i32
  }
  func.func @transform_1(%arg0: i32) -> (i32, i32) {
    %c0_i32 = arith.constant 0 : i32
    %c0_i32_0 = arith.constant 0 : i32
    return %arg0, %c0_i32 : i32, i32
  }
  func.func @transform_2(%arg0: i32) -> (i32, i32) {
    %c1_i32 = arith.constant 1 : i32
    %c0_i32 = arith.constant 0 : i32
    return %arg0, %c1_i32 : i32, i32
  }
  func.func @transform_3(%arg0: i32) -> (i32, i32) {
    %c2_i32 = arith.constant 2 : i32
    %c0_i32 = arith.constant 0 : i32
    return %arg0, %c2_i32 : i32, i32
  }
  func.func @transform_4(%arg0: i32) -> (i32, i32) {
    %c0_i32 = arith.constant 0 : i32
    %c0_i32_0 = arith.constant 0 : i32
    %c0_i32_1 = arith.constant 0 : i32
    return %c0_i32, %c0_i32_0 : i32, i32
  }
  func.func @transform_5(%arg0: i32) -> (i32, i32) {
    %c0_i32 = arith.constant 0 : i32
    %c0_i32_0 = arith.constant 0 : i32
    return %arg0, %c0_i32 : i32, i32
  }
  func.func @transform_6(%arg0: i32) -> (i32, i32) {
    %c0_i32 = arith.constant 0 : i32
    %c0_i32_0 = arith.constant 0 : i32
    return %arg0, %c0_i32 : i32, i32
  }
}

module attributes {stable_mosaic.version = 11 : i64} {
  func.func @_rmsnorm_kernel(%arg0: i32, %arg1: memref<64x128xbf16, #tpu.memory_space<vmem>>, %arg2: memref<1x128xf32, #tpu.memory_space<vmem>>, %arg3: memref<64x128xbf16, #tpu.memory_space<vmem>>) attributes {dimension_semantics = [#tpu.dimension_semantics<parallel>], iteration_bounds = array<i64: 2>, scalar_prefetch = 0 : i64, scratch_operands = 0 : i64, tpu.core_type = #tpu.core_type<tc>, window_params = [{transform_indices = @transform_0, window_bounds = array<i64: 64, 128>}, {pipeline_mode = #tpu.pipeline_mode<synchronous>, transform_indices = @transform_1, window_bounds = array<i64: 1, 128>}, {transform_indices = @transform_2, window_bounds = array<i64: 64, 128>}]} {
    %c0 = arith.constant 0 : index
    %c0_0 = arith.constant 0 : index
    %0 = vector.load %arg1[%c0, %c0_0] : memref<64x128xbf16, #tpu.memory_space<vmem>>, vector<64x128xbf16>
    %1 = arith.extf %0 : vector<64x128xbf16> to vector<64x128xf32>
    %2 = arith.mulf %1, %1 : vector<64x128xf32>
    %cst = arith.constant dense<0.000000e+00> : vector<64xf32>
    %3 = vector.multi_reduction <add>, %2, %cst [1] : vector<64x128xf32> to vector<64xf32>
    %4 = vector.shape_cast %3 : vector<64xf32> to vector<64x1xf32>
    %cst_1 = arith.constant 1.280000e+02 : f32
    %5 = vector.broadcast %cst_1 : f32 to vector<64x1xf32>
    %6 = arith.divf %4, %5 : vector<64x1xf32>
    %cst_2 = arith.constant 9.99999997E-7 : f32
    %7 = vector.broadcast %cst_2 : f32 to vector<64x1xf32>
    %8 = arith.addf %6, %7 : vector<64x1xf32>
    %9 = math.rsqrt %8 : vector<64x1xf32>
    %10 = vector.broadcast %9 : vector<64x1xf32> to vector<64x128xf32>
    %11 = arith.mulf %1, %10 : vector<64x128xf32>
    %c0_3 = arith.constant 0 : index
    %c0_4 = arith.constant 0 : index
    %12 = vector.load %arg2[%c0_3, %c0_4] : memref<1x128xf32, #tpu.memory_space<vmem>>, vector<1x128xf32>
    %13 = vector.broadcast %12 : vector<1x128xf32> to vector<64x128xf32>
    %14 = arith.mulf %11, %13 : vector<64x128xf32>
    %15 = arith.truncf %14 : vector<64x128xf32> to vector<64x128xbf16>
    %c0_5 = arith.constant 0 : index
    %c0_6 = arith.constant 0 : index
    %16 = vector.load %arg3[%c0_5, %c0_6] : memref<64x128xbf16, #tpu.memory_space<vmem>>, vector<64x128xbf16>
    tpu.vector_store %arg3[%c0_5, %c0_6], %15 {strides = array<i32>} : memref<64x128xbf16, #tpu.memory_space<vmem>>, vector<64x128xbf16>,
    return
  }
  func.func @transform_0(%arg0: i32) -> (i32, i32) {
    %c0_i32 = arith.constant 0 : i32
    %c0_i32_0 = arith.constant 0 : i32
    return %arg0, %c0_i32 : i32, i32
  }
  func.func @transform_1(%arg0: i32) -> (i32, i32) {
    %c0_i32 = arith.constant 0 : i32
    %c0_i32_0 = arith.constant 0 : i32
    %c0_i32_1 = arith.constant 0 : i32
    return %c0_i32, %c0_i32_0 : i32, i32
  }
  func.func @transform_2(%arg0: i32) -> (i32, i32) {
    %c0_i32 = arith.constant 0 : i32
    %c0_i32_0 = arith.constant 0 : i32
    return %arg0, %c0_i32 : i32, i32
  }
}

module attributes {stable_mosaic.version = 11 : i64} {
  func.func @_matmul_kernel(%arg0: i32, %arg1: i32, %arg2: i32, %arg3: memref<64x128xbf16, #tpu.memory_space<vmem>>, %arg4: memref<128x256xbf16, #tpu.memory_space<vmem>>, %arg5: memref<1x256xf32, #tpu.memory_space<vmem>>, %arg6: memref<64x256xf32, #tpu.memory_space<vmem>>, %arg7: memref<64x256xf32, #tpu.memory_space<vmem>>) attributes {dimension_semantics = [#tpu.dimension_semantics<parallel>, #tpu.dimension_semantics<parallel>, #tpu.dimension_semantics<arbitrary>], iteration_bounds = array<i64: 2, 1, 1>, scalar_prefetch = 0 : i64, scratch_operands = 1 : i64, tpu.core_type = #tpu.core_type<tc>, window_params = [{transform_indices = @transform_0, window_bounds = array<i64: 64, 128>}, {transform_indices = @transform_1, window_bounds = array<i64: 128, 256>}, {transform_indices = @transform_2, window_bounds = array<i64: 1, 256>}, {transform_indices = @transform_3, window_bounds = array<i64: 64, 256>}]} {
    %c0_i32 = arith.constant 0 : i32
    %0 = arith.cmpi eq, %arg2, %c0_i32 : i32
    %1 = arith.extui %0 : i1 to i32
    %c0_i32_0 = arith.constant 0 : i32
    %2 = arith.cmpi ne, %1, %c0_i32_0 : i32
    scf.if %2 {
      %cst_10 = arith.constant 0.000000e+00 : f32
      %12 = vector.broadcast %cst_10 : f32 to vector<64x256xf32>
      %c0_11 = arith.constant 0 : index
      %c0_12 = arith.constant 0 : index
      %13 = vector.load %arg7[%c0_11, %c0_12] : memref<64x256xf32, #tpu.memory_space<vmem>>, vector<64x256xf32>
      tpu.vector_store %arg7[%c0_11, %c0_12], %12 {strides = array<i32>} : memref<64x256xf32, #tpu.memory_space<vmem>>, vector<64x256xf32>,
    } else {
    }
    %c0 = arith.constant 0 : index
    %c0_1 = arith.constant 0 : index
    %3 = vector.load %arg7[%c0, %c0_1] : memref<64x256xf32, #tpu.memory_space<vmem>>, vector<64x256xf32>
    %c0_2 = arith.constant 0 : index
    %c0_3 = arith.constant 0 : index
    %4 = vector.load %arg3[%c0_2, %c0_3] : memref<64x128xbf16, #tpu.memory_space<vmem>>, vector<64x128xbf16>
    %c0_4 = arith.constant 0 : index
    %c0_5 = arith.constant 0 : index
    %5 = vector.load %arg4[%c0_4, %c0_5] : memref<128x256xbf16, #tpu.memory_space<vmem>>, vector<128x256xbf16>
    %cst = arith.constant dense<0.000000e+00> : vector<64x256xf32>
    %6 = tpu.matmul %4, %5, %cst {dimension_numbers = #tpu.dot_dimension_numbers<[1], [0], [0], [1], [0, 0, 1, 1], [], []>} : vector<64x128xbf16>, vector<128x256xbf16>, vector<64x256xf32> -> vector<64x256xf32>
    %7 = arith.addf %3, %6 : vector<64x256xf32>
    %c0_6 = arith.constant 0 : index
    %c0_7 = arith.constant 0 : index
    %8 = vector.load %arg7[%c0_6, %c0_7] : memref<64x256xf32, #tpu.memory_space<vmem>>, vector<64x256xf32>
    tpu.vector_store %arg7[%c0_6, %c0_7], %7 {strides = array<i32>} : memref<64x256xf32, #tpu.memory_space<vmem>>, vector<64x256xf32>,
    %c0_i32_8 = arith.constant 0 : i32
    %9 = arith.cmpi eq, %arg2, %c0_i32_8 : i32
    %10 = arith.extui %9 : i1 to i32
    %c0_i32_9 = arith.constant 0 : i32
    %11 = arith.cmpi ne, %10, %c0_i32_9 : i32
    scf.if %11 {
      %c0_10 = arith.constant 0 : index
      %c0_11 = arith.constant 0 : index
      %12 = vector.load %arg7[%c0_10, %c0_11] : memref<64x256xf32, #tpu.memory_space<vmem>>, vector<64x256xf32>
      %c0_12 = arith.constant 0 : index
      %c0_13 = arith.constant 0 : index
      %13 = vector.load %arg5[%c0_12, %c0_13] : memref<1x256xf32, #tpu.memory_space<vmem>>, vector<1x256xf32>
      %14 = vector.broadcast %13 : vector<1x256xf32> to vector<64x256xf32>
      %15 = arith.addf %12, %14 : vector<64x256xf32>
      %c0_14 = arith.constant 0 : index
      %c0_15 = arith.constant 0 : index
      %16 = vector.load %arg6[%c0_14, %c0_15] : memref<64x256xf32, #tpu.memory_space<vmem>>, vector<64x256xf32>
      tpu.vector_store %arg6[%c0_14, %c0_15], %15 {strides = array<i32>} : memref<64x256xf32, #tpu.memory_space<vmem>>, vector<64x256xf32>,
    } else {
    }
    return
  }
  func.func @transform_0(%arg0: i32, %arg1: i32, %arg2: i32) -> (i32, i32) {
    %c0_i32 = arith.constant 0 : i32
    return %arg0, %arg2 : i32, i32
  }
  func.func @transform_1(%arg0: i32, %arg1: i32, %arg2: i32) -> (i32, i32) {
    %c0_i32 = arith.constant 0 : i32
    return %arg2, %arg1 : i32, i32
  }
  func.func @transform_2(%arg0: i32, %arg1: i32, %arg2: i32) -> (i32, i32) {
    %c0_i32 = arith.constant 0 : i32
    %c0_i32_0 = arith.constant 0 : i32
    return %c0_i32, %arg1 : i32, i32
  }
  func.func @transform_3(%arg0: i32, %arg1: i32, %arg2: i32) -> (i32, i32) {
    %c0_i32 = arith.constant 0 : i32
    return %arg0, %arg1 : i32, i32
  }
}

module attributes {stable_mosaic.version = 11 : i64} {
  func.func @_matmul_kernel(%arg0: i32, %arg1: i32, %arg2: i32, %arg3: memref<64x128xbf16, #tpu.memory_space<vmem>>, %arg4: memref<128x128xbf16, #tpu.memory_space<vmem>>, %arg5: memref<1x128xf32, #tpu.memory_space<vmem>>, %arg6: memref<64x128xbf16, #tpu.memory_space<vmem>>, %arg7: memref<64x128xf32, #tpu.memory_space<vmem>>) attributes {dimension_semantics = [#tpu.dimension_semantics<parallel>, #tpu.dimension_semantics<parallel>, #tpu.dimension_semantics<arbitrary>], iteration_bounds = array<i64: 2, 1, 1>, scalar_prefetch = 0 : i64, scratch_operands = 1 : i64, tpu.core_type = #tpu.core_type<tc>, window_params = [{transform_indices = @transform_0, window_bounds = array<i64: 64, 128>}, {transform_indices = @transform_1, window_bounds = array<i64: 128, 128>}, {transform_indices = @transform_2, window_bounds = array<i64: 1, 128>}, {transform_indices = @transform_3, window_bounds = array<i64: 64, 128>}]} {
    %c0_i32 = arith.constant 0 : i32
    %0 = arith.cmpi eq, %arg2, %c0_i32 : i32
    %1 = arith.extui %0 : i1 to i32
    %c0_i32_0 = arith.constant 0 : i32
    %2 = arith.cmpi ne, %1, %c0_i32_0 : i32
    scf.if %2 {
      %cst_10 = arith.constant 0.000000e+00 : f32
      %12 = vector.broadcast %cst_10 : f32 to vector<64x128xf32>
      %c0_11 = arith.constant 0 : index
      %c0_12 = arith.constant 0 : index
      %13 = vector.load %arg7[%c0_11, %c0_12] : memref<64x128xf32, #tpu.memory_space<vmem>>, vector<64x128xf32>
      tpu.vector_store %arg7[%c0_11, %c0_12], %12 {strides = array<i32>} : memref<64x128xf32, #tpu.memory_space<vmem>>, vector<64x128xf32>,
    } else {
    }
    %c0 = arith.constant 0 : index
    %c0_1 = arith.constant 0 : index
    %3 = vector.load %arg7[%c0, %c0_1] : memref<64x128xf32, #tpu.memory_space<vmem>>, vector<64x128xf32>
    %c0_2 = arith.constant 0 : index
    %c0_3 = arith.constant 0 : index
    %4 = vector.load %arg3[%c0_2, %c0_3] : memref<64x128xbf16, #tpu.memory_space<vmem>>, vector<64x128xbf16>
    %c0_4 = arith.constant 0 : index
    %c0_5 = arith.constant 0 : index
    %5 = vector.load %arg4[%c0_4, %c0_5] : memref<128x128xbf16, #tpu.memory_space<vmem>>, vector<128x128xbf16>
    %cst = arith.constant dense<0.000000e+00> : vector<64x128xf32>
    %6 = tpu.matmul %4, %5, %cst {dimension_numbers = #tpu.dot_dimension_numbers<[1], [0], [0], [1], [0, 0, 1, 1], [], []>} : vector<64x128xbf16>, vector<128x128xbf16>, vector<64x128xf32> -> vector<64x128xf32>
    %7 = arith.addf %3, %6 : vector<64x128xf32>
    %c0_6 = arith.constant 0 : index
    %c0_7 = arith.constant 0 : index
    %8 = vector.load %arg7[%c0_6, %c0_7] : memref<64x128xf32, #tpu.memory_space<vmem>>, vector<64x128xf32>
    tpu.vector_store %arg7[%c0_6, %c0_7], %7 {strides = array<i32>} : memref<64x128xf32, #tpu.memory_space<vmem>>, vector<64x128xf32>,
    %c0_i32_8 = arith.constant 0 : i32
    %9 = arith.cmpi eq, %arg2, %c0_i32_8 : i32
    %10 = arith.extui %9 : i1 to i32
    %c0_i32_9 = arith.constant 0 : i32
    %11 = arith.cmpi ne, %10, %c0_i32_9 : i32
    scf.if %11 {
      %c0_10 = arith.constant 0 : index
      %c0_11 = arith.constant 0 : index
      %12 = vector.load %arg7[%c0_10, %c0_11] : memref<64x128xf32, #tpu.memory_space<vmem>>, vector<64x128xf32>
      %c0_12 = arith.constant 0 : index
      %c0_13 = arith.constant 0 : index
      %13 = vector.load %arg5[%c0_12, %c0_13] : memref<1x128xf32, #tpu.memory_space<vmem>>, vector<1x128xf32>
      %14 = vector.broadcast %13 : vector<1x128xf32> to vector<64x128xf32>
      %15 = arith.addf %12, %14 : vector<64x128xf32>
      %cst_14 = arith.constant 0.000000e+00 : f32
      %16 = vector.broadcast %cst_14 : f32 to vector<64x128xf32>
      %17 = arith.maximumf %15, %16 : vector<64x128xf32>
      %18 = arith.truncf %17 : vector<64x128xf32> to vector<64x128xbf16>
      %c0_15 = arith.constant 0 : index
      %c0_16 = arith.constant 0 : index
      %19 = vector.load %arg6[%c0_15, %c0_16] : memref<64x128xbf16, #tpu.memory_space<vmem>>, vector<64x128xbf16>
      tpu.vector_store %arg6[%c0_15, %c0_16], %18 {strides = array<i32>} : memref<64x128xbf16, #tpu.memory_space<vmem>>, vector<64x128xbf16>,
    } else {
    }
    return
  }
  func.func @transform_0(%arg0: i32, %arg1: i32, %arg2: i32) -> (i32, i32) {
    %c0_i32 = arith.constant 0 : i32
    return %arg0, %arg2 : i32, i32
  }
  func.func @transform_1(%arg0: i32, %arg1: i32, %arg2: i32) -> (i32, i32) {
    %c0_i32 = arith.constant 0 : i32
    return %arg2, %arg1 : i32, i32
  }
  func.func @transform_2(%arg0: i32, %arg1: i32, %arg2: i32) -> (i32, i32) {
    %c0_i32 = arith.constant 0 : i32
    %c0_i32_0 = arith.constant 0 : i32
    return %c0_i32, %arg1 : i32, i32
  }
  func.func @transform_3(%arg0: i32, %arg1: i32, %arg2: i32) -> (i32, i32) {
    %c0_i32 = arith.constant 0 : i32
    return %arg0, %arg1 : i32, i32
  }
}

module attributes {stable_mosaic.version = 11 : i64} {
  func.func @_reparam_kl_kernel(%arg0: i32, %arg1: memref<64x128xf32, #tpu.memory_space<vmem>>, %arg2: memref<64x128xf32, #tpu.memory_space<vmem>>, %arg3: memref<64x128xf32, #tpu.memory_space<vmem>>, %arg4: memref<64x1xf32, #tpu.memory_space<vmem>>, %arg5: memref<64x128xbf16, #tpu.memory_space<vmem>>, %arg6: memref<64x128xbf16, #tpu.memory_space<vmem>>, %arg7: memref<1x1xf32, #tpu.memory_space<vmem>>, %arg8: memref<1x1xf32, #tpu.memory_space<vmem>>, %arg9: memref<1x1xf32, #tpu.memory_space<vmem>>) attributes {dimension_semantics = [#tpu.dimension_semantics<arbitrary>], iteration_bounds = array<i64: 2>, scalar_prefetch = 0 : i64, scratch_operands = 2 : i64, tpu.core_type = #tpu.core_type<tc>, window_params = [{transform_indices = @transform_0, window_bounds = array<i64: 64, 128>}, {transform_indices = @transform_1, window_bounds = array<i64: 64, 128>}, {transform_indices = @transform_2, window_bounds = array<i64: 64, 128>}, {transform_indices = @transform_3, window_bounds = array<i64: 64, 1>}, {transform_indices = @transform_4, window_bounds = array<i64: 64, 128>}, {transform_indices = @transform_5, window_bounds = array<i64: 64, 128>}, {pipeline_mode = #tpu.pipeline_mode<synchronous>, transform_indices = @transform_6, window_bounds = array<i64: 1, 1>}]} {
    %c0_i32 = arith.constant 0 : i32
    %0 = arith.cmpi eq, %arg0, %c0_i32 : i32
    %1 = arith.extui %0 : i1 to i32
    %c0_i32_0 = arith.constant 0 : i32
    %2 = arith.cmpi ne, %1, %c0_i32_0 : i32
    scf.if %2 {
      %cst_29 = arith.constant 0.000000e+00 : f32
      %54 = vector.broadcast %cst_29 : f32 to vector<1x1xf32>
      %c0_30 = arith.constant 0 : index
      %c0_31 = arith.constant 0 : index
      %55 = vector.load %arg8[%c0_30, %c0_31] : memref<1x1xf32, #tpu.memory_space<vmem>>, vector<1x1xf32>
      tpu.vector_store %arg8[%c0_30, %c0_31], %54 {strides = array<i32>} : memref<1x1xf32, #tpu.memory_space<vmem>>, vector<1x1xf32>,
      %cst_32 = arith.constant 0.000000e+00 : f32
      %56 = vector.broadcast %cst_32 : f32 to vector<1x1xf32>
      %c0_33 = arith.constant 0 : index
      %c0_34 = arith.constant 0 : index
      %57 = vector.load %arg9[%c0_33, %c0_34] : memref<1x1xf32, #tpu.memory_space<vmem>>, vector<1x1xf32>
      tpu.vector_store %arg9[%c0_33, %c0_34], %56 {strides = array<i32>} : memref<1x1xf32, #tpu.memory_space<vmem>>, vector<1x1xf32>,
    } else {
    }
    %c0 = arith.constant 0 : index
    %c0_1 = arith.constant 0 : index
    %3 = vector.load %arg1[%c0, %c0_1] : memref<64x128xf32, #tpu.memory_space<vmem>>, vector<64x128xf32>
    %c0_2 = arith.constant 0 : index
    %c0_3 = arith.constant 0 : index
    %4 = vector.load %arg2[%c0_2, %c0_3] : memref<64x128xf32, #tpu.memory_space<vmem>>, vector<64x128xf32>
    %c0_4 = arith.constant 0 : index
    %c0_5 = arith.constant 0 : index
    %5 = vector.load %arg3[%c0_4, %c0_5] : memref<64x128xf32, #tpu.memory_space<vmem>>, vector<64x128xf32>
    %cst = arith.constant 5.000000e-01 : f32
    %6 = vector.broadcast %cst : f32 to vector<64x128xf32>
    %7 = arith.mulf %6, %4 : vector<64x128xf32>
    %8 = math.exp %7 : vector<64x128xf32>
    %9 = arith.mulf %5, %8 : vector<64x128xf32>
    %10 = arith.addf %3, %9 : vector<64x128xf32>
    %c0_6 = arith.constant 0 : index
    %c0_7 = arith.constant 0 : index
    %11 = vector.load %arg5[%c0_6, %c0_7] : memref<64x128xbf16, #tpu.memory_space<vmem>>, vector<64x128xbf16>
    %12 = arith.extf %11 : vector<64x128xbf16> to vector<64x128xf32>
    %13 = arith.mulf %12, %10 : vector<64x128xf32>
    %14 = arith.truncf %13 : vector<64x128xf32> to vector<64x128xbf16>
    %c0_8 = arith.constant 0 : index
    %c0_9 = arith.constant 0 : index
    %15 = vector.load %arg6[%c0_8, %c0_9] : memref<64x128xbf16, #tpu.memory_space<vmem>>, vector<64x128xbf16>
    tpu.vector_store %arg6[%c0_8, %c0_9], %14 {strides = array<i32>} : memref<64x128xbf16, #tpu.memory_space<vmem>>, vector<64x128xbf16>,
    %16 = math.exp %4 : vector<64x128xf32>
    %cst_10 = arith.constant 1.000000e+00 : f32
    %17 = vector.broadcast %cst_10 : f32 to vector<64x128xf32>
    %18 = arith.subf %3, %17 : vector<64x128xf32>
    %19 = arith.mulf %18, %18 : vector<64x128xf32>
    %20 = arith.addf %16, %19 : vector<64x128xf32>
    %cst_11 = arith.constant 1.09861231 : f32
    %21 = math.exp %cst_11 : f32
    %22 = vector.broadcast %21 : f32 to vector<64x128xf32>
    %23 = arith.mulf %20, %22 : vector<64x128xf32>
    %cst_12 = arith.constant -1.09861231 : f32
    %24 = vector.broadcast %cst_12 : f32 to vector<64x128xf32>
    %25 = arith.subf %24, %4 : vector<64x128xf32>
    %26 = arith.addf %25, %23 : vector<64x128xf32>
    %cst_13 = arith.constant 1.000000e+00 : f32
    %27 = vector.broadcast %cst_13 : f32 to vector<64x128xf32>
    %28 = arith.subf %26, %27 : vector<64x128xf32>
    %cst_14 = arith.constant dense<0.000000e+00> : vector<64xf32>
    %29 = vector.multi_reduction <add>, %28, %cst_14 [1] : vector<64x128xf32> to vector<64xf32>
    %30 = vector.shape_cast %29 : vector<64xf32> to vector<64x1xf32>
    %cst_15 = arith.constant 5.000000e-01 : f32
    %31 = vector.broadcast %cst_15 : f32 to vector<64x1xf32>
    %32 = arith.mulf %31, %30 : vector<64x1xf32>
    %c0_16 = arith.constant 0 : index
    %c0_17 = arith.constant 0 : index
    %33 = vector.load %arg4[%c0_16, %c0_17] : memref<64x1xf32, #tpu.memory_space<vmem>>, vector<64x1xf32>
    %c0_18 = arith.constant 0 : index
    %c0_19 = arith.constant 0 : index
    %34 = vector.load %arg8[%c0_18, %c0_19] : memref<1x1xf32, #tpu.memory_space<vmem>>, vector<1x1xf32>
    %35 = arith.mulf %32, %33 : vector<64x1xf32>
    %36 = vector.shape_cast %35 : vector<64x1xf32> to vector<1x64x1xf32>
    %cst_20 = arith.constant dense<0.000000e+00> : vector<1xf32>
    %37 = vector.multi_reduction <add>, %36, %cst_20 [1, 2] : vector<1x64x1xf32> to vector<1xf32>
    %38 = vector.shape_cast %37 : vector<1xf32> to vector<1x1x1xf32>
    %39 = vector.extract %38[0, 0, 0] : f32 from vector<1x1x1xf32>
    %40 = vector.broadcast %39 : f32 to vector<1x1xf32>
    %41 = arith.addf %34, %40 : vector<1x1xf32>
    %c0_21 = arith.constant 0 : index
    %c0_22 = arith.constant 0 : index
    %42 = vector.load %arg8[%c0_21, %c0_22] : memref<1x1xf32, #tpu.memory_space<vmem>>, vector<1x1xf32>
    tpu.vector_store %arg8[%c0_21, %c0_22], %41 {strides = array<i32>} : memref<1x1xf32, #tpu.memory_space<vmem>>, vector<1x1xf32>,
    %c0_23 = arith.constant 0 : index
    %c0_24 = arith.constant 0 : index
    %43 = vector.load %arg9[%c0_23, %c0_24] : memref<1x1xf32, #tpu.memory_space<vmem>>, vector<1x1xf32>
    %44 = vector.shape_cast %33 : vector<64x1xf32> to vector<1x64x1xf32>
    %cst_25 = arith.constant dense<0.000000e+00> : vector<1xf32>
    %45 = vector.multi_reduction <add>, %44, %cst_25 [1, 2] : vector<1x64x1xf32> to vector<1xf32>
    %46 = vector.shape_cast %45 : vector<1xf32> to vector<1x1x1xf32>
    %47 = vector.extract %46[0, 0, 0] : f32 from vector<1x1x1xf32>
    %48 = vector.broadcast %47 : f32 to vector<1x1xf32>
    %49 = arith.addf %43, %48 : vector<1x1xf32>
    %c0_26 = arith.constant 0 : index
    %c0_27 = arith.constant 0 : index
    %50 = vector.load %arg9[%c0_26, %c0_27] : memref<1x1xf32, #tpu.memory_space<vmem>>, vector<1x1xf32>
    tpu.vector_store %arg9[%c0_26, %c0_27], %49 {strides = array<i32>} : memref<1x1xf32, #tpu.memory_space<vmem>>, vector<1x1xf32>,
    %c1_i32 = arith.constant 1 : i32
    %51 = arith.cmpi eq, %arg0, %c1_i32 : i32
    %52 = arith.extui %51 : i1 to i32
    %c0_i32_28 = arith.constant 0 : i32
    %53 = arith.cmpi ne, %52, %c0_i32_28 : i32
    scf.if %53 {
      %c0_29 = arith.constant 0 : index
      %c0_30 = arith.constant 0 : index
      %54 = vector.load %arg8[%c0_29, %c0_30] : memref<1x1xf32, #tpu.memory_space<vmem>>, vector<1x1xf32>
      %c0_31 = arith.constant 0 : index
      %c0_32 = arith.constant 0 : index
      %55 = vector.load %arg9[%c0_31, %c0_32] : memref<1x1xf32, #tpu.memory_space<vmem>>, vector<1x1xf32>
      %cst_33 = arith.constant 1.000000e+00 : f32
      %56 = vector.broadcast %cst_33 : f32 to vector<1x1xf32>
      %57 = arith.maximumf %55, %56 : vector<1x1xf32>
      %58 = arith.divf %54, %57 : vector<1x1xf32>
      %c0_34 = arith.constant 0 : index
      %c0_35 = arith.constant 0 : index
      %59 = vector.load %arg7[%c0_34, %c0_35] : memref<1x1xf32, #tpu.memory_space<vmem>>, vector<1x1xf32>
      tpu.vector_store %arg7[%c0_34, %c0_35], %58 {strides = array<i32>} : memref<1x1xf32, #tpu.memory_space<vmem>>, vector<1x1xf32>,
    } else {
    }
    return
  }
  func.func @transform_0(%arg0: i32) -> (i32, i32) {
    %c0_i32 = arith.constant 0 : i32
    %c0_i32_0 = arith.constant 0 : i32
    return %arg0, %c0_i32 : i32, i32
  }
  func.func @transform_1(%arg0: i32) -> (i32, i32) {
    %c1_i32 = arith.constant 1 : i32
    %c0_i32 = arith.constant 0 : i32
    return %arg0, %c1_i32 : i32, i32
  }
  func.func @transform_2(%arg0: i32) -> (i32, i32) {
    %c0_i32 = arith.constant 0 : i32
    %c0_i32_0 = arith.constant 0 : i32
    return %arg0, %c0_i32 : i32, i32
  }
  func.func @transform_3(%arg0: i32) -> (i32, i32) {
    %c0_i32 = arith.constant 0 : i32
    %c0_i32_0 = arith.constant 0 : i32
    return %arg0, %c0_i32 : i32, i32
  }
  func.func @transform_4(%arg0: i32) -> (i32, i32) {
    %c0_i32 = arith.constant 0 : i32
    %c0_i32_0 = arith.constant 0 : i32
    return %arg0, %c0_i32 : i32, i32
  }
  func.func @transform_5(%arg0: i32) -> (i32, i32) {
    %c0_i32 = arith.constant 0 : i32
    %c0_i32_0 = arith.constant 0 : i32
    return %arg0, %c0_i32 : i32, i32
  }
  func.func @transform_6(%arg0: i32) -> (i32, i32) {
    %c0_i32 = arith.constant 0 : i32
    %c0_i32_0 = arith.constant 0 : i32
    %c0_i32_1 = arith.constant 0 : i32
    return %c0_i32, %c0_i32_0 : i32, i32
  }
}

module attributes {stable_mosaic.version = 11 : i64} {
  func.func @_attn_kernel(%arg0: i32, %arg1: memref<1x1x64xf32, #tpu.memory_space<vmem>>, %arg2: memref<64x128xbf16, #tpu.memory_space<vmem>>, %arg3: memref<64x128xbf16, #tpu.memory_space<vmem>>, %arg4: memref<64x128xbf16, #tpu.memory_space<vmem>>, %arg5: memref<128x128xbf16, #tpu.memory_space<vmem>>, %arg6: memref<64x128xbf16, #tpu.memory_space<vmem>>, %arg7: memref<64x128xbf16, #tpu.memory_space<vmem>>) attributes {dimension_semantics = [#tpu.dimension_semantics<parallel>], iteration_bounds = array<i64: 2>, scalar_prefetch = 0 : i64, scratch_operands = 0 : i64, tpu.core_type = #tpu.core_type<tc>, window_params = [{transform_indices = @transform_0, window_bounds = array<i64: 1, 1, 64>}, {transform_indices = @transform_1, window_bounds = array<i64: 64, 128>}, {transform_indices = @transform_2, window_bounds = array<i64: 64, 128>}, {transform_indices = @transform_3, window_bounds = array<i64: 64, 128>}, {pipeline_mode = #tpu.pipeline_mode<synchronous>, transform_indices = @transform_4, window_bounds = array<i64: 128, 128>}, {transform_indices = @transform_5, window_bounds = array<i64: 64, 128>}, {transform_indices = @transform_6, window_bounds = array<i64: 64, 128>}]} {
    %c0 = arith.constant 0 : index
    %c0_0 = arith.constant 0 : index
    %0 = vector.load %arg2[%c0, %c0_0] : memref<64x128xbf16, #tpu.memory_space<vmem>>, vector<64x128xbf16>
    %c0_1 = arith.constant 0 : index
    %c0_2 = arith.constant 0 : index
    %1 = vector.load %arg3[%c0_1, %c0_2] : memref<64x128xbf16, #tpu.memory_space<vmem>>, vector<64x128xbf16>
    %c0_3 = arith.constant 0 : index
    %c0_4 = arith.constant 0 : index
    %2 = vector.load %arg4[%c0_3, %c0_4] : memref<64x128xbf16, #tpu.memory_space<vmem>>, vector<64x128xbf16>
    %cst = arith.constant dense<0.000000e+00> : vector<64x64xf32>
    %3 = tpu.matmul %0, %1, %cst {dimension_numbers = #tpu.dot_dimension_numbers<[1], [1], [0], [0], [0, 0, 1, 0], [], []>} : vector<64x128xbf16>, vector<64x128xbf16>, vector<64x64xf32> -> vector<64x64xf32>
    %cst_5 = arith.constant 0.0883883461 : f32
    %4 = vector.broadcast %cst_5 : f32 to vector<64x64xf32>
    %5 = arith.mulf %3, %4 : vector<64x64xf32>
    %c0_6 = arith.constant 0 : index
    %c0_7 = arith.constant 0 : index
    %c0_8 = arith.constant 0 : index
    %6 = vector.load %arg1[%c0_6, %c0_7, %c0_8] : memref<1x1x64xf32, #tpu.memory_space<vmem>>, vector<1x1x64xf32>
    %7 = vector.shape_cast %6 : vector<1x1x64xf32> to vector<1x64xf32>
    %cst_9 = arith.constant 1.000000e+00 : f32
    %8 = vector.broadcast %cst_9 : f32 to vector<1x64xf32>
    %9 = arith.subf %8, %7 : vector<1x64xf32>
    %cst_10 = arith.constant -1.000000e+09 : f32
    %10 = vector.broadcast %cst_10 : f32 to vector<1x64xf32>
    %11 = arith.mulf %9, %10 : vector<1x64xf32>
    %12 = vector.broadcast %11 : vector<1x64xf32> to vector<64x64xf32>
    %13 = arith.addf %5, %12 : vector<64x64xf32>
    %14 = tpu.iota {dimensions = array<i32: 0>} : vector<64x64xi32>
    %15 = tpu.iota {dimensions = array<i32: 1>} : vector<64x64xi32>
    %16 = arith.cmpi sge, %14, %15 : vector<64x64xi32>
    %cst_11 = arith.constant -1.000000e+09 : f32
    %17 = vector.broadcast %cst_11 : f32 to vector<64x64xf32>
    %18 = arith.select %16, %13, %17 : vector<64x64xi1>, vector<64x64xf32>
    %cst_12 = arith.constant dense<0xFF800000> : vector<64xf32>
    %19 = vector.multi_reduction <maximumf>, %18, %cst_12 [1] : vector<64x64xf32> to vector<64xf32>
    %20 = vector.shape_cast %19 : vector<64xf32> to vector<64x1xf32>
    %21 = vector.broadcast %20 : vector<64x1xf32> to vector<64x64xf32>
    %22 = arith.subf %18, %21 : vector<64x64xf32>
    %23 = math.exp %22 : vector<64x64xf32>
    %cst_13 = arith.constant dense<0.000000e+00> : vector<64xf32>
    %24 = vector.multi_reduction <add>, %23, %cst_13 [1] : vector<64x64xf32> to vector<64xf32>
    %25 = vector.shape_cast %24 : vector<64xf32> to vector<64x1xf32>
    %26 = arith.truncf %23 : vector<64x64xf32> to vector<64x64xbf16>
    %cst_14 = arith.constant dense<0.000000e+00> : vector<64x128xf32>
    %27 = tpu.matmul %26, %2, %cst_14 {dimension_numbers = #tpu.dot_dimension_numbers<[1], [0], [0], [1], [0, 0, 1, 1], [], []>} : vector<64x64xbf16>, vector<64x128xbf16>, vector<64x128xf32> -> vector<64x128xf32>
    %28 = vector.broadcast %25 : vector<64x1xf32> to vector<64x128xf32>
    %29 = arith.divf %27, %28 : vector<64x128xf32>
    %30 = arith.truncf %29 : vector<64x128xf32> to vector<64x128xbf16>
    %c0_15 = arith.constant 0 : index
    %c0_16 = arith.constant 0 : index
    %31 = vector.load %arg5[%c0_15, %c0_16] : memref<128x128xbf16, #tpu.memory_space<vmem>>, vector<128x128xbf16>
    %cst_17 = arith.constant dense<0.000000e+00> : vector<64x128xf32>
    %32 = tpu.matmul %30, %31, %cst_17 {dimension_numbers = #tpu.dot_dimension_numbers<[1], [0], [0], [1], [0, 0, 1, 1], [], []>} : vector<64x128xbf16>, vector<128x128xbf16>, vector<64x128xf32> -> vector<64x128xf32>
    %c0_18 = arith.constant 0 : index
    %c0_19 = arith.constant 0 : index
    %33 = vector.load %arg6[%c0_18, %c0_19] : memref<64x128xbf16, #tpu.memory_space<vmem>>, vector<64x128xbf16>
    %34 = arith.extf %33 : vector<64x128xbf16> to vector<64x128xf32>
    %35 = arith.addf %32, %34 : vector<64x128xf32>
    %36 = arith.truncf %35 : vector<64x128xf32> to vector<64x128xbf16>
    %c0_20 = arith.constant 0 : index
    %c0_21 = arith.constant 0 : index
    %37 = vector.load %arg7[%c0_20, %c0_21] : memref<64x128xbf16, #tpu.memory_space<vmem>>, vector<64x128xbf16>
    tpu.vector_store %arg7[%c0_20, %c0_21], %36 {strides = array<i32>} : memref<64x128xbf16, #tpu.memory_space<vmem>>, vector<64x128xbf16>,
    return
  }
  func.func @transform_0(%arg0: i32) -> (i32, i32, i32) {
    %c0_i32 = arith.constant 0 : i32
    %c0_i32_0 = arith.constant 0 : i32
    %c0_i32_1 = arith.constant 0 : i32
    return %arg0, %c0_i32, %c0_i32_0 : i32, i32, i32
  }
  func.func @transform_1(%arg0: i32) -> (i32, i32) {
    %c0_i32 = arith.constant 0 : i32
    %c0_i32_0 = arith.constant 0 : i32
    return %arg0, %c0_i32 : i32, i32
  }
  func.func @transform_2(%arg0: i32) -> (i32, i32) {
    %c1_i32 = arith.constant 1 : i32
    %c0_i32 = arith.constant 0 : i32
    return %arg0, %c1_i32 : i32, i32
  }
  func.func @transform_3(%arg0: i32) -> (i32, i32) {
    %c2_i32 = arith.constant 2 : i32
    %c0_i32 = arith.constant 0 : i32
    return %arg0, %c2_i32 : i32, i32
  }
  func.func @transform_4(%arg0: i32) -> (i32, i32) {
    %c0_i32 = arith.constant 0 : i32
    %c0_i32_0 = arith.constant 0 : i32
    %c0_i32_1 = arith.constant 0 : i32
    return %c0_i32, %c0_i32_0 : i32, i32
  }
  func.func @transform_5(%arg0: i32) -> (i32, i32) {
    %c0_i32 = arith.constant 0 : i32
    %c0_i32_0 = arith.constant 0 : i32
    return %arg0, %c0_i32 : i32, i32
  }
  func.func @transform_6(%arg0: i32) -> (i32, i32) {
    %c0_i32 = arith.constant 0 : i32
    %c0_i32_0 = arith.constant 0 : i32
    return %arg0, %c0_i32 : i32, i32
  }
}

module attributes {stable_mosaic.version = 11 : i64} {
  func.func @_matmul_kernel(%arg0: i32, %arg1: i32, %arg2: i32, %arg3: memref<64x128xbf16, #tpu.memory_space<vmem>>, %arg4: memref<128x256xbf16, #tpu.memory_space<vmem>>, %arg5: memref<64x256xbf16, #tpu.memory_space<vmem>>, %arg6: memref<64x256xf32, #tpu.memory_space<vmem>>) attributes {dimension_semantics = [#tpu.dimension_semantics<parallel>, #tpu.dimension_semantics<parallel>, #tpu.dimension_semantics<arbitrary>], iteration_bounds = array<i64: 2, 1, 1>, scalar_prefetch = 0 : i64, scratch_operands = 1 : i64, tpu.core_type = #tpu.core_type<tc>, window_params = [{transform_indices = @transform_0, window_bounds = array<i64: 64, 128>}, {transform_indices = @transform_1, window_bounds = array<i64: 128, 256>}, {transform_indices = @transform_2, window_bounds = array<i64: 64, 256>}]} {
    %c0_i32 = arith.constant 0 : i32
    %0 = arith.cmpi eq, %arg2, %c0_i32 : i32
    %1 = arith.extui %0 : i1 to i32
    %c0_i32_0 = arith.constant 0 : i32
    %2 = arith.cmpi ne, %1, %c0_i32_0 : i32
    scf.if %2 {
      %cst_10 = arith.constant 0.000000e+00 : f32
      %12 = vector.broadcast %cst_10 : f32 to vector<64x256xf32>
      %c0_11 = arith.constant 0 : index
      %c0_12 = arith.constant 0 : index
      %13 = vector.load %arg6[%c0_11, %c0_12] : memref<64x256xf32, #tpu.memory_space<vmem>>, vector<64x256xf32>
      tpu.vector_store %arg6[%c0_11, %c0_12], %12 {strides = array<i32>} : memref<64x256xf32, #tpu.memory_space<vmem>>, vector<64x256xf32>,
    } else {
    }
    %c0 = arith.constant 0 : index
    %c0_1 = arith.constant 0 : index
    %3 = vector.load %arg6[%c0, %c0_1] : memref<64x256xf32, #tpu.memory_space<vmem>>, vector<64x256xf32>
    %c0_2 = arith.constant 0 : index
    %c0_3 = arith.constant 0 : index
    %4 = vector.load %arg3[%c0_2, %c0_3] : memref<64x128xbf16, #tpu.memory_space<vmem>>, vector<64x128xbf16>
    %c0_4 = arith.constant 0 : index
    %c0_5 = arith.constant 0 : index
    %5 = vector.load %arg4[%c0_4, %c0_5] : memref<128x256xbf16, #tpu.memory_space<vmem>>, vector<128x256xbf16>
    %cst = arith.constant dense<0.000000e+00> : vector<64x256xf32>
    %6 = tpu.matmul %4, %5, %cst {dimension_numbers = #tpu.dot_dimension_numbers<[1], [0], [0], [1], [0, 0, 1, 1], [], []>} : vector<64x128xbf16>, vector<128x256xbf16>, vector<64x256xf32> -> vector<64x256xf32>
    %7 = arith.addf %3, %6 : vector<64x256xf32>
    %c0_6 = arith.constant 0 : index
    %c0_7 = arith.constant 0 : index
    %8 = vector.load %arg6[%c0_6, %c0_7] : memref<64x256xf32, #tpu.memory_space<vmem>>, vector<64x256xf32>
    tpu.vector_store %arg6[%c0_6, %c0_7], %7 {strides = array<i32>} : memref<64x256xf32, #tpu.memory_space<vmem>>, vector<64x256xf32>,
    %c0_i32_8 = arith.constant 0 : i32
    %9 = arith.cmpi eq, %arg2, %c0_i32_8 : i32
    %10 = arith.extui %9 : i1 to i32
    %c0_i32_9 = arith.constant 0 : i32
    %11 = arith.cmpi ne, %10, %c0_i32_9 : i32
    scf.if %11 {
      %c0_10 = arith.constant 0 : index
      %c0_11 = arith.constant 0 : index
      %12 = vector.load %arg6[%c0_10, %c0_11] : memref<64x256xf32, #tpu.memory_space<vmem>>, vector<64x256xf32>
      %13 = arith.truncf %12 : vector<64x256xf32> to vector<64x256xbf16>
      %c0_12 = arith.constant 0 : index
      %c0_13 = arith.constant 0 : index
      %14 = vector.load %arg5[%c0_12, %c0_13] : memref<64x256xbf16, #tpu.memory_space<vmem>>, vector<64x256xbf16>
      tpu.vector_store %arg5[%c0_12, %c0_13], %13 {strides = array<i32>} : memref<64x256xbf16, #tpu.memory_space<vmem>>, vector<64x256xbf16>,
    } else {
    }
    return
  }
  func.func @transform_0(%arg0: i32, %arg1: i32, %arg2: i32) -> (i32, i32) {
    %c0_i32 = arith.constant 0 : i32
    return %arg0, %arg2 : i32, i32
  }
  func.func @transform_1(%arg0: i32, %arg1: i32, %arg2: i32) -> (i32, i32) {
    %c0_i32 = arith.constant 0 : i32
    return %arg2, %arg1 : i32, i32
  }
  func.func @transform_2(%arg0: i32, %arg1: i32, %arg2: i32) -> (i32, i32) {
    %c0_i32 = arith.constant 0 : i32
    return %arg0, %arg1 : i32, i32
  }
}

module attributes {stable_mosaic.version = 11 : i64} {
  func.func @_ln_matmul_kernel(%arg0: i32, %arg1: i32, %arg2: memref<64x128xbf16, #tpu.memory_space<vmem>>, %arg3: memref<1x128xf32, #tpu.memory_space<vmem>>, %arg4: memref<128x128xbf16, #tpu.memory_space<vmem>>, %arg5: memref<64x128xbf16, #tpu.memory_space<vmem>>, %arg6: memref<64x128xbf16, #tpu.memory_space<vmem>>) attributes {dimension_semantics = [#tpu.dimension_semantics<parallel>, #tpu.dimension_semantics<arbitrary>], iteration_bounds = array<i64: 2, 1>, scalar_prefetch = 0 : i64, scratch_operands = 1 : i64, tpu.core_type = #tpu.core_type<tc>, window_params = [{transform_indices = @transform_0, window_bounds = array<i64: 64, 128>}, {pipeline_mode = #tpu.pipeline_mode<synchronous>, transform_indices = @transform_1, window_bounds = array<i64: 1, 128>}, {transform_indices = @transform_2, window_bounds = array<i64: 128, 128>}, {transform_indices = @transform_3, window_bounds = array<i64: 64, 128>}]} {
    %c0_i32 = arith.constant 0 : i32
    %0 = arith.cmpi eq, %arg1, %c0_i32 : i32
    %1 = arith.extui %0 : i1 to i32
    %c0_i32_0 = arith.constant 0 : i32
    %2 = arith.cmpi ne, %1, %c0_i32_0 : i32
    scf.if %2 {
      %c0_6 = arith.constant 0 : index
      %c0_7 = arith.constant 0 : index
      %8 = vector.load %arg2[%c0_6, %c0_7] : memref<64x128xbf16, #tpu.memory_space<vmem>>, vector<64x128xbf16>
      %9 = arith.extf %8 : vector<64x128xbf16> to vector<64x128xf32>
      %10 = arith.mulf %9, %9 : vector<64x128xf32>
      %cst_8 = arith.constant dense<0.000000e+00> : vector<64xf32>
      %11 = vector.multi_reduction <add>, %10, %cst_8 [1] : vector<64x128xf32> to vector<64xf32>
      %12 = vector.shape_cast %11 : vector<64xf32> to vector<64x1xf32>
      %cst_9 = arith.constant 1.280000e+02 : f32
      %13 = vector.broadcast %cst_9 : f32 to vector<64x1xf32>
      %14 = arith.divf %12, %13 : vector<64x1xf32>
      %cst_10 = arith.constant 9.99999997E-7 : f32
      %15 = vector.broadcast %cst_10 : f32 to vector<64x1xf32>
      %16 = arith.addf %14, %15 : vector<64x1xf32>
      %17 = math.rsqrt %16 : vector<64x1xf32>
      %18 = vector.broadcast %17 : vector<64x1xf32> to vector<64x128xf32>
      %19 = arith.mulf %9, %18 : vector<64x128xf32>
      %c0_11 = arith.constant 0 : index
      %c0_12 = arith.constant 0 : index
      %20 = vector.load %arg3[%c0_11, %c0_12] : memref<1x128xf32, #tpu.memory_space<vmem>>, vector<1x128xf32>
      %21 = vector.broadcast %20 : vector<1x128xf32> to vector<64x128xf32>
      %22 = arith.mulf %19, %21 : vector<64x128xf32>
      %23 = arith.truncf %22 : vector<64x128xf32> to vector<64x128xbf16>
      %c0_13 = arith.constant 0 : index
      %c0_14 = arith.constant 0 : index
      %24 = vector.load %arg6[%c0_13, %c0_14] : memref<64x128xbf16, #tpu.memory_space<vmem>>, vector<64x128xbf16>
      tpu.vector_store %arg6[%c0_13, %c0_14], %23 {strides = array<i32>} : memref<64x128xbf16, #tpu.memory_space<vmem>>, vector<64x128xbf16>,
    } else {
    }
    %c0 = arith.constant 0 : index
    %c0_1 = arith.constant 0 : index
    %3 = vector.load %arg6[%c0, %c0_1] : memref<64x128xbf16, #tpu.memory_space<vmem>>, vector<64x128xbf16>
    %c0_2 = arith.constant 0 : index
    %c0_3 = arith.constant 0 : index
    %4 = vector.load %arg4[%c0_2, %c0_3] : memref<128x128xbf16, #tpu.memory_space<vmem>>, vector<128x128xbf16>
    %cst = arith.constant dense<0.000000e+00> : vector<64x128xf32>
    %5 = tpu.matmul %3, %4, %cst {dimension_numbers = #tpu.dot_dimension_numbers<[1], [0], [0], [1], [0, 0, 1, 1], [], []>} : vector<64x128xbf16>, vector<128x128xbf16>, vector<64x128xf32> -> vector<64x128xf32>
    %6 = arith.truncf %5 : vector<64x128xf32> to vector<64x128xbf16>
    %c0_4 = arith.constant 0 : index
    %c0_5 = arith.constant 0 : index
    %7 = vector.load %arg5[%c0_4, %c0_5] : memref<64x128xbf16, #tpu.memory_space<vmem>>, vector<64x128xbf16>
    tpu.vector_store %arg5[%c0_4, %c0_5], %6 {strides = array<i32>} : memref<64x128xbf16, #tpu.memory_space<vmem>>, vector<64x128xbf16>,
    return
  }
  func.func @transform_0(%arg0: i32, %arg1: i32) -> (i32, i32) {
    %c0_i32 = arith.constant 0 : i32
    %c0_i32_0 = arith.constant 0 : i32
    return %arg0, %c0_i32 : i32, i32
  }
  func.func @transform_1(%arg0: i32, %arg1: i32) -> (i32, i32) {
    %c0_i32 = arith.constant 0 : i32
    %c0_i32_0 = arith.constant 0 : i32
    %c0_i32_1 = arith.constant 0 : i32
    return %c0_i32, %c0_i32_0 : i32, i32
  }
  func.func @transform_2(%arg0: i32, %arg1: i32) -> (i32, i32) {
    %c0_i32 = arith.constant 0 : i32
    %c0_i32_0 = arith.constant 0 : i32
    return %c0_i32, %arg1 : i32, i32
  }
  func.func @transform_3(%arg0: i32, %arg1: i32) -> (i32, i32) {
    %c0_i32 = arith.constant 0 : i32
    return %arg0, %arg1 : i32, i32
  }
}

module attributes {stable_mosaic.version = 11 : i64} {
  func.func @_attn_kernel(%arg0: i32, %arg1: memref<1x1x64xf32, #tpu.memory_space<vmem>>, %arg2: memref<64x128xbf16, #tpu.memory_space<vmem>>, %arg3: memref<64x128xbf16, #tpu.memory_space<vmem>>, %arg4: memref<64x128xbf16, #tpu.memory_space<vmem>>, %arg5: memref<128x128xbf16, #tpu.memory_space<vmem>>, %arg6: memref<64x128xbf16, #tpu.memory_space<vmem>>, %arg7: memref<64x128xbf16, #tpu.memory_space<vmem>>) attributes {dimension_semantics = [#tpu.dimension_semantics<parallel>], iteration_bounds = array<i64: 2>, scalar_prefetch = 0 : i64, scratch_operands = 0 : i64, tpu.core_type = #tpu.core_type<tc>, window_params = [{transform_indices = @transform_0, window_bounds = array<i64: 1, 1, 64>}, {transform_indices = @transform_1, window_bounds = array<i64: 64, 128>}, {transform_indices = @transform_2, window_bounds = array<i64: 64, 128>}, {transform_indices = @transform_3, window_bounds = array<i64: 64, 128>}, {pipeline_mode = #tpu.pipeline_mode<synchronous>, transform_indices = @transform_4, window_bounds = array<i64: 128, 128>}, {transform_indices = @transform_5, window_bounds = array<i64: 64, 128>}, {transform_indices = @transform_6, window_bounds = array<i64: 64, 128>}]} {
    %c0 = arith.constant 0 : index
    %c0_0 = arith.constant 0 : index
    %0 = vector.load %arg2[%c0, %c0_0] : memref<64x128xbf16, #tpu.memory_space<vmem>>, vector<64x128xbf16>
    %c0_1 = arith.constant 0 : index
    %c0_2 = arith.constant 0 : index
    %1 = vector.load %arg3[%c0_1, %c0_2] : memref<64x128xbf16, #tpu.memory_space<vmem>>, vector<64x128xbf16>
    %c0_3 = arith.constant 0 : index
    %c0_4 = arith.constant 0 : index
    %2 = vector.load %arg4[%c0_3, %c0_4] : memref<64x128xbf16, #tpu.memory_space<vmem>>, vector<64x128xbf16>
    %cst = arith.constant dense<0.000000e+00> : vector<64x64xf32>
    %3 = tpu.matmul %0, %1, %cst {dimension_numbers = #tpu.dot_dimension_numbers<[1], [1], [0], [0], [0, 0, 1, 0], [], []>} : vector<64x128xbf16>, vector<64x128xbf16>, vector<64x64xf32> -> vector<64x64xf32>
    %cst_5 = arith.constant 0.0883883461 : f32
    %4 = vector.broadcast %cst_5 : f32 to vector<64x64xf32>
    %5 = arith.mulf %3, %4 : vector<64x64xf32>
    %c0_6 = arith.constant 0 : index
    %c0_7 = arith.constant 0 : index
    %c0_8 = arith.constant 0 : index
    %6 = vector.load %arg1[%c0_6, %c0_7, %c0_8] : memref<1x1x64xf32, #tpu.memory_space<vmem>>, vector<1x1x64xf32>
    %7 = vector.shape_cast %6 : vector<1x1x64xf32> to vector<1x64xf32>
    %cst_9 = arith.constant 1.000000e+00 : f32
    %8 = vector.broadcast %cst_9 : f32 to vector<1x64xf32>
    %9 = arith.subf %8, %7 : vector<1x64xf32>
    %cst_10 = arith.constant -1.000000e+09 : f32
    %10 = vector.broadcast %cst_10 : f32 to vector<1x64xf32>
    %11 = arith.mulf %9, %10 : vector<1x64xf32>
    %12 = vector.broadcast %11 : vector<1x64xf32> to vector<64x64xf32>
    %13 = arith.addf %5, %12 : vector<64x64xf32>
    %cst_11 = arith.constant dense<0xFF800000> : vector<64xf32>
    %14 = vector.multi_reduction <maximumf>, %13, %cst_11 [1] : vector<64x64xf32> to vector<64xf32>
    %15 = vector.shape_cast %14 : vector<64xf32> to vector<64x1xf32>
    %16 = vector.broadcast %15 : vector<64x1xf32> to vector<64x64xf32>
    %17 = arith.subf %13, %16 : vector<64x64xf32>
    %18 = math.exp %17 : vector<64x64xf32>
    %cst_12 = arith.constant dense<0.000000e+00> : vector<64xf32>
    %19 = vector.multi_reduction <add>, %18, %cst_12 [1] : vector<64x64xf32> to vector<64xf32>
    %20 = vector.shape_cast %19 : vector<64xf32> to vector<64x1xf32>
    %21 = arith.truncf %18 : vector<64x64xf32> to vector<64x64xbf16>
    %cst_13 = arith.constant dense<0.000000e+00> : vector<64x128xf32>
    %22 = tpu.matmul %21, %2, %cst_13 {dimension_numbers = #tpu.dot_dimension_numbers<[1], [0], [0], [1], [0, 0, 1, 1], [], []>} : vector<64x64xbf16>, vector<64x128xbf16>, vector<64x128xf32> -> vector<64x128xf32>
    %23 = vector.broadcast %20 : vector<64x1xf32> to vector<64x128xf32>
    %24 = arith.divf %22, %23 : vector<64x128xf32>
    %25 = arith.truncf %24 : vector<64x128xf32> to vector<64x128xbf16>
    %c0_14 = arith.constant 0 : index
    %c0_15 = arith.constant 0 : index
    %26 = vector.load %arg5[%c0_14, %c0_15] : memref<128x128xbf16, #tpu.memory_space<vmem>>, vector<128x128xbf16>
    %cst_16 = arith.constant dense<0.000000e+00> : vector<64x128xf32>
    %27 = tpu.matmul %25, %26, %cst_16 {dimension_numbers = #tpu.dot_dimension_numbers<[1], [0], [0], [1], [0, 0, 1, 1], [], []>} : vector<64x128xbf16>, vector<128x128xbf16>, vector<64x128xf32> -> vector<64x128xf32>
    %c0_17 = arith.constant 0 : index
    %c0_18 = arith.constant 0 : index
    %28 = vector.load %arg6[%c0_17, %c0_18] : memref<64x128xbf16, #tpu.memory_space<vmem>>, vector<64x128xbf16>
    %29 = arith.extf %28 : vector<64x128xbf16> to vector<64x128xf32>
    %30 = arith.addf %27, %29 : vector<64x128xf32>
    %31 = arith.truncf %30 : vector<64x128xf32> to vector<64x128xbf16>
    %c0_19 = arith.constant 0 : index
    %c0_20 = arith.constant 0 : index
    %32 = vector.load %arg7[%c0_19, %c0_20] : memref<64x128xbf16, #tpu.memory_space<vmem>>, vector<64x128xbf16>
    tpu.vector_store %arg7[%c0_19, %c0_20], %31 {strides = array<i32>} : memref<64x128xbf16, #tpu.memory_space<vmem>>, vector<64x128xbf16>,
    return
  }
  func.func @transform_0(%arg0: i32) -> (i32, i32, i32) {
    %c0_i32 = arith.constant 0 : i32
    %c0_i32_0 = arith.constant 0 : i32
    %c0_i32_1 = arith.constant 0 : i32
    return %arg0, %c0_i32, %c0_i32_0 : i32, i32, i32
  }
  func.func @transform_1(%arg0: i32) -> (i32, i32) {
    %c0_i32 = arith.constant 0 : i32
    %c0_i32_0 = arith.constant 0 : i32
    return %arg0, %c0_i32 : i32, i32
  }
  func.func @transform_2(%arg0: i32) -> (i32, i32) {
    %c0_i32 = arith.constant 0 : i32
    %c0_i32_0 = arith.constant 0 : i32
    return %arg0, %c0_i32 : i32, i32
  }
  func.func @transform_3(%arg0: i32) -> (i32, i32) {
    %c1_i32 = arith.constant 1 : i32
    %c0_i32 = arith.constant 0 : i32
    return %arg0, %c1_i32 : i32, i32
  }
  func.func @transform_4(%arg0: i32) -> (i32, i32) {
    %c0_i32 = arith.constant 0 : i32
    %c0_i32_0 = arith.constant 0 : i32
    %c0_i32_1 = arith.constant 0 : i32
    return %c0_i32, %c0_i32_0 : i32, i32
  }
  func.func @transform_5(%arg0: i32) -> (i32, i32) {
    %c0_i32 = arith.constant 0 : i32
    %c0_i32_0 = arith.constant 0 : i32
    return %arg0, %c0_i32 : i32, i32
  }
  func.func @transform_6(%arg0: i32) -> (i32, i32) {
    %c0_i32 = arith.constant 0 : i32
    %c0_i32_0 = arith.constant 0 : i32
    return %arg0, %c0_i32 : i32, i32
  }
}

module attributes {stable_mosaic.version = 11 : i64} {
  func.func @_matmul_kernel(%arg0: i32, %arg1: i32, %arg2: i32, %arg3: memref<64x128xbf16, #tpu.memory_space<vmem>>, %arg4: memref<128x256xbf16, #tpu.memory_space<vmem>>, %arg5: memref<64x256xbf16, #tpu.memory_space<vmem>>, %arg6: memref<64x256xf32, #tpu.memory_space<vmem>>) attributes {dimension_semantics = [#tpu.dimension_semantics<parallel>, #tpu.dimension_semantics<parallel>, #tpu.dimension_semantics<arbitrary>], iteration_bounds = array<i64: 2, 1, 1>, scalar_prefetch = 0 : i64, scratch_operands = 1 : i64, tpu.core_type = #tpu.core_type<tc>, window_params = [{transform_indices = @transform_0, window_bounds = array<i64: 64, 128>}, {transform_indices = @transform_1, window_bounds = array<i64: 128, 256>}, {transform_indices = @transform_2, window_bounds = array<i64: 64, 256>}]} {
    %c0_i32 = arith.constant 0 : i32
    %0 = arith.cmpi eq, %arg2, %c0_i32 : i32
    %1 = arith.extui %0 : i1 to i32
    %c0_i32_0 = arith.constant 0 : i32
    %2 = arith.cmpi ne, %1, %c0_i32_0 : i32
    scf.if %2 {
      %cst_10 = arith.constant 0.000000e+00 : f32
      %12 = vector.broadcast %cst_10 : f32 to vector<64x256xf32>
      %c0_11 = arith.constant 0 : index
      %c0_12 = arith.constant 0 : index
      %13 = vector.load %arg6[%c0_11, %c0_12] : memref<64x256xf32, #tpu.memory_space<vmem>>, vector<64x256xf32>
      tpu.vector_store %arg6[%c0_11, %c0_12], %12 {strides = array<i32>} : memref<64x256xf32, #tpu.memory_space<vmem>>, vector<64x256xf32>,
    } else {
    }
    %c0 = arith.constant 0 : index
    %c0_1 = arith.constant 0 : index
    %3 = vector.load %arg6[%c0, %c0_1] : memref<64x256xf32, #tpu.memory_space<vmem>>, vector<64x256xf32>
    %c0_2 = arith.constant 0 : index
    %c0_3 = arith.constant 0 : index
    %4 = vector.load %arg3[%c0_2, %c0_3] : memref<64x128xbf16, #tpu.memory_space<vmem>>, vector<64x128xbf16>
    %c0_4 = arith.constant 0 : index
    %c0_5 = arith.constant 0 : index
    %5 = vector.load %arg4[%c0_4, %c0_5] : memref<128x256xbf16, #tpu.memory_space<vmem>>, vector<128x256xbf16>
    %cst = arith.constant dense<0.000000e+00> : vector<64x256xf32>
    %6 = tpu.matmul %4, %5, %cst {dimension_numbers = #tpu.dot_dimension_numbers<[1], [0], [0], [1], [0, 0, 1, 1], [], []>} : vector<64x128xbf16>, vector<128x256xbf16>, vector<64x256xf32> -> vector<64x256xf32>
    %7 = arith.addf %3, %6 : vector<64x256xf32>
    %c0_6 = arith.constant 0 : index
    %c0_7 = arith.constant 0 : index
    %8 = vector.load %arg6[%c0_6, %c0_7] : memref<64x256xf32, #tpu.memory_space<vmem>>, vector<64x256xf32>
    tpu.vector_store %arg6[%c0_6, %c0_7], %7 {strides = array<i32>} : memref<64x256xf32, #tpu.memory_space<vmem>>, vector<64x256xf32>,
    %c0_i32_8 = arith.constant 0 : i32
    %9 = arith.cmpi eq, %arg2, %c0_i32_8 : i32
    %10 = arith.extui %9 : i1 to i32
    %c0_i32_9 = arith.constant 0 : i32
    %11 = arith.cmpi ne, %10, %c0_i32_9 : i32
    scf.if %11 {
      %c0_10 = arith.constant 0 : index
      %c0_11 = arith.constant 0 : index
      %12 = vector.load %arg6[%c0_10, %c0_11] : memref<64x256xf32, #tpu.memory_space<vmem>>, vector<64x256xf32>
      %13 = arith.truncf %12 : vector<64x256xf32> to vector<64x256xbf16>
      %c0_12 = arith.constant 0 : index
      %c0_13 = arith.constant 0 : index
      %14 = vector.load %arg5[%c0_12, %c0_13] : memref<64x256xbf16, #tpu.memory_space<vmem>>, vector<64x256xbf16>
      tpu.vector_store %arg5[%c0_12, %c0_13], %13 {strides = array<i32>} : memref<64x256xbf16, #tpu.memory_space<vmem>>, vector<64x256xbf16>,
    } else {
    }
    return
  }
  func.func @transform_0(%arg0: i32, %arg1: i32, %arg2: i32) -> (i32, i32) {
    %c0_i32 = arith.constant 0 : i32
    return %arg0, %arg2 : i32, i32
  }
  func.func @transform_1(%arg0: i32, %arg1: i32, %arg2: i32) -> (i32, i32) {
    %c0_i32 = arith.constant 0 : i32
    return %arg2, %arg1 : i32, i32
  }
  func.func @transform_2(%arg0: i32, %arg1: i32, %arg2: i32) -> (i32, i32) {
    %c0_i32 = arith.constant 0 : i32
    return %arg0, %arg1 : i32, i32
  }
}

</mosaic_0001>

<bundles_post_ra>
// kernel: transformer_vae_forward.33
= control target key start
LH: loop header
LB: loop body
LE: loop exit
PB: predicated region body
PF: predicated region fallthrough
CT: control target
= control target key end

     0   :  { %s1025_s15 = smov 0   ;;  %s1206_s0 = inlined_call_operand.vmem [shape: bf16[128,128], index: 0, kind: input, shape index: {}]   ;;  %s1207_s1 = inlined_call_operand.vmem [shape: f32[1,128], index: 1, kind: input, shape index: {}]   ;;  %s1208_s2 = inlined_call_operand.vmem [shape: bf16[128,256], index: 2, kind: input, shape index: {}]   ;;  %s1209_s3 = inlined_call_operand.vmem [shape: bf16[256,128], index: 3, kind: input, shape index: {}]   ;;  %s1210_s4 = inlined_call_operand.vmem [shape: bf16[128,128], index: 4, kind: output, shape index: {}]  }
   0x1 LB: > { %s784_s16 = sadd.s32 4294967295, %s997_s15   ;;  %p788_p0 = scmp.ge.s32.totalorder %s997_s15, 1  ;;  %s997_s15 = sphi %s1025_s15, %s14_s15  }
   0x2   : > { %p163_p1 = scmp.lt.s32.totalorder %s997_s15, 3 }
   0x4   : > { %p164_p2 = pnand %p788_p0, %p163_p1 }
   0x5   : > { %s789_s17 = sshll.u32 (!%p164_p2), %s784_s16, 3  ;;  %v935_v0 = vld [vmem:[%s1208_s2 + $0x4] ss:$8 sps:$4 sm:$0xff] (!%p164_p2)   ;;  %v937_v1 = vld [vmem:[%s1208_s2] ss:$8 sps:$4 sm:$0xff] (!%p164_p2)   ;;  %v999_v34 = vmov (!%p164_p2), 0  }
   0x6   : > { %167 = sbr.rel (%p164_p2) target bundleno = 654 (0x28e), region = 36  ;;  %p190_p3 = scmp.lt.s32.totalorder (!%p164_p2), %s789_s17, 15  ;;  %390 = vmatprep.subr.bf16.mxu0 (!%p164_p2), %v935_v0  ;;  %v938_v2 = vld [vmem:[%s1208_s2 + $0x14] ss:$8 sps:$4 sm:$0xff] (!%p164_p2)   ;;  %v940_v3 = vld [vmem:[%s1208_s2 + $0x10] ss:$8 sps:$4 sm:$0xff] (!%p164_p2)   ;;  %422 = vmatprep.mubr.bf16.mxu0 (!%p164_p2), %v999_v34 }
   0x7   : > { %391 = vmatpush1.bf16.msra.mxu0 (!%p164_p2), %v937_v1  ;;  %v941_v24 = vld [vmem:[%s1208_s2 + $0x24] ss:$8 sps:$4 sm:$0xff] (!%p164_p2)   ;;  %v943_v25 = vld [vmem:[%s1208_s2 + $0x20] ss:$8 sps:$4 sm:$0xff] (!%p164_p2)   ;;  %v944_v26 = vld [vmem:[%s1208_s2 + $0x34] ss:$8 sps:$4 sm:$0xff] (!%p164_p2)  }
   0x8   : > { %392 = vmatprep.subr.bf16.mxu0 (!%p164_p2), %v938_v2  ;;  %v946_v27 = vld [vmem:[%s1208_s2 + $0x30] ss:$8 sps:$4 sm:$0xff] (!%p164_p2)   ;;  %v947_v28 = vld [vmem:[%s1208_s2 + $0x44] ss:$8 sps:$4 sm:$0xff] (!%p164_p2)   ;;  %v949_v29 = vld [vmem:[%s1208_s2 + $0x40] ss:$8 sps:$4 sm:$0xff] (!%p164_p2)  }
   0x9   : > { %v950_v30 = vld [vmem:[%s1208_s2 + $0x54] ss:$8 sps:$4 sm:$0xff] (!%p164_p2)   ;;  %v952_v31 = vld [vmem:[%s1208_s2 + $0x50] ss:$8 sps:$4 sm:$0xff] (!%p164_p2)   ;;  %v953_v32 = vld [vmem:[%s1208_s2 + $0x64] ss:$8 sps:$4 sm:$0xff] (!%p164_p2)  }
   0xa   : > { %v955_v33 = vld [vmem:[%s1208_s2 + $0x60] ss:$8 sps:$4 sm:$0xff] (!%p164_p2)   ;;  %v956_v35 = vld [vmem:[%s1208_s2 + $0x74] ss:$8 sps:$4 sm:$0xff] (!%p164_p2)   ;;  %v958_v36 = vld [vmem:[%s1208_s2 + $0x70] ss:$8 sps:$4 sm:$0xff] (!%p164_p2)  }
   0xb   : > { %393 = vmatpush1.bf16.msra.mxu0 (!%p164_p2), %v940_v3  ;;  %v959_v37 = vld [vmem:[%s1209_s3 + $0x40] sm:$0xff] (!%p164_p2)   ;;  %v961_v39 = vld [vmem:[%s1209_s3 + $0x48] sm:$0xff] (!%p164_p2)   ;;  %v963_v41 = vld [vmem:[%s1209_s3 + $0x50] sm:$0xff] (!%p164_p2)  }
   0xc   : > { %394 = vmatprep.subr.bf16.mxu0 (!%p164_p2), %v941_v24  ;;  %v960_v38 = vld [vmem:[%s1209_s3] sm:$0xff] (!%p164_p2)   ;;  %886 = vmatprep.subr.bf16.mxu1 (!%p164_p2), %v959_v37  ;;  %v962_v40 = vld [vmem:[%s1209_s3 + $0x8] sm:$0xff] (!%p164_p2)   ;;  %v964_v42 = vld [vmem:[%s1209_s3 + $0x10] sm:$0xff] (!%p164_p2)  }
   0xd   : > { %s1212_s17 = smov (!%p190_p3, %s789_s17), 15  ;;  %887 = vmatpush3.bf16.msra.mxu1 %v960_v38  ;;  %v965_v43 = vld [vmem:[%s1209_s3 + $0x58] sm:$0xff]   ;;  %v967_v45 = vld [vmem:[%s1209_s3 + $0x60] sm:$0xff]   ;;  %v969_v47 = vld [vmem:[%s1209_s3 + $0x68] sm:$0xff]  }
   0xe   : > { %s790_s26 = sshll.u32 %s1212_s17, 2  ;;  %888 = vmatprep.subr.bf16.mxu1 %v961_v39  ;;  %v966_v44 = vld [vmem:[%s1209_s3 + $0x18] sm:$0xff]   ;;  %v968_v46 = vld [vmem:[%s1209_s3 + $0x20] sm:$0xff]   ;;  %v970_v48 = vld [vmem:[%s1209_s3 + $0x28] sm:$0xff]  }
   0xf   : > { %s193_s29 = scalar_lea.vmem %s1206_s0, %s790_s26  ;;  %395 = vmatpush1.bf16.msra.mxu0 %v943_v25  ;;  %s1191_s20 = scalar_lea.vmem %s1210_s4, %s790_s26 }
  0x10   : > { %v845_v4 = vld [vmem:[%s193_s29] sm:$0xff]   ;;  %v880_v5 = vld [vmem:[%s193_s29 + $0x8] sm:$0xff]   ;;  %v881_v10 = vld [vmem:[%s193_s29 + $0x10] sm:$0xff]   ;;  %396 = vmatprep.subr.bf16.mxu0 %v944_v26 }
  0x11   : > { %v1053_v6 = vunpack.c.l.bf16 %v845_v4  ;;  %v1055_v7 = vunpack.c.l.bf16 %v880_v5  ;;  %v1057_v8 = vunpack.c.h.bf16 %v845_v4  ;;  %v1059_v9 = vunpack.c.h.bf16 %v880_v5  ;;  %v882_v13 = vld [vmem:[%s193_s29 + $0x18] sm:$0xff]   ;;  %889 = vmatpush3.bf16.msra.mxu1 %v962_v40 }
  0x12   : > { %v1069_v16 = vunpack.c.h.bf16 %v881_v10  ;;  %v1071_v17 = vunpack.c.l.bf16 %v881_v10  ;;  %v1077_v20 = vunpack.c.h.bf16 %v882_v13  ;;  %v1079_v21 = vunpack.c.l.bf16 %v882_v13  ;;  %890 = vmatprep.subr.bf16.mxu1 %v963_v41 }
  0x13   : > { %v218_v11 = vmul.f32 %v1053_v6, %v1053_v6  ;;  %v220_v12 = vmul.f32 %v1055_v7, %v1055_v7  ;;  %v219_v14 = vmul.f32 %v1057_v8, %v1057_v8  ;;  %v221_v15 = vmul.f32 %v1059_v9, %v1059_v9  ;;  %397 = vmatpush1.bf16.msra.mxu0 %v946_v27 }
  0x14   : > { %v223_v18 = vmul.f32 %v1069_v16, %v1069_v16  ;;  %v222_v19 = vmul.f32 %v1071_v17, %v1071_v17  ;;  %v225_v22 = vmul.f32 %v1077_v20, %v1077_v20  ;;  %v224_v23 = vmul.f32 %v1079_v21, %v1079_v21  ;;  %398 = vmatprep.subr.bf16.mxu0 %v947_v28 }
  0x15   : > { %226 = vadd.xlane.f32.xlu0 %v218_v11  ;;  %230 = vadd.xlane.f32.xlu1 %v220_v12 }
  0x16   : > { %891 = vmatpush3.bf16.msra.mxu1 %v964_v42 }
  0x17   : > { %399 = vmatpush1.bf16.msra.mxu0 %v949_v29  ;;  %892 = vmatprep.subr.bf16.mxu1 %v965_v43 }
  0x18   : > { %400 = vmatprep.subr.bf16.mxu0 %v950_v30 }
  0x19   : > { %228 = vadd.xlane.f32.xlu0 %v219_v14  ;;  %232 = vadd.xlane.f32.xlu1 %v221_v15  ;;  %v793_v14 = vld [vmem:[%s1207_s1] ss:$0 sm:$0xff] }
  0x1a   : > { %893 = vmatpush3.bf16.msra.mxu1 %v966_v44 }
  0x1b   : > { %401 = vmatpush1.bf16.msra.mxu0 %v952_v31  ;;  %894 = vmatprep.subr.bf16.mxu1 %v967_v45 }
  0x1c   : > { %402 = vmatprep.subr.bf16.mxu0 %v953_v32 }
  0x1d   : > { %236 = vadd.xlane.f32.xlu1 %v223_v18  ;;  %234 = vadd.xlane.f32.xlu0 %v222_v19 }
  0x1e   : > { %895 = vmatpush3.bf16.msra.mxu1 %v968_v46 }
  0x1f   : > { %403 = vmatpush1.bf16.msra.mxu0 %v955_v33  ;;  %896 = vmatprep.subr.bf16.mxu1 %v969_v47  ;;  %v971_v47 = vld [vmem:[%s1209_s3 + $0x70] sm:$0xff]  }
  0x20   : > { %404 = vmatprep.subr.bf16.mxu0 %v956_v35 }
  0x21   : > { %240 = vadd.xlane.f32.xlu1 %v225_v22  ;;  %238 = vadd.xlane.f32.xlu0 %v224_v23 }
  0x22   : > { %897 = vmatpush3.bf16.msra.mxu1 %v970_v48  ;;  %v972_v48 = vld [vmem:[%s1209_s3 + $0x30] sm:$0xff]  }
  0x23   : > { %405 = vmatpush1.bf16.msra.mxu0 %v958_v36  ;;  %898 = vmatprep.subr.bf16.mxu1 %v971_v47 }
  0x26   : > { %899 = vmatpush3.bf16.msra.mxu1 %v972_v48 }
  0xa2   : > { %v227_v49 = vpop.xlane.xlu0 %226  ;;  %v231_v50 = vpop.xlane.xlu1 %230 }
  0xa3   : > { %v243_v51 = vmul.f32 0.0078125, %v227_v49  ;;  %v245_v52 = vmul.f32 0.0078125, %v231_v50  ;;  %v973_v49 = vld [vmem:[%s1209_s3 + $0x78] sm:$0xff]  }
  0xa4   : > { %900 = vmatprep.subr.bf16.mxu1 %v973_v49 }
  0xa5   : > { %v251_v53 = vadd.f32 1e-06, %v243_v51  ;;  %v253_v58 = vadd.f32 1e-06, %v245_v52 }
  0xa6   : > { %v229_v54 = vpop.xlane.xlu0 %228  ;;  %v233_v55 = vpop.xlane.xlu1 %232 }
  0xa7   : > { %975 = vrsqrt.f32 %v251_v53  ;;  %v244_v56 = vmul.f32 0.0078125, %v229_v54  ;;  %v246_v57 = vmul.f32 0.0078125, %v233_v55 }
  0xa9   : > { %v252_v59 = vadd.f32 1e-06, %v244_v56  ;;  %v254_v60 = vadd.f32 1e-06, %v246_v57 }
  0xaa   : > { %v237_v61 = vpop.xlane.xlu1 %236  ;;  %v235_v62 = vpop.xlane.xlu0 %234 }
  0xab   : > { %977 = vrsqrt.f32 %v252_v59  ;;  %v248_v63 = vmul.f32 0.0078125, %v237_v61  ;;  %v247_v0 = vmul.f32 0.0078125, %v235_v62 }
  0xac   : > { %979 = vrsqrt.f32 %v253_v58 }
  0xad   : > { %981 = vrsqrt.f32 %v254_v60  ;;  %v256_v1 = vadd.f32 1e-06, %v248_v63  ;;  %v255_v2 = vadd.f32 1e-06, %v247_v0 }
  0xae   : > { %v241_v3 = vpop.xlane.xlu1 %240  ;;  %v239_v4 = vpop.xlane.xlu0 %238 }
  0xaf   : > { %983 = vrsqrt.f32 %v256_v1  ;;  %v250_v10 = vmul.f32 0.0078125, %v241_v3  ;;  %v249_v11 = vmul.f32 0.0078125, %v239_v4 }
  0xb0   : > { %985 = vrsqrt.f32 %v255_v2 }
  0xb1   : > { %v976_v5 = vpop.eup %975  ;;  %v258_v19 = vadd.f32 1e-06, %v250_v10  ;;  %v257_v23 = vadd.f32 1e-06, %v249_v11 }
  0xb2   : > { %v267_v12 = vmul.f32 %v976_v5, %v1053_v6 }
  0xb3   : > { %987 = vrsqrt.f32 %v258_v19 }
  0xb4   : > { %v282_v24 = vmul.f32 %v793_v14, %v267_v12  ;;  %989 = vrsqrt.f32 %v257_v23 }
  0xb5   : > { %v978_v13 = vpop.eup %977 }
  0xb6   : > { %v980_v15 = vpop.eup %979  ;;  %v268_v18 = vmul.f32 %v978_v13, %v1057_v8 }
  0xb7   : > { %v982_v22 = vpop.eup %981  ;;  %v269_v27 = vmul.f32 %v980_v15, %v1055_v7 }
  0xb8   : > { %v283_v25 = vmul.f32 %v793_v14, %v268_v18  ;;  %v270_v28 = vmul.f32 %v982_v22, %v1059_v9 }
  0xb9   : > { %v984_v29 = vpop.eup %983  ;;  %v284_v31 = vmul.f32 %v793_v14, %v269_v27 }
  0xba   : > { %v290_v26 = vpack.c.bf16 %v283_v25, %v282_v24  ;;  %v986_v30 = vpop.eup %985  ;;  %v285_v32 = vmul.f32 %v793_v14, %v270_v28  ;;  %v272_v35 = vmul.f32 %v984_v29, %v1069_v16 }
  0xbb   : > { %v271_v33 = vmul.f32 %v986_v30, %v1071_v17 }
  0xbc   : > { %423 = vmatmul.mubr.bf16.vlgmr.msra.gmra.mrb[0].mxu0 %v290_v26  ;;  %v291_v36 = vpack.c.bf16 %v285_v32, %v284_v31  ;;  %v287_v39 = vmul.f32 %v793_v14, %v272_v35 }
  0xbd   : > { %432 = vmatprep.mubr.bf16.mxu0 %v999_v34  ;;  %v988_v37 = vpop.eup %987  ;;  %v286_v38 = vmul.f32 %v793_v14, %v271_v33 }
  0xbe   : > { %v990_v40 = vpop.eup %989  ;;  %v274_v43 = vmul.f32 %v988_v37, %v1077_v20 }
  0xbf   : > { %v292_v41 = vpack.c.bf16 %v287_v39, %v286_v38  ;;  %v273_v42 = vmul.f32 %v990_v40, %v1079_v21 }
  0xc0   : > { %v289_v45 = vmul.f32 %v793_v14, %v274_v43 }
  0xc1   : > { %v288_v44 = vmul.f32 %v793_v14, %v273_v42 }
  0xc3   : > { %v293_v46 = vpack.c.bf16 %v289_v45, %v288_v44 }
  0xc4   : > { %433 = vmatmul.mubr.bf16.gmra.mrb[4].mxu0 %v291_v36 }
  0xc5   : > { %442 = vmatprep.mubr.bf16.mxu0 %v999_v34 }
  0xcc   : > { %443 = vmatmul.mubr.bf16.gmra.mrb[8].mxu0 %v292_v41 }
  0xcd   : > { %452 = vmatprep.mubr.bf16.mxu0 %v999_v34  ;;  %v974_v34 = vld [vmem:[%s1209_s3 + $0x38] sm:$0xff]  }
  0xce   : > { %901 = vmatpush3.bf16.msra.mxu1 %v974_v34 }
  0xd4   : > { %453 = vmatmul.mubr.bf16.gmra.mrb[12].mxu0 %v293_v46 }
 0x18f   : > { %v424_v50 = vpop.f32.mrb[0].mxu0 }
 0x190   : > { %v426_v51 = vpop.f32.mrb[1].mxu0  ;;  %v463_v53 = vmax.f32 %v424_v50, 0.0 }
 0x191   : > { %v428_v52 = vpop.f32.mrb[2].mxu0  ;;  %v464_v56 = vmax.f32 %v426_v51, 0.0 }
 0x192   : > { %v465_v54 = vmax.f32 %v428_v52, 0.0  ;;  %v430_v55 = vpop.f32.mrb[3].mxu0 }
 0x193   : > { %v466_v57 = vmax.f32 %v430_v55, 0.0 }
 0x194   : > { %v479_v58 = vpack.c.bf16 %v465_v54, %v463_v53 }
 0x195   : > { %v480_v59 = vpack.c.bf16 %v466_v57, %v464_v56 }
 0x197   : > { %v434_v60 = vpop.f32.mrb[4].mxu0  ;;  %647 = vmatprep.mubr.bf16.mxu1 %v480_v59 }
 0x198   : > { %v436_v61 = vpop.f32.mrb[5].mxu0  ;;  %648 = vmatmul.mubr.bf16.vlgmr.msra.gmra.mrb[0].mxu1 %v479_v58  ;;  %v467_v63 = vmax.f32 %v434_v60, 0.0 }
 0x199   : > { %v438_v62 = vpop.f32.mrb[6].mxu0  ;;  %v468_v2 = vmax.f32 %v436_v61, 0.0 }
 0x19a   : > { %v469_v0 = vmax.f32 %v438_v62, 0.0  ;;  %v440_v1 = vpop.f32.mrb[7].mxu0 }
 0x19b   : > { %v470_v3 = vmax.f32 %v440_v1, 0.0 }
 0x19c   : > { %v481_v4 = vpack.c.bf16 %v469_v0, %v467_v63 }
 0x19d   : > { %v482_v5 = vpack.c.bf16 %v470_v3, %v468_v2 }
 0x19f   : > { %v444_v10 = vpop.f32.mrb[8].mxu0  ;;  %655 = vmatprep.mubr.bf16.mxu1 %v482_v5 }
 0x1a0   : > { %v446_v11 = vpop.f32.mrb[9].mxu0  ;;  %656 = vmatmul.mubr.bf16.gmra.mrb[4].mxu1 %v481_v4  ;;  %v471_v13 = vmax.f32 %v444_v10, 0.0 }
 0x1a1   : > { %v448_v12 = vpop.f32.mrb[10].mxu0  ;;  %v472_v18 = vmax.f32 %v446_v11, 0.0 }
 0x1a2   : > { %v473_v14 = vmax.f32 %v448_v12, 0.0  ;;  %v450_v15 = vpop.f32.mrb[11].mxu0 }
 0x1a3   : > { %v474_v19 = vmax.f32 %v450_v15, 0.0 }
 0x1a4   : > { %v483_v22 = vpack.c.bf16 %v473_v14, %v471_v13 }
 0x1a5   : > { %v484_v23 = vpack.c.bf16 %v474_v19, %v472_v18 }
 0x1a7   : > { %v454_v24 = vpop.f32.mrb[12].mxu0  ;;  %663 = vmatprep.mubr.bf16.mxu1 %v484_v23 }
 0x1a8   : > { %v456_v25 = vpop.f32.mrb[13].mxu0  ;;  %664 = vmatmul.mubr.bf16.gmra.mrb[8].mxu1 %v483_v22  ;;  %v475_v27 = vmax.f32 %v454_v24, 0.0 }
 0x1a9   : > { %v458_v26 = vpop.f32.mrb[14].mxu0  ;;  %v476_v30 = vmax.f32 %v456_v25, 0.0 }
 0x1aa   : > { %v477_v28 = vmax.f32 %v458_v26, 0.0  ;;  %v460_v29 = vpop.f32.mrb[15].mxu0 }
 0x1ab   : > { %v478_v31 = vmax.f32 %v460_v29, 0.0 }
 0x1ac   : > { %v485_v32 = vpack.c.bf16 %v477_v28, %v475_v27 }
 0x1ad   : > { %v486_v33 = vpack.c.bf16 %v478_v31, %v476_v30 }
 0x1af   : > { %671 = vmatprep.mubr.bf16.mxu1 %v486_v33 }
 0x1b0   : > { %672 = vmatmul.mubr.bf16.gmra.mrb[12].mxu1 %v485_v32 }
 0x26b   : > { %v902_v35 = vpop.f32.mrb[0].mxu1 }
 0x26c   : > { %v903_v36 = vpop.f32.mrb[1].mxu1 }
 0x26d   : > { %v904_v37 = vadd.f32 %v903_v36, %v902_v35  ;;  %v905_v38 = vpop.f32.mrb[2].mxu1 }
 0x26e   : > { %v906_v39 = vpop.f32.mrb[3].mxu1 }
 0x26f   : > { %v907_v40 = vadd.f32 %v906_v39, %v905_v38  ;;  %v680_v41 = vadd.f32 %v904_v37, %v1053_v6 }
 0x271   : > { %v681_v42 = vadd.f32 %v907_v40, %v1057_v8 }
 0x273   : > { %v863_v43 = vpack.c.bf16 %v681_v42, %v680_v41  ;;  %v908_v44 = vpop.f32.mrb[4].mxu1 }
 0x274   : > { %v909_v45 = vpop.f32.mrb[5].mxu1 }
 0x275   : > { %864 = vst [vmem:[%s1191_s20] sm:$0xff] %v863_v43   ;;  %v910_v46 = vadd.f32 %v909_v45, %v908_v44  ;;  %v911_v47 = vpop.f32.mrb[6].mxu1 }
 0x276   : > { %v912_v48 = vpop.f32.mrb[7].mxu1 }
 0x277   : > { %v913_v49 = vadd.f32 %v912_v48, %v911_v47  ;;  %v682_v6 = vadd.f32 %v910_v46, %v1055_v7 }
 0x279   : > { %v683_v8 = vadd.f32 %v913_v49, %v1059_v9 }
 0x27b   : > { %v868_v34 = vpack.c.bf16 %v683_v8, %v682_v6  ;;  %v914_v50 = vpop.f32.mrb[8].mxu1 }
 0x27c   : > { %v915_v51 = vpop.f32.mrb[9].mxu1 }
 0x27d   : > { %883 = vst [vmem:[%s1191_s20 + $0x8] sm:$0xff] %v868_v34   ;;  %v916_v52 = vadd.f32 %v915_v51, %v914_v50  ;;  %v917_v53 = vpop.f32.mrb[10].mxu1 }
 0x27e   : > { %v918_v54 = vpop.f32.mrb[11].mxu1 }
 0x27f   : > { %v919_v55 = vadd.f32 %v918_v54, %v917_v53  ;;  %v684_v56 = vadd.f32 %v916_v52, %v1071_v17 }
 0x281   : > { %v685_v57 = vadd.f32 %v919_v55, %v1069_v16 }
 0x283   : > { %v873_v58 = vpack.c.bf16 %v685_v57, %v684_v56  ;;  %v920_v59 = vpop.f32.mrb[12].mxu1 }
 0x284   : > { %v921_v60 = vpop.f32.mrb[13].mxu1 }
 0x285   : > { %884 = vst [vmem:[%s1191_s20 + $0x10] sm:$0xff] %v873_v58   ;;  %v922_v7 = vadd.f32 %v921_v60, %v920_v59  ;;  %v923_v61 = vpop.f32.mrb[14].mxu1 }
 0x286   : > { %v924_v9 = vpop.f32.mrb[15].mxu1 }
 0x287   : > { %v925_v62 = vadd.f32 %v924_v9, %v923_v61  ;;  %v686_v63 = vadd.f32 %v922_v7, %v1079_v21 }
 0x289   : > { %v687_v0 = vadd.f32 %v925_v62, %v1077_v20 }
 0x28b   : > { %v878_v1 = vpack.c.bf16 %v687_v0, %v686_v63 }
 0x28d   : > { %885 = vst [vmem:[%s1191_s20 + $0x18] sm:$0xff] %v878_v1  }
 0x28e PF: > { %s14_s15 = sadd.s32 1, %s997_s15  }
 0x28f   : > { %p11_p4 = scmp.ge.s32.totalorder %s14_s15, 4  }
 0x291   :  { %13 = sbr.rel (!%p11_p4) target bundleno = 1 (0x1), region = 66 }

// kernel: transformer_vae_forward.37
= control target key start
LH: loop header
LB: loop body
LE: loop exit
PB: predicated region body
PF: predicated region fallthrough
CT: control target
= control target key end

     0   :  { %s448_s9 = smov 0   ;;  %s505_s0 = inlined_call_operand.vmem [shape: bf16[128,128], index: 0, kind: input, shape index: {}]   ;;  %s506_s1 = inlined_call_operand.vmem [shape: f32[1,128], index: 1, kind: input, shape index: {}]   ;;  %s507_s2 = inlined_call_operand.vmem [shape: bf16[128,128], index: 2, kind: output, shape index: {}]  }
   0x1 LB: > { %s331_s10 = sadd.s32 4294967295, %s431_s9   ;;  %p335_p0 = scmp.ge.s32.totalorder %s431_s9, 1  ;;  %s431_s9 = sphi %s448_s9, %s12_s9  }
   0x2   : > { %p113_p1 = scmp.lt.s32.totalorder %s431_s9, 3 }
   0x4   : > { %p114_p2 = pnand %p335_p0, %p113_p1 }
   0x5   : > { %s336_s11 = sshll.u32 (!%p114_p2), %s331_s10, 3  ;;  %v340_v48 = vld [vmem:[%s506_s1] ss:$0 sm:$0xff] (!%p114_p2) }
   0x6   : > { %117 = sbr.rel (%p114_p2) target bundleno = 198 (0xc6), region = 28  ;;  %p136_p3 = scmp.lt.s32.totalorder (!%p114_p2), %s336_s11, 15 }
   0xd   : > { %s509_s11 = smov (!%p136_p3, %s336_s11), 15 }
   0xe   : > { %s337_s12 = sshll.u32 %s509_s11, 2 }
   0xf   : > { %s139_s15 = scalar_lea.vmem %s505_s0, %s337_s12  ;;  %s145_s20 = scalar_lea.vmem %s507_s2, %s337_s12 }
  0x10   : > { %v395_v0 = vld [vmem:[%s139_s15 + $0x8] sm:$0xff]   ;;  %v360_v1 = vld [vmem:[%s139_s15] sm:$0xff]   ;;  %v396_v6 = vld [vmem:[%s139_s15 + $0x10] sm:$0xff]  }
  0x11   : > { %v365_v2 = vunpack.c.l.bf16 %v395_v0  ;;  %v361_v3 = vunpack.c.l.bf16 %v360_v1  ;;  %v464_v4 = vunpack.c.h.bf16 %v395_v0  ;;  %v466_v5 = vunpack.c.h.bf16 %v360_v1  ;;  %v397_v13 = vld [vmem:[%s139_s15 + $0x18] sm:$0xff]  }
  0x12   : > { %v472_v11 = vunpack.c.h.bf16 %v396_v6  ;;  %v474_v12 = vunpack.c.l.bf16 %v396_v6  ;;  %v480_v16 = vunpack.c.h.bf16 %v397_v13  ;;  %v482_v17 = vunpack.c.l.bf16 %v397_v13 }
  0x13   : > { %v165_v7 = vmul.f32 %v365_v2, %v365_v2  ;;  %v163_v8 = vmul.f32 %v361_v3, %v361_v3  ;;  %v166_v9 = vmul.f32 %v464_v4, %v464_v4  ;;  %v164_v10 = vmul.f32 %v466_v5, %v466_v5 }
  0x14   : > { %v168_v14 = vmul.f32 %v472_v11, %v472_v11  ;;  %v167_v15 = vmul.f32 %v474_v12, %v474_v12  ;;  %v170_v18 = vmul.f32 %v480_v16, %v480_v16  ;;  %v169_v19 = vmul.f32 %v482_v17, %v482_v17 }
  0x15   : > { %175 = vadd.xlane.f32.xlu1 %v165_v7  ;;  %171 = vadd.xlane.f32.xlu0 %v163_v8 }
  0x19   : > { %177 = vadd.xlane.f32.xlu1 %v166_v9  ;;  %173 = vadd.xlane.f32.xlu0 %v164_v10 }
  0x1d   : > { %181 = vadd.xlane.f32.xlu1 %v168_v14  ;;  %179 = vadd.xlane.f32.xlu0 %v167_v15 }
  0x21   : > { %185 = vadd.xlane.f32.xlu1 %v170_v18  ;;  %183 = vadd.xlane.f32.xlu0 %v169_v19 }
  0xa2   : > { %v176_v20 = vpop.xlane.xlu1 %175  ;;  %v172_v21 = vpop.xlane.xlu0 %171 }
  0xa3   : > { %v190_v22 = vmul.f32 0.0078125, %v176_v20  ;;  %v188_v23 = vmul.f32 0.0078125, %v172_v21 }
  0xa5   : > { %v198_v24 = vadd.f32 1e-06, %v190_v22  ;;  %v196_v25 = vadd.f32 1e-06, %v188_v23 }
  0xa6   : > { %v178_v26 = vpop.xlane.xlu1 %177  ;;  %v174_v27 = vpop.xlane.xlu0 %173 }
  0xa7   : > { %409 = vrsqrt.f32 %v198_v24  ;;  %v191_v28 = vmul.f32 0.0078125, %v178_v26  ;;  %v189_v29 = vmul.f32 0.0078125, %v174_v27 }
  0xa8   : > { %411 = vrsqrt.f32 %v196_v25 }
  0xa9   : > { %v199_v30 = vadd.f32 1e-06, %v191_v28  ;;  %v197_v31 = vadd.f32 1e-06, %v189_v29 }
  0xaa   : > { %v182_v32 = vpop.xlane.xlu1 %181  ;;  %v180_v33 = vpop.xlane.xlu0 %179 }
  0xab   : > { %413 = vrsqrt.f32 %v199_v30  ;;  %v193_v34 = vmul.f32 0.0078125, %v182_v32  ;;  %v192_v35 = vmul.f32 0.0078125, %v180_v33 }
  0xac   : > { %415 = vrsqrt.f32 %v197_v31 }
  0xad   : > { %v201_v36 = vadd.f32 1e-06, %v193_v34  ;;  %v200_v37 = vadd.f32 1e-06, %v192_v35 }
  0xae   : > { %v186_v38 = vpop.xlane.xlu1 %185  ;;  %v184_v39 = vpop.xlane.xlu0 %183 }
  0xaf   : > { %417 = vrsqrt.f32 %v201_v36  ;;  %v195_v40 = vmul.f32 0.0078125, %v186_v38  ;;  %v194_v41 = vmul.f32 0.0078125, %v184_v39 }
  0xb0   : > { %419 = vrsqrt.f32 %v200_v37 }
  0xb1   : > { %v410_v42 = vpop.eup %409  ;;  %v203_v43 = vadd.f32 1e-06, %v195_v40  ;;  %v202_v44 = vadd.f32 1e-06, %v194_v41 }
  0xb2   : > { %v412_v45 = vpop.eup %411  ;;  %v214_v46 = vmul.f32 %v410_v42, %v365_v2 }
  0xb3   : > { %421 = vrsqrt.f32 %v203_v43  ;;  %v212_v49 = vmul.f32 %v412_v45, %v361_v3 }
  0xb4   : > { %423 = vrsqrt.f32 %v202_v44  ;;  %v229_v53 = vmul.f32 %v340_v48, %v214_v46 }
  0xb5   : > { %v414_v47 = vpop.eup %413  ;;  %v227_v56 = vmul.f32 %v340_v48, %v212_v49 }
  0xb6   : > { %v416_v50 = vpop.eup %415  ;;  %v215_v51 = vmul.f32 %v414_v47, %v464_v4 }
  0xb7   : > { %v213_v52 = vmul.f32 %v416_v50, %v466_v5 }
  0xb8   : > { %v230_v54 = vmul.f32 %v340_v48, %v215_v51 }
  0xb9   : > { %v418_v55 = vpop.eup %417  ;;  %v228_v57 = vmul.f32 %v340_v48, %v213_v52 }
  0xba   : > { %v420_v58 = vpop.eup %419  ;;  %v383_v59 = vpack.c.bf16 %v230_v54, %v229_v53  ;;  %v217_v60 = vmul.f32 %v418_v55, %v472_v11 }
  0xbb   : > { %v378_v61 = vpack.c.bf16 %v228_v57, %v227_v56  ;;  %v216_v62 = vmul.f32 %v420_v58, %v474_v12 }
  0xbc   : > { %398 = vst [vmem:[%s145_s20 + $0x8] sm:$0xff] %v383_v59   ;;  %v232_v63 = vmul.f32 %v340_v48, %v217_v60 }
  0xbd   : > { %v422_v0 = vpop.eup %421  ;;  %379 = vst [vmem:[%s145_s20] sm:$0xff] %v378_v61   ;;  %v231_v1 = vmul.f32 %v340_v48, %v216_v62 }
  0xbe   : > { %v424_v2 = vpop.eup %423  ;;  %v219_v3 = vmul.f32 %v422_v0, %v480_v16 }
  0xbf   : > { %v388_v4 = vpack.c.bf16 %v232_v63, %v231_v1  ;;  %v218_v5 = vmul.f32 %v424_v2, %v482_v17 }
  0xc0   : > { %v234_v6 = vmul.f32 %v340_v48, %v219_v3 }
  0xc1   : > { %399 = vst [vmem:[%s145_s20 + $0x10] sm:$0xff] %v388_v4   ;;  %v233_v7 = vmul.f32 %v340_v48, %v218_v5 }
  0xc3   : > { %v393_v8 = vpack.c.bf16 %v234_v6, %v233_v7 }
  0xc5   : > { %400 = vst [vmem:[%s145_s20 + $0x18] sm:$0xff] %v393_v8  }
  0xc6 PF: > { %s12_s9 = sadd.s32 1, %s431_s9  }
  0xc7   : > { %p9_p4 = scmp.ge.s32.totalorder %s12_s9, 4  }
  0xc9   :  { %11 = sbr.rel (!%p9_p4) target bundleno = 1 (0x1), region = 58 }

// kernel: transformer_vae_forward.31
= control target key start
LH: loop header
LB: loop body
LE: loop exit
PB: predicated region body
PF: predicated region fallthrough
CT: control target
= control target key end

     0   :  { %s1062_s12 = smov 0   ;;  %s1064_s13 = smov 0   ;;  %s1236_s0 = inlined_call_operand.vmem [shape: bf16[128,128], index: 0, kind: input, shape index: {}]   ;;  %s1237_s1 = inlined_call_operand.vmem [shape: f32[1,128], index: 1, kind: input, shape index: {}]   ;;  %s1238_s2 = inlined_call_operand.vmem [shape: bf16[128,384], index: 2, kind: input, shape index: {}]   ;;  %s1239_s3 = inlined_call_operand.vmem [shape: bf16[128,384], index: 3, kind: output, shape index: {}]  }
   0x1   :  { %s1066_s14 = smov 0  }
   0x2 LB: > { %s25_s15 = sadd.s32 1, %s1035_s13  ;;  %p824_p0 = scmp.ge.s32.totalorder %s1039_s14, 1  ;;  %s1039_s14 = sphi %s1066_s14, %s13_s14   ;;  %s1035_s13 = sphi %s1064_s13, %s1241_s13   ;;  %s1031_s12 = sphi %s1062_s12, %s1240_s12  }
   0x3   : > { %p27_p1 = scmp.ge.s32.totalorder %s25_s15, 2  ;;  %p163_p2 = scmp.lt.s32.totalorder %s1039_s14, 3 }
   0x5   : > { %s1243_s15 = smov (%p27_p1, %s25_s15), 0  ;;  %p164_p3 = pnand %p824_p0, %p163_p2 }
   0x6   : > { %s825_s16 = sshll.u32 (!%p164_p3), %s1031_s12, 3  ;;  %v969_v0 = vld [vmem:[%s1238_s2 + $0x4] ss:$12 sps:$4 sm:$0xff] (!%p164_p3)   ;;  %v971_v1 = vld [vmem:[%s1238_s2] ss:$12 sps:$4 sm:$0xff] (!%p164_p3)   ;;  %v1041_v43 = vmov (!%p164_p3), 0  }
   0x7   : > { %167 = sbr.rel (%p164_p3) target bundleno = 431 (0x1af), region = 32  ;;  %p198_p4 = scmp.lt.s32.totalorder (!%p164_p3), %s825_s16, 15  ;;  %486 = vmatprep.subr.bf16.mxu0 (!%p164_p3), %v969_v0  ;;  %v972_v2 = vld [vmem:[%s1238_s2 + $0x8] ss:$12 sps:$4 sm:$0xff] (!%p164_p3)   ;;  %v975_v4 = vld [vmem:[%s1238_s2 + $0x18] ss:$12 sps:$4 sm:$0xff] (!%p164_p3)   ;;  %518 = vmatprep.mubr.bf16.mxu0 (!%p164_p3), %v1041_v43 }
   0x8   : > { %487 = vmatpush1.bf16.msra.mxu0 (!%p164_p3), %v971_v1  ;;  %v973_v3 = vld [vmem:[%s1238_s2 + $0x1c] ss:$12 sps:$4 sm:$0xff] (!%p164_p3)   ;;  %919 = vmatprep.subr.bf16.mxu1 (!%p164_p3), %v972_v2  ;;  %v976_v5 = vld [vmem:[%s1238_s2 + $0x20] ss:$12 sps:$4 sm:$0xff] (!%p164_p3)   ;;  %v980_v28 = vld [vmem:[%s1238_s2 + $0x38] ss:$12 sps:$4 sm:$0xff] (!%p164_p3)  }
   0x9   : > { %920 = vmatpush3.bf16.msra.mxu1 (!%p164_p3), %v972_v2  ;;  %488 = vmatprep.subr.bf16.mxu0 (!%p164_p3), %v973_v3  ;;  %v977_v26 = vld [vmem:[%s1238_s2 + $0x34] ss:$12 sps:$4 sm:$0xff] (!%p164_p3)   ;;  %v979_v27 = vld [vmem:[%s1238_s2 + $0x30] ss:$12 sps:$4 sm:$0xff] (!%p164_p3)   ;;  %v981_v29 = vld [vmem:[%s1238_s2 + $0x4c] ss:$12 sps:$4 sm:$0xff] (!%p164_p3)  }
   0xa   : > { %921 = vmatprep.subr.bf16.mxu1 (!%p164_p3), %v976_v5  ;;  %v983_v30 = vld [vmem:[%s1238_s2 + $0x48] ss:$12 sps:$4 sm:$0xff] (!%p164_p3)   ;;  %v984_v31 = vld [vmem:[%s1238_s2 + $0x50] ss:$12 sps:$4 sm:$0xff] (!%p164_p3)   ;;  %v987_v33 = vld [vmem:[%s1238_s2 + $0x60] ss:$12 sps:$4 sm:$0xff] (!%p164_p3)  }
   0xb   : > { %v985_v32 = vld [vmem:[%s1238_s2 + $0x64] ss:$12 sps:$4 sm:$0xff] (!%p164_p3)   ;;  %v988_v34 = vld [vmem:[%s1238_s2 + $0x68] ss:$12 sps:$4 sm:$0xff] (!%p164_p3)   ;;  %v992_v36 = vld [vmem:[%s1238_s2 + $0x80] ss:$12 sps:$4 sm:$0xff] (!%p164_p3)  }
   0xc   : > { %489 = vmatpush1.bf16.msra.mxu0 (!%p164_p3), %v975_v4  ;;  %v989_v35 = vld [vmem:[%s1238_s2 + $0x7c] ss:$12 sps:$4 sm:$0xff] (!%p164_p3)   ;;  %v991_v37 = vld [vmem:[%s1238_s2 + $0x78] ss:$12 sps:$4 sm:$0xff] (!%p164_p3)   ;;  %v993_v38 = vld [vmem:[%s1238_s2 + $0x94] ss:$12 sps:$4 sm:$0xff] (!%p164_p3)  }
   0xd   : > { %922 = vmatpush3.bf16.msra.mxu1 (!%p164_p3), %v976_v5  ;;  %490 = vmatprep.subr.bf16.mxu0 (!%p164_p3), %v977_v26  ;;  %v996_v39 = vld [vmem:[%s1238_s2 + $0x98] ss:$12 sps:$4 sm:$0xff] (!%p164_p3)   ;;  %v995_v40 = vld [vmem:[%s1238_s2 + $0x90] ss:$12 sps:$4 sm:$0xff] (!%p164_p3)   ;;  %v999_v44 = vld [vmem:[%s1238_s2 + $0xa8] ss:$12 sps:$4 sm:$0xff] (!%p164_p3)  }
   0xe   : > { %s1245_s16 = smov (!%p198_p4, %s825_s16), 15  ;;  %923 = vmatprep.subr.bf16.mxu1 %v980_v28  ;;  %v997_v41 = vld [vmem:[%s1238_s2 + $0xac] ss:$12 sps:$4 sm:$0xff]   ;;  %v1000_v42 = vld [vmem:[%s1238_s2 + $0xb0] ss:$12 sps:$4 sm:$0xff]  }
   0xf   : > { %s826_s29 = sshll.u32 %s1245_s16, 2  ;;  %s943_s25 = smul.u32 12, %s1245_s16 }
  0x10   : > { %s201_s5 = scalar_lea.vmem %s1236_s0, %s826_s29  ;;  %491 = vmatpush1.bf16.msra.mxu0 %v979_v27 }
  0x11   : > { %v889_v6 = vld [vmem:[%s201_s5] sm:$0xff]   ;;  %v904_v7 = vld [vmem:[%s201_s5 + $0x8] sm:$0xff]   ;;  %v905_v12 = vld [vmem:[%s201_s5 + $0x10] sm:$0xff]   ;;  %924 = vmatpush3.bf16.msra.mxu1 %v980_v28  ;;  %492 = vmatprep.subr.bf16.mxu0 %v981_v29  ;;  %s1209_s28 = scalar_lea.vmem %s1239_s3, %s943_s25 }
  0x12   : > { %v1104_v8 = vunpack.c.l.bf16 %v889_v6  ;;  %v1106_v9 = vunpack.c.l.bf16 %v904_v7  ;;  %v1108_v10 = vunpack.c.h.bf16 %v889_v6  ;;  %v1110_v11 = vunpack.c.h.bf16 %v904_v7  ;;  %v906_v15 = vld [vmem:[%s201_s5 + $0x18] sm:$0xff]   ;;  %925 = vmatprep.subr.bf16.mxu1 %v984_v31 }
  0x13   : > { %v1120_v18 = vunpack.c.h.bf16 %v905_v12  ;;  %v1122_v19 = vunpack.c.l.bf16 %v905_v12  ;;  %v1128_v22 = vunpack.c.h.bf16 %v906_v15  ;;  %v1130_v23 = vunpack.c.l.bf16 %v906_v15 }
  0x14   : > { %v242_v13 = vmul.f32 %v1104_v8, %v1104_v8  ;;  %v244_v14 = vmul.f32 %v1106_v9, %v1106_v9  ;;  %v243_v16 = vmul.f32 %v1108_v10, %v1108_v10  ;;  %v245_v17 = vmul.f32 %v1110_v11, %v1110_v11  ;;  %493 = vmatpush1.bf16.msra.mxu0 %v983_v30 }
  0x15   : > { %v247_v20 = vmul.f32 %v1120_v18, %v1120_v18  ;;  %v246_v21 = vmul.f32 %v1122_v19, %v1122_v19  ;;  %v249_v24 = vmul.f32 %v1128_v22, %v1128_v22  ;;  %v248_v25 = vmul.f32 %v1130_v23, %v1130_v23  ;;  %926 = vmatpush3.bf16.msra.mxu1 %v984_v31 }
  0x16   : > { %250 = vadd.xlane.f32.xlu0 %v242_v13  ;;  %254 = vadd.xlane.f32.xlu1 %v244_v14  ;;  %v829_v14 = vld [vmem:[%s1237_s1] ss:$0 sm:$0xff] }
  0x17   : > { %494 = vmatprep.subr.bf16.mxu0 %v985_v32  ;;  %927 = vmatprep.subr.bf16.mxu1 %v988_v34 }
  0x18   : > { %495 = vmatpush1.bf16.msra.mxu0 %v987_v33 }
  0x19   : > { %928 = vmatpush3.bf16.msra.mxu1 %v988_v34  ;;  %496 = vmatprep.subr.bf16.mxu0 %v989_v35 }
  0x1a   : > { %252 = vadd.xlane.f32.xlu0 %v243_v16  ;;  %256 = vadd.xlane.f32.xlu1 %v245_v17 }
  0x1b   : > { %929 = vmatprep.subr.bf16.mxu1 %v992_v36 }
  0x1c   : > { %497 = vmatpush1.bf16.msra.mxu0 %v991_v37 }
  0x1d   : > { %930 = vmatpush3.bf16.msra.mxu1 %v992_v36  ;;  %498 = vmatprep.subr.bf16.mxu0 %v993_v38 }
  0x1e   : > { %260 = vadd.xlane.f32.xlu1 %v247_v20  ;;  %258 = vadd.xlane.f32.xlu0 %v246_v21 }
  0x1f   : > { %931 = vmatprep.subr.bf16.mxu1 %v996_v39 }
  0x20   : > { %499 = vmatpush1.bf16.msra.mxu0 %v995_v40 }
  0x21   : > { %932 = vmatpush3.bf16.msra.mxu1 %v996_v39  ;;  %500 = vmatprep.subr.bf16.mxu0 %v997_v41 }
  0x22   : > { %264 = vadd.xlane.f32.xlu1 %v249_v24  ;;  %262 = vadd.xlane.f32.xlu0 %v248_v25 }
  0x23   : > { %933 = vmatprep.subr.bf16.mxu1 %v1000_v42 }
  0x24   : > { %501 = vmatpush1.bf16.msra.mxu0 %v999_v44 }
  0x25   : > { %934 = vmatpush3.bf16.msra.mxu1 %v1000_v42 }
  0xa3   : > { %v251_v45 = vpop.xlane.xlu0 %250  ;;  %v255_v46 = vpop.xlane.xlu1 %254 }
  0xa4   : > { %v267_v47 = vmul.f32 0.0078125, %v251_v45  ;;  %v269_v48 = vmul.f32 0.0078125, %v255_v46 }
  0xa6   : > { %v275_v49 = vadd.f32 1e-06, %v267_v47  ;;  %v277_v50 = vadd.f32 1e-06, %v269_v48 }
  0xa7   : > { %v253_v51 = vpop.xlane.xlu0 %252  ;;  %v257_v52 = vpop.xlane.xlu1 %256 }
  0xa8   : > { %1001 = vrsqrt.f32 %v275_v49  ;;  %v268_v53 = vmul.f32 0.0078125, %v253_v51  ;;  %v270_v54 = vmul.f32 0.0078125, %v257_v52 }
  0xa9   : > { %1003 = vrsqrt.f32 %v277_v50 }
  0xaa   : > { %v276_v55 = vadd.f32 1e-06, %v268_v53  ;;  %v278_v56 = vadd.f32 1e-06, %v270_v54 }
  0xab   : > { %v261_v57 = vpop.xlane.xlu1 %260  ;;  %v259_v58 = vpop.xlane.xlu0 %258 }
  0xac   : > { %1005 = vrsqrt.f32 %v276_v55  ;;  %v272_v59 = vmul.f32 0.0078125, %v261_v57  ;;  %v271_v60 = vmul.f32 0.0078125, %v259_v58 }
  0xad   : > { %1007 = vrsqrt.f32 %v278_v56 }
  0xae   : > { %v280_v61 = vadd.f32 1e-06, %v272_v59  ;;  %v279_v62 = vadd.f32 1e-06, %v271_v60 }
  0xaf   : > { %v265_v63 = vpop.xlane.xlu1 %264  ;;  %v263_v0 = vpop.xlane.xlu0 %262 }
  0xb0   : > { %1009 = vrsqrt.f32 %v280_v61  ;;  %v274_v1 = vmul.f32 0.0078125, %v265_v63  ;;  %v273_v2 = vmul.f32 0.0078125, %v263_v0 }
  0xb1   : > { %1011 = vrsqrt.f32 %v279_v62 }
  0xb2   : > { %v1002_v3 = vpop.eup %1001  ;;  %v282_v4 = vadd.f32 1e-06, %v274_v1  ;;  %v281_v5 = vadd.f32 1e-06, %v273_v2 }
  0xb3   : > { %v1004_v6 = vpop.eup %1003  ;;  %v291_v12 = vmul.f32 %v1002_v3, %v1104_v8 }
  0xb4   : > { %1013 = vrsqrt.f32 %v282_v4  ;;  %v293_v7 = vmul.f32 %v1004_v6, %v1106_v9 }
  0xb5   : > { %1015 = vrsqrt.f32 %v281_v5  ;;  %v306_v21 = vmul.f32 %v829_v14, %v291_v12 }
  0xb6   : > { %v1006_v13 = vpop.eup %1005  ;;  %v308_v20 = vmul.f32 %v829_v14, %v293_v7 }
  0xb7   : > { %v1008_v15 = vpop.eup %1007  ;;  %v292_v16 = vmul.f32 %v1006_v13, %v1108_v10 }
  0xb8   : > { %v294_v17 = vmul.f32 %v1008_v15, %v1110_v11 }
  0xb9   : > { %v307_v24 = vmul.f32 %v829_v14, %v292_v16 }
  0xba   : > { %v1010_v25 = vpop.eup %1009  ;;  %v309_v26 = vmul.f32 %v829_v14, %v294_v17 }
  0xbb   : > { %v1012_v27 = vpop.eup %1011  ;;  %v314_v9 = vpack.c.bf16 %v307_v24, %v306_v21  ;;  %v296_v28 = vmul.f32 %v1010_v25, %v1120_v18 }
  0xbc   : > { %v315_v8 = vpack.c.bf16 %v309_v26, %v308_v20  ;;  %v295_v29 = vmul.f32 %v1012_v27, %v1122_v19 }
  0xbd   : > { %519 = vmatmul.mubr.bf16.vlgmr.msra.gmra.mrb[0].mxu0 %v314_v9  ;;  %935 = vmatprep.mubr.bf16.mxu1 %v314_v9  ;;  %v311_v30 = vmul.f32 %v829_v14, %v296_v28 }
  0xbe   : > { %v1014_v31 = vpop.eup %1013  ;;  %936 = vmatmul.mubr.bf16.vlgmr.msra.gmra.mrb[0].mxu1 %v315_v8  ;;  %528 = vmatprep.mubr.bf16.mxu0 %v1041_v43  ;;  %v310_v10 = vmul.f32 %v829_v14, %v295_v29 }
  0xbf   : > { %v1016_v11 = vpop.eup %1015  ;;  %v298_v32 = vmul.f32 %v1014_v31, %v1128_v22 }
  0xc0   : > { %v316_v33 = vpack.c.bf16 %v311_v30, %v310_v10  ;;  %v297_v34 = vmul.f32 %v1016_v11, %v1130_v23 }
  0xc1   : > { %v313_v35 = vmul.f32 %v829_v14, %v298_v32 }
  0xc2   : > { %939 = vmatprep.mubr.bf16.mxu1 %v316_v33  ;;  %v312_v18 = vmul.f32 %v829_v14, %v297_v34 }
  0xc4   : > { %v317_v36 = vpack.c.bf16 %v313_v35, %v312_v18 }
  0xc5   : > { %529 = vmatmul.mubr.bf16.gmra.mrb[4].mxu0 %v315_v8 }
  0xc6   : > { %538 = vmatprep.mubr.bf16.mxu0 %v1041_v43  ;;  %940 = vmatmul.mubr.bf16.gmra.mrb[4].mxu1 %v317_v36 }
  0xcd   : > { %539 = vmatmul.mubr.bf16.gmra.mrb[8].mxu0 %v316_v33 }
  0xce   : > { %548 = vmatprep.mubr.bf16.mxu0 %v1041_v43 }
  0xd5   : > { %549 = vmatmul.mubr.bf16.gmra.mrb[12].mxu0 %v317_v36 }
 0x190   : > { %v520_v19 = vpop.f32.mrb[0].mxu0 }
 0x191   : > { %v522_v22 = vpop.f32.mrb[1].mxu0  ;;  %v937_v23 = vpop.f32.mrb[0].mxu1 }
 0x192   : > { %v872_v37 = vpack.c.bf16 %v522_v22, %v520_v19  ;;  %v877_v38 = vpack.c.bf16 %v937_v23, %v937_v23  ;;  %v524_v39 = vpop.f32.mrb[2].mxu0  ;;  %v593_v40 = vpop.f32.mrb[1].mxu1 }
 0x193   : > { %v873_v41 = vpack.c.bf16 %v593_v40, %v593_v40  ;;  %v526_v42 = vpop.f32.mrb[3].mxu0  ;;  %v938_v43 = vpop.f32.mrb[2].mxu1 }
 0x194   : > { %704 = vst [vmem:[%s1209_s28] sm:$0xff] %v872_v37  ;;  %709 = vst [vmem:[%s1209_s28 + $0x20] sm:$0xf] %v877_v38  ;;  %v874_v44 = vpack.c.bf16 %v526_v42, %v524_v39  ;;  %v879_v45 = vpack.c.bf16 %v938_v43, %v938_v43  ;;  %v596_v46 = vpop.f32.mrb[3].mxu1 }
 0x195   : > { %705 = vst [vmem:[%s1209_s28 + $0x8] sm:$0xf] %v873_v41  ;;  %v875_v47 = vpack.c.bf16 %v596_v46, %v596_v46 }
 0x196   : > { %706 = vst [vmem:[%s1209_s28 + $0xc] sm:$0xff] %v874_v44  ;;  %711 = vst [vmem:[%s1209_s28 + $0x2c] sm:$0xf] %v879_v45 }
 0x197   : > { %707 = vst [vmem:[%s1209_s28 + $0x14] sm:$0xf] %v875_v47 }
 0x198   : > { %v530_v48 = vpop.f32.mrb[4].mxu0 }
 0x199   : > { %v532_v49 = vpop.f32.mrb[5].mxu0  ;;  %v941_v50 = vpop.f32.mrb[4].mxu1 }
 0x19a   : > { %v876_v51 = vpack.c.bf16 %v532_v49, %v530_v48  ;;  %v534_v52 = vpop.f32.mrb[6].mxu0  ;;  %v885_v53 = vpack.c.bf16 %v941_v50, %v941_v50  ;;  %v609_v54 = vpop.f32.mrb[5].mxu1 }
 0x19b   : > { %v536_v55 = vpop.f32.mrb[7].mxu0  ;;  %v881_v56 = vpack.c.bf16 %v609_v54, %v609_v54  ;;  %v942_v57 = vpop.f32.mrb[6].mxu1 }
 0x19c   : > { %708 = vst [vmem:[%s1209_s28 + $0x18] sm:$0xff] %v876_v51  ;;  %v878_v58 = vpack.c.bf16 %v536_v55, %v534_v52  ;;  %717 = vst [vmem:[%s1209_s28 + $0x50] sm:$0xf] %v885_v53  ;;  %v887_v59 = vpack.c.bf16 %v942_v57, %v942_v57  ;;  %v612_v60 = vpop.f32.mrb[7].mxu1 }
 0x19d   : > { %713 = vst [vmem:[%s1209_s28 + $0x38] sm:$0xf] %v881_v56  ;;  %v883_v61 = vpack.c.bf16 %v612_v60, %v612_v60 }
 0x19e   : > { %710 = vst [vmem:[%s1209_s28 + $0x24] sm:$0xff] %v878_v58  ;;  %719 = vst [vmem:[%s1209_s28 + $0x5c] sm:$0xf] %v887_v59 }
 0x19f   : > { %715 = vst [vmem:[%s1209_s28 + $0x44] sm:$0xf] %v883_v61 }
 0x1a0   : > { %v540_v62 = vpop.f32.mrb[8].mxu0 }
 0x1a1   : > { %v542_v63 = vpop.f32.mrb[9].mxu0 }
 0x1a2   : > { %v880_v0 = vpack.c.bf16 %v542_v63, %v540_v62  ;;  %v544_v1 = vpop.f32.mrb[10].mxu0 }
 0x1a3   : > { %v546_v2 = vpop.f32.mrb[11].mxu0 }
 0x1a4   : > { %712 = vst [vmem:[%s1209_s28 + $0x30] sm:$0xff] %v880_v0  ;;  %v882_v3 = vpack.c.bf16 %v546_v2, %v544_v1 }
 0x1a6   : > { %714 = vst [vmem:[%s1209_s28 + $0x3c] sm:$0xff] %v882_v3 }
 0x1a8   : > { %v550_v4 = vpop.f32.mrb[12].mxu0 }
 0x1a9   : > { %v552_v5 = vpop.f32.mrb[13].mxu0 }
 0x1aa   : > { %v884_v6 = vpack.c.bf16 %v552_v5, %v550_v4  ;;  %v554_v7 = vpop.f32.mrb[14].mxu0 }
 0x1ab   : > { %v556_v12 = vpop.f32.mrb[15].mxu0 }
 0x1ac   : > { %716 = vst [vmem:[%s1209_s28 + $0x48] sm:$0xff] %v884_v6  ;;  %v886_v13 = vpack.c.bf16 %v556_v12, %v554_v7 }
 0x1ae   : > { %718 = vst [vmem:[%s1209_s28 + $0x54] sm:$0xff] %v886_v13 }
 0x1af PF: > { %s13_s14 = sadd.s32 1, %s1039_s14   ;;  %s1240_s12 = smov %s1035_s13 }
 0x1b0   : > { %p10_p5 = scmp.ge.s32.totalorder %s13_s14, 4   ;;  %s1241_s13 = smov %s1243_s15 }
 0x1b2   :  { %12 = sbr.rel (!%p10_p5) target bundleno = 2 (0x2), region = 69 }

// kernel: transformer_vae_forward.32
= control target key start
LH: loop header
LB: loop body
LE: loop exit
PB: predicated region body
PF: predicated region fallthrough
CT: control target
= control target key end

     0   :  { %s1556_s21 = smov 0   ;;  %s1558_s22 = smov 0   ;;  %s1686_s0 = inlined_call_operand.vmem [shape: f32[2,1,64], index: 0, kind: input, shape index: {}]   ;;  %s1687_s1 = inlined_call_operand.vmem [shape: bf16[128,384], index: 1, kind: input, shape index: {}, may-alias: {1,2,3}]   ;;  %s1688_s2 = inlined_call_operand.vmem [shape: bf16[128,384], index: 2, kind: input, shape index: {}, may-alias: {1,2,3}]   ;;  %s1689_s3 = inlined_call_operand.vmem [shape: bf16[128,384], index: 3, kind: input, shape index: {}, may-alias: {1,2,3}]   ;;  %s1690_s4 = inlined_call_operand.vmem [shape: bf16[128,128], index: 4, kind: input, shape index: {}]   ;;  %s1691_s5 = inlined_call_operand.vmem [shape: bf16[128,128], index: 5, kind: input, shape index: {}]   ;;  %s1692_s6 = inlined_call_operand.vmem [shape: bf16[128,128], index: 6, kind: output, shape index: {}]  }
   0x1   :  { %s1560_s23 = smov 0  }
   0x2 LB: > { %s1572_s24 = sadd.s32 4294967295, %s1519_s23   ;;  %s1575_s25 = sadd.s32 1, %s1519_s23   ;;  %s1519_s23 = sphi %s1560_s23, %s1696_s23   ;;  %s1515_s22 = sphi %s1558_s22, %s1695_s22   ;;  %s1511_s21 = sphi %s1556_s21, %s1694_s21  }
   0x3   : > { %s46_s26 = ssub.s32 %s1519_s23, %s1575_s25  ;;  %s49_s27 = sadd.s32 1, %s1515_s22 }
   0x4   : > { %p47_p0 = scmp.eq.s32.totalorder %s46_s26, 0  ;;  %p56_p1 = scmp.ne.s32.totalorder %s1515_s22, %s1511_s21 }
   0x5   : > { %p57_p2 = scmp.eq.s32.totalorder %s1519_s23, 0  ;;  %p1219_p4 = scmp.ge.s32.totalorder %s1519_s23, 2 }
   0x6   : > { %s1584_s28 = scalar_select %p47_p0, %s1515_s22, %s49_s27  }
   0x7   : > { %p1586_p3 = por %p57_p2, %p56_p1  ;;  %210 = sbr.rel (%p1219_p4) target bundleno = 44 (0x2c), region = 20 }
   0xe   : > { %219 = sbr.rel (!%p1586_p3) target bundleno = 24 (0x18), region = 28  ;;  %s221_s30 = sand.u32 (%p1586_p3), 1, %s1515_s22  }
   0xf   : > { %s1420_s7 = smul.u32 (%p1586_p3), 96, %s1519_s23  ;;  %s1220_s8 = sshll.u32 (%p1586_p3), %s221_s30, 5 }
  0x10   : > { %s223_s12 = scalar_lea.vmem (%p1586_p3), [#allocation2], %s1220_s8 }
  0x11   : > { %s227_s11 = scalar_lea.vmem (%p1586_p3), %s1687_s1, %s1420_s7 }
  0x12   : > { %v243_v0 = vld [vmem:[%s227_s11] sm:$0xf] (%p1586_p3)  ;;  %v245_v1 = vld [vmem:[%s227_s11 + $0xc] sm:$0xf] (%p1586_p3)  ;;  %v247_v2 = vld [vmem:[%s227_s11 + $0x18] sm:$0xf] (%p1586_p3) }
  0x13   : > { %244 = vst [vmem:[%s223_s12] sm:$0xf] (%p1586_p3), %v243_v0  ;;  %246 = vst [vmem:[%s223_s12 + $0x4] sm:$0xf] (%p1586_p3), %v245_v1  ;;  %v249_v3 = vld [vmem:[%s227_s11 + $0x24] sm:$0xf] (%p1586_p3) }
  0x14   : > { %248 = vst [vmem:[%s223_s12 + $0x8] sm:$0xf] (%p1586_p3), %v247_v2  ;;  %v251_v4 = vld [vmem:[%s227_s11 + $0x30] sm:$0xf] (%p1586_p3)  ;;  %v253_v5 = vld [vmem:[%s227_s11 + $0x3c] sm:$0xf] (%p1586_p3) }
  0x15   : > { %250 = vst [vmem:[%s223_s12 + $0xc] sm:$0xf] %v249_v3  ;;  %252 = vst [vmem:[%s223_s12 + $0x10] sm:$0xf] %v251_v4  ;;  %v255_v6 = vld [vmem:[%s227_s11 + $0x48] sm:$0xf] }
  0x16   : > { %254 = vst [vmem:[%s223_s12 + $0x14] sm:$0xf] %v253_v5  ;;  %v257_v7 = vld [vmem:[%s227_s11 + $0x54] sm:$0xf]  ;;  %256 = vst [vmem:[%s223_s12 + $0x18] sm:$0xf] %v255_v6 }
  0x17   : > { %258 = vst [vmem:[%s223_s12 + $0x1c] sm:$0xf] %v257_v7 }
  0x18 PF: > { %297 = sbr.rel (!%p1586_p3) target bundleno = 34 (0x22), region = 69  ;;  %s299_s13 = sand.u32 (%p1586_p3), 1, %s1515_s22  }
  0x19   : > { %s1225_s14 = smul.u32 (%p1586_p3), 96, %s1519_s23  ;;  %s1224_s15 = sshll.u32 (%p1586_p3), %s299_s13, 5 }
  0x1a   : > { %s301_s19 = scalar_lea.vmem (%p1586_p3), [#allocation3], %s1224_s15 }
  0x1b   : > { %s1124_s18 = scalar_lea.vmem (%p1586_p3), %s1688_s2, %s1225_s14 }
  0x1c   : > { %v1226_v8 = vld [vmem:[%s1124_s18 + $0x4] sm:$0xf] (%p1586_p3)  ;;  %v1227_v9 = vld [vmem:[%s1124_s18 + $0x10] sm:$0xf] (%p1586_p3)  ;;  %v1228_v10 = vld [vmem:[%s1124_s18 + $0x1c] sm:$0xf] (%p1586_p3) }
  0x1d   : > { %323 = vst [vmem:[%s301_s19] sm:$0xf] (%p1586_p3), %v1226_v8  ;;  %325 = vst [vmem:[%s301_s19 + $0x4] sm:$0xf] (%p1586_p3), %v1227_v9  ;;  %v1229_v11 = vld [vmem:[%s1124_s18 + $0x28] sm:$0xf] (%p1586_p3) }
  0x1e   : > { %327 = vst [vmem:[%s301_s19 + $0x8] sm:$0xf] (%p1586_p3), %v1228_v10  ;;  %v1230_v12 = vld [vmem:[%s1124_s18 + $0x34] sm:$0xf] (%p1586_p3)  ;;  %v1231_v13 = vld [vmem:[%s1124_s18 + $0x40] sm:$0xf] (%p1586_p3) }
  0x1f   : > { %329 = vst [vmem:[%s301_s19 + $0xc] sm:$0xf] %v1229_v11  ;;  %331 = vst [vmem:[%s301_s19 + $0x10] sm:$0xf] %v1230_v12  ;;  %v1232_v14 = vld [vmem:[%s1124_s18 + $0x4c] sm:$0xf] }
  0x20   : > { %333 = vst [vmem:[%s301_s19 + $0x14] sm:$0xf] %v1231_v13  ;;  %v1233_v15 = vld [vmem:[%s1124_s18 + $0x58] sm:$0xf]  ;;  %335 = vst [vmem:[%s301_s19 + $0x18] sm:$0xf] %v1232_v14 }
  0x21   : > { %337 = vst [vmem:[%s301_s19 + $0x1c] sm:$0xf] %v1233_v15 }
  0x22 PF: > { %376 = sbr.rel (!%p1586_p3) target bundleno = 44 (0x2c), region = 110  ;;  %s378_s20 = sand.u32 (%p1586_p3), 1, %s1515_s22  }
  0x23   : > { %s1235_s26 = smul.u32 (%p1586_p3), 96, %s1519_s23  ;;  %s1234_s27 = sshll.u32 (%p1586_p3), %s378_s20, 5 }
  0x24   : > { %s380_s9 = scalar_lea.vmem (%p1586_p3), [#allocation4], %s1234_s27 }
  0x25   : > { %s1130_s8 = scalar_lea.vmem (%p1586_p3), %s1689_s3, %s1235_s26 }
  0x26   : > { %v1236_v16 = vld [vmem:[%s1130_s8 + $0x8] sm:$0xf] (%p1586_p3)  ;;  %v1237_v17 = vld [vmem:[%s1130_s8 + $0x14] sm:$0xf] (%p1586_p3)  ;;  %v1238_v18 = vld [vmem:[%s1130_s8 + $0x20] sm:$0xf] (%p1586_p3) }
  0x27   : > { %402 = vst [vmem:[%s380_s9] sm:$0xf] (%p1586_p3), %v1236_v16  ;;  %404 = vst [vmem:[%s380_s9 + $0x4] sm:$0xf] (%p1586_p3), %v1237_v17  ;;  %v1239_v19 = vld [vmem:[%s1130_s8 + $0x2c] sm:$0xf] (%p1586_p3) }
  0x28   : > { %406 = vst [vmem:[%s380_s9 + $0x8] sm:$0xf] (%p1586_p3), %v1238_v18  ;;  %v1240_v20 = vld [vmem:[%s1130_s8 + $0x38] sm:$0xf] (%p1586_p3)  ;;  %v1241_v21 = vld [vmem:[%s1130_s8 + $0x44] sm:$0xf] (%p1586_p3) }
  0x29   : > { %408 = vst [vmem:[%s380_s9 + $0xc] sm:$0xf] %v1239_v19  ;;  %410 = vst [vmem:[%s380_s9 + $0x10] sm:$0xf] %v1240_v20  ;;  %v1242_v22 = vld [vmem:[%s1130_s8 + $0x50] sm:$0xf] }
  0x2a   : > { %412 = vst [vmem:[%s380_s9 + $0x14] sm:$0xf] %v1241_v21  ;;  %v1243_v23 = vld [vmem:[%s1130_s8 + $0x5c] sm:$0xf]  ;;  %414 = vst [vmem:[%s380_s9 + $0x18] sm:$0xf] %v1242_v22 }
  0x2b   : > { %416 = vst [vmem:[%s380_s9 + $0x1c] sm:$0xf] %v1243_v23 }
  0x2c PF: > { %p1244_p5 = scmp.ge.s32.totalorder %s1519_s23, 1  ;;  %p463_p6 = scmp.lt.s32.totalorder %s1519_s23, 3 }
  0x2e   : > { %p464_p7 = pnand %p1244_p5, %p463_p6 }
  0x2f   : > { %s470_s29 = sand.u32 (!%p464_p7), 1, %s1511_s21   ;;  %p529_p8 = scmp.lt.s32.totalorder (!%p464_p7), %s1572_s24, 1  ;;  %v697_v32 = vlaneseq (!%p464_p7)  ;;  %vm710_vm0 = vcmask (!%p464_p7), 523264  }
  0x30   : > { %467 = sbr.rel (%p464_p7) target bundleno = 914 (0x392), region = 155  ;;  %s1615_s10 = sshll.u32 (!%p464_p7), %s470_s29, 5 }
  0x31   : > { %s479_s11 = scalar_lea.vmem (!%p464_p7), [#allocation3], %s1615_s10  ;;  %s472_s12 = scalar_lea.vmem (!%p464_p7), [#allocation2], %s1615_s10  ;;  %v698_v35 = vshrl.u32 (!%p464_p7), %v697_v32, 7 }
  0x32   : > { %v1445_v24 = vld [vmem:[%s479_s11] sm:$0xff] (!%p464_p7)   ;;  %v1446_v25 = vld [vmem:[%s479_s11 + $0x8] sm:$0xff] (!%p464_p7)   ;;  %v1447_v27 = vld [vmem:[%s479_s11 + $0x10] sm:$0xff] (!%p464_p7)   ;;  %s486_s15 = scalar_lea.vmem (!%p464_p7), [#allocation4], %s1615_s10  ;;  %s1248_s23 = sshll.u32 (!%p464_p7), %s1572_s24, 3 }
  0x33   : > { %1364 = vmatprep.subr.bf16.mxu0 (!%p464_p7), %v1445_v24  ;;  %v1449_v26 = vld [vmem:[%s472_s12] sm:$0xff] (!%p464_p7)   ;;  %v1448_v28 = vld [vmem:[%s479_s11 + $0x18] sm:$0xff] (!%p464_p7)   ;;  %v1450_v29 = vld [vmem:[%s472_s12 + $0x8] sm:$0xff] (!%p464_p7)   ;;  %v699_v37 = vsub.s32 (!%p464_p7), 0, %v698_v35  ;;  %p536_p9 = scmp.lt.s32.totalorder (!%p464_p7), %s1248_s23, 15 }
  0x34   : > { %1365 = vmatpush3.bf16.xpose.msra.mxu0 (!%p464_p7), %v1445_v24  ;;  %1372 = vmatprep.mubr.bf16.mxu0 (!%p464_p7), %v1449_v26  ;;  %v1451_v30 = vld [vmem:[%s472_s12 + $0x10] sm:$0xff] (!%p464_p7)   ;;  %v1452_v31 = vld [vmem:[%s472_s12 + $0x18] sm:$0xff] (!%p464_p7)   ;;  %v1453_v7 = vld [vmem:[%s486_s15] sm:$0xff] (!%p464_p7)  }
  0x35   : > { %1366 = vmatprep.subr.bf16.mxu0 (!%p464_p7), %v1446_v25  ;;  %1380 = vmatprep.subr.bf16.mxu1 (!%p464_p7), %v1453_v7  ;;  %v1454_v8 = vld [vmem:[%s486_s15 + $0x8] sm:$0xff] (!%p464_p7)   ;;  %v1455_v9 = vld [vmem:[%s486_s15 + $0x10] sm:$0xff] (!%p464_p7)   ;;  %v1456_v10 = vld [vmem:[%s486_s15 + $0x18] sm:$0xff] (!%p464_p7)  }
  0x36   : > { %1381 = vmatpush3.bf16.msra.mxu1 (!%p464_p7), %v1453_v7 }
  0x37   : > { %s530_s21 = scalar_select %p529_p8, %s1572_s24, 1  ;;  %1382 = vmatprep.subr.bf16.mxu1 %v1454_v8 }
  0x38   : > { %s1698_s23 = smov (!%p536_p9, %s1248_s23), 15 }
  0x39   : > { %s531_s14 = scalar_lea.vmem %s1686_s0, %s530_s21  ;;  %s1249_s13 = sshll.u32 %s1698_s23, 2 }
  0x3a   : > { %v693_v33 = vld [vmem:[%s531_s14] sm:$0x1]  ;;  %1383 = vmatpush3.bf16.msra.mxu1 %v1454_v8  ;;  %s539_s16 = scalar_lea.vmem %s1691_s5, %s1249_s13  ;;  %s545_s18 = scalar_lea.vmem %s1692_s6, %s1249_s13 }
  0x3b   : > { %v694_v34 = vsub.f32 1.0, %v693_v33  ;;  %1384 = vmatprep.subr.bf16.mxu1 %v1455_v9 }
  0x3c   : > { %1367 = vmatpush3.bf16.xpose.msra.mxu0 %v1446_v25 }
  0x3d   : > { %1368 = vmatprep.subr.bf16.mxu0 %v1447_v27  ;;  %v695_v36 = vmul.f32 -1e+09, %v694_v34 }
  0x3e   : > { %1385 = vmatpush3.bf16.msra.mxu1 %v1455_v9 }
  0x3f   : > { %v700_v38 = vrot.slane %v695_v36, %v699_v37  ;;  %1386 = vmatprep.subr.bf16.mxu1 %v1456_v10 }
  0x42   : > { %1387 = vmatpush3.bf16.msra.mxu1 %v1456_v10 }
  0x44   : > { %1369 = vmatpush3.bf16.xpose.msra.mxu0 %v1447_v27 }
  0x45   : > { %1370 = vmatprep.subr.bf16.mxu0 %v1448_v28 }
  0x4c   : > { %1371 = vmatpush3.bf16.xpose.msra.mxu0 %v1448_v28 }
  0x53   : > { %1373 = vmatmul.mubr.bf16.vlgmr.msra.gmra.mrb[0].mxu0 %v1450_v29 }
  0x54   : > { %1376 = vmatprep.mubr.bf16.mxu0 %v1451_v30 }
  0x5b   : > { %1377 = vmatmul.mubr.bf16.gmra.mrb[4].mxu0 %v1452_v31 }
 0x126   : > { %v1374_v39 = vpop.f32.mrb[0].mxu0 }
 0x127   : > { %v687_v40 = vmul.f32 0.088388346, %v1374_v39  ;;  %v654_v41 = vpop.f32.mrb[1].mxu0 }
 0x128   : > { %v685_v42 = vmul.f32 0.088388346, %v654_v41  ;;  %v1375_v43 = vpop.f32.mrb[2].mxu0 }
 0x129   : > { %v688_v44 = vmul.f32 0.088388346, %v1375_v43  ;;  %v657_v45 = vpop.f32.mrb[3].mxu0  ;;  %v704_v46 = vadd.f32 %v700_v38, %v687_v40 }
 0x12a   : > { %v686_v47 = vmul.f32 0.088388346, %v657_v45  ;;  %v702_v48 = vadd.f32 %v700_v38, %v685_v42 }
 0x12b   : > { %v717_v49 = vsel %vm710_vm0, %v704_v46, -inf  ;;  %v705_v50 = vadd.f32 %v700_v38, %v688_v44 }
 0x12c   : > { %718 = vmax.xlane.f32.xlu1 %v717_v49  ;;  %v711_v51 = vsel %vm710_vm0, %v702_v48, -inf  ;;  %v703_v52 = vadd.f32 %v700_v38, %v686_v47 }
 0x12d   : > { %712 = vmax.xlane.f32.xlu0 %v711_v51  ;;  %v720_v55 = vsel %vm710_vm0, %v705_v50, -inf }
 0x12e   : > { %v1378_v53 = vpop.f32.mrb[4].mxu0  ;;  %v714_v59 = vsel %vm710_vm0, %v703_v52, -inf }
 0x12f   : > { %v670_v54 = vpop.f32.mrb[5].mxu0  ;;  %v691_v56 = vmul.f32 0.088388346, %v1378_v53 }
 0x130   : > { %v689_v57 = vmul.f32 0.088388346, %v670_v54  ;;  %721 = vmax.xlane.f32.xlu1 %v720_v55  ;;  %v1379_v58 = vpop.f32.mrb[6].mxu0  ;;  %v1457_v55 = vld [vmem:[%s1690_s4] sm:$0xff]  }
 0x131   : > { %715 = vmax.xlane.f32.xlu0 %v714_v59  ;;  %v673_v60 = vpop.f32.mrb[7].mxu0  ;;  %v692_v61 = vmul.f32 0.088388346, %v1379_v58  ;;  %v708_v2 = vadd.f32 %v700_v38, %v691_v56  ;;  %v1458_v56 = vld [vmem:[%s1690_s4 + $0x8] sm:$0xff]   ;;  %1396 = vmatprep.subr.bf16.mxu1 %v1457_v55  ;;  %v1460_v58 = vld [vmem:[%s1690_s4 + $0x18] sm:$0xff]   ;;  %v1461_v59 = vld [vmem:[%s1690_s4 + $0x20] sm:$0xff]  }
 0x132   : > { %v690_v62 = vmul.f32 0.088388346, %v673_v60  ;;  %v706_v63 = vadd.f32 %v700_v38, %v689_v57  ;;  %v1459_v57 = vld [vmem:[%s1690_s4 + $0x10] sm:$0xff]   ;;  %v1462_v60 = vld [vmem:[%s1690_s4 + $0x28] sm:$0xff]  }
 0x133   : > { %v709_v4 = vadd.f32 %v700_v38, %v692_v61  ;;  %v729_v5 = vsel %vm710_vm0, %v708_v2, -inf  ;;  %v1463_v61 = vld [vmem:[%s1690_s4 + $0x30] sm:$0xff]  }
 0x134   : > { %v707_v0 = vadd.f32 %v700_v38, %v690_v62  ;;  %v723_v1 = vsel %vm710_vm0, %v706_v63, -inf  ;;  %v1464_v62 = vld [vmem:[%s1690_s4 + $0x38] sm:$0xff]  }
 0x135   : > { %724 = vmax.xlane.f32.xlu0 %v723_v1  ;;  %v732_v6 = vsel %vm710_vm0, %v709_v4, -inf }
 0x136   : > { %v726_v3 = vsel %vm710_vm0, %v707_v0, -inf }
 0x137   : > { %727 = vmax.xlane.f32.xlu1 %v726_v3 }
 0x139   : > { %730 = vmax.xlane.f32.xlu0 %v729_v5 }
 0x13b   : > { %733 = vmax.xlane.f32.xlu1 %v732_v6 }
 0x1b9   : > { %v719_v11 = vpop.xlane.xlu1 %718 }
 0x1ba   : > { %v737_v12 = vsub.f32 %v704_v46, %v719_v11  ;;  %v713_v13 = vpop.xlane.xlu0 %712 }
 0x1bb   : > { %v735_v14 = vsub.f32 %v702_v48, %v713_v13 }
 0x1bc   : > { %v747_v15 = vmul.f32 1.442695, %v737_v12 }
 0x1bd   : > { %v743_v16 = vmul.f32 1.442695, %v735_v14  ;;  %v722_v17 = vpop.xlane.xlu1 %721 }
 0x1be   : > { %v738_v18 = vsub.f32 %v705_v50, %v722_v17  ;;  %v716_v19 = vpop.xlane.xlu0 %715 }
 0x1bf   : > { %1465 = vpow2.f32 %v743_v16  ;;  %v736_v20 = vsub.f32 %v703_v52, %v716_v19 }
 0x1c0   : > { %v749_v21 = vmul.f32 1.442695, %v738_v18  ;;  %1467 = vpow2.f32 %v747_v15 }
 0x1c1   : > { %v745_v22 = vmul.f32 1.442695, %v736_v20 }
 0x1c2   : > { %1469 = vpow2.f32 %v749_v21  ;;  %v725_v23 = vpop.xlane.xlu0 %724 }
 0x1c3   : > { %1471 = vpow2.f32 %v745_v22  ;;  %v739_v24 = vsub.f32 %v706_v63, %v725_v23 }
 0x1c4   : > { %v728_v25 = vpop.xlane.xlu1 %727 }
 0x1c5   : > { %v751_v26 = vmul.f32 1.442695, %v739_v24  ;;  %v740_v27 = vsub.f32 %v707_v0, %v728_v25 }
 0x1c6   : > { %v731_v28 = vpop.xlane.xlu0 %730 }
 0x1c7   : > { %1473 = vpow2.f32 %v751_v26  ;;  %v753_v29 = vmul.f32 1.442695, %v740_v27  ;;  %v741_v30 = vsub.f32 %v708_v2, %v731_v28 }
 0x1c8   : > { %v734_v31 = vpop.xlane.xlu1 %733 }
 0x1c9   : > { %v1466_v32 = vpop.eup %1465  ;;  %1475 = vpow2.f32 %v753_v29  ;;  %v755_v33 = vmul.f32 1.442695, %v741_v30  ;;  %v742_v34 = vsub.f32 %v709_v4, %v734_v31 }
 0x1ca   : > { %v759_v35 = vsel %vm710_vm0, %v1466_v32, 0.0  ;;  %v1468_v36 = vpop.eup %1467 }
 0x1cb   : > { %1477 = vpow2.f32 %v755_v33  ;;  %v757_v37 = vmul.f32 1.442695, %v742_v34  ;;  %760 = vadd.xlane.f32.xlu0 %v759_v35  ;;  %v765_v40 = vsel %vm710_vm0, %v1468_v36, 0.0  ;;  %v1330_v35 = vld [vmem:[%s539_s16 + $0x8] sm:$0xff]  }
 0x1cc   : > { %v1470_v38 = vpop.eup %1469 }
 0x1cd   : > { %v1472_v39 = vpop.eup %1471  ;;  %1479 = vpow2.f32 %v757_v37  ;;  %v784_v43 = vpack.c.bf16 %v1470_v38, %v1468_v36  ;;  %v768_v46 = vsel %vm710_vm0, %v1470_v38, 0.0  ;;  %v1295_v36 = vld [vmem:[%s539_s16] sm:$0xff]   ;;  %v1300_v37 = vunpack.c.l.bf16 %v1330_v35 }
 0x1ce   : > { %v762_v41 = vsel %vm710_vm0, %v1472_v39, 0.0  ;;  %v783_v42 = vpack.c.bf16 %v1472_v39, %v1466_v32  ;;  %v1301_v38 = vunpack.c.h.bf16 %v1330_v35 }
 0x1cf   : > { %766 = vadd.xlane.f32.xlu0 %v765_v40  ;;  %763 = vadd.xlane.f32.xlu1 %v762_v41  ;;  %v1296_v40 = vunpack.c.l.bf16 %v1295_v36  ;;  %v1297_v41 = vunpack.c.h.bf16 %v1295_v36 }
 0x1d0   : > { %1388 = vmatprep.mubr.msk.bf16.mxu1 %vm710_vm0, %v783_v42 }
 0x1d1   : > { %v1474_v44 = vpop.eup %1473  ;;  %1389 = vmatmul.mubr.msk.bf16.vlgmr.msra.gmra.mrb[0].mxu1 %vm710_vm0, %v784_v43 }
 0x1d2   : > { %v771_v45 = vsel %vm710_vm0, %v1474_v44, 0.0  ;;  %1397 = vmatpush3.bf16.msra.mxu1 %v1457_v55 }
 0x1d3   : > { %v1476_v47 = vpop.eup %1475  ;;  %772 = vadd.xlane.f32.xlu0 %v771_v45  ;;  %769 = vadd.xlane.f32.xlu1 %v768_v46 }
 0x1d4   : > { %v785_v48 = vpack.c.bf16 %v1476_v47, %v1474_v44  ;;  %v774_v51 = vsel %vm710_vm0, %v1476_v47, 0.0  ;;  %1398 = vmatprep.subr.bf16.mxu1 %v1458_v56 }
 0x1d5   : > { %v1478_v49 = vpop.eup %1477 }
 0x1d6   : > { %1392 = vmatprep.mubr.msk.bf16.mxu1 %vm710_vm0, %v785_v48  ;;  %v777_v50 = vsel %vm710_vm0, %v1478_v49, 0.0  ;;  %1399 = vmatpush3.bf16.msra.mxu1 %v1458_v56 }
 0x1d7   : > { %v1480_v52 = vpop.eup %1479  ;;  %778 = vadd.xlane.f32.xlu0 %v777_v50  ;;  %775 = vadd.xlane.f32.xlu1 %v774_v51  ;;  %v1332_v50 = vld [vmem:[%s539_s16 + $0x18] sm:$0xff]  }
 0x1d8   : > { %v786_v53 = vpack.c.bf16 %v1480_v52, %v1478_v49  ;;  %v780_v54 = vsel %vm710_vm0, %v1480_v52, 0.0  ;;  %1400 = vmatprep.subr.bf16.mxu1 %v1459_v57  ;;  %v1331_v52 = vld [vmem:[%s539_s16 + $0x10] sm:$0xff]  }
 0x1d9   : > { %v1304_v56 = vunpack.c.l.bf16 %v1331_v52 }
 0x1da   : > { %1393 = vmatmul.mubr.msk.bf16.gmra.mrb[4].mxu1 %vm710_vm0, %v786_v53  ;;  %v1308_v53 = vunpack.c.l.bf16 %v1332_v50 }
 0x1db   : > { %781 = vadd.xlane.f32.xlu1 %v780_v54  ;;  %1401 = vmatpush3.bf16.msra.mxu1 %v1459_v57  ;;  %v1309_v54 = vunpack.c.h.bf16 %v1332_v50  ;;  %v1305_v57 = vunpack.c.h.bf16 %v1331_v52 }
 0x1dc   : > { %1402 = vmatprep.subr.bf16.mxu1 %v1460_v58 }
 0x1df   : > { %1403 = vmatpush3.bf16.msra.mxu1 %v1460_v58 }
 0x1e0   : > { %1404 = vmatprep.subr.bf16.mxu1 %v1461_v59 }
 0x1e3   : > { %1405 = vmatpush3.bf16.msra.mxu1 %v1461_v59 }
 0x1e4   : > { %1406 = vmatprep.subr.bf16.mxu1 %v1462_v60 }
 0x1e7   : > { %1407 = vmatpush3.bf16.msra.mxu1 %v1462_v60 }
 0x1e8   : > { %1408 = vmatprep.subr.bf16.mxu1 %v1463_v61 }
 0x1eb   : > { %1409 = vmatpush3.bf16.msra.mxu1 %v1463_v61 }
 0x1ec   : > { %1410 = vmatprep.subr.bf16.mxu1 %v1464_v62 }
 0x1ef   : > { %1411 = vmatpush3.bf16.msra.mxu1 %v1464_v62 }
 0x258   : > { %v761_v63 = vpop.xlane.xlu0 %760 }
 0x259   : > { %1481 = vrcp.f32 %v761_v63 }
 0x25c   : > { %v764_v0 = vpop.xlane.xlu1 %763  ;;  %v767_v1 = vpop.xlane.xlu0 %766 }
 0x25d   : > { %1483 = vrcp.f32 %v767_v1 }
 0x260   : > { %v770_v2 = vpop.xlane.xlu1 %769  ;;  %v773_v3 = vpop.xlane.xlu0 %772 }
 0x261   : > { %1485 = vrcp.f32 %v770_v2 }
 0x262   : > { %1487 = vrcp.f32 %v764_v0 }
 0x263   : > { %1489 = vrcp.f32 %v773_v3  ;;  %v1482_v7 = vpop.eup %1481 }
 0x264   : > { %v776_v4 = vpop.xlane.xlu1 %775  ;;  %v779_v5 = vpop.xlane.xlu0 %778 }
 0x265   : > { %1491 = vrcp.f32 %v779_v5 }
 0x267   : > { %v1484_v9 = vpop.eup %1483 }
 0x268   : > { %v782_v6 = vpop.xlane.xlu1 %781 }
 0x269   : > { %1493 = vrcp.f32 %v782_v6 }
 0x26a   : > { %1495 = vrcp.f32 %v776_v4 }
 0x26b   : > { %v1486_v11 = vpop.eup %1485 }
 0x26c   : > { %v1488_v13 = vpop.eup %1487 }
 0x26d   : > { %v1490_v21 = vpop.eup %1489 }
 0x26f   : > { %v1492_v23 = vpop.eup %1491 }
 0x273   : > { %v1494_v25 = vpop.eup %1493 }
 0x274   : > { %v1496_v27 = vpop.eup %1495 }
 0x2a4   : > { %v1390_v8 = vpop.f32.mrb[0].mxu1 }
 0x2a5   : > { %v857_v10 = vpop.f32.mrb[1].mxu1  ;;  %v893_v14 = vmul.f32 %v1484_v9, %v1390_v8 }
 0x2a6   : > { %v1391_v12 = vpop.f32.mrb[2].mxu1  ;;  %v889_v17 = vmul.f32 %v1482_v7, %v857_v10 }
 0x2a7   : > { %v895_v15 = vmul.f32 %v1486_v11, %v1391_v12  ;;  %v860_v16 = vpop.f32.mrb[3].mxu1 }
 0x2a8   : > { %v891_v18 = vmul.f32 %v1488_v13, %v860_v16 }
 0x2a9   : > { %v905_v19 = vpack.c.bf16 %v895_v15, %v893_v14 }
 0x2aa   : > { %v904_v20 = vpack.c.bf16 %v891_v18, %v889_v17 }
 0x2ac   : > { %1412 = vmatprep.mubr.bf16.mxu1 %v904_v20 }
 0x2ad   : > { %v1394_v22 = vpop.f32.mrb[4].mxu1  ;;  %1413 = vmatmul.mubr.bf16.vlgmr.msra.gmra.mrb[8].mxu1 %v905_v19 }
 0x2ae   : > { %v873_v24 = vpop.f32.mrb[5].mxu1  ;;  %v901_v28 = vmul.f32 %v1492_v23, %v1394_v22 }
 0x2af   : > { %v1395_v26 = vpop.f32.mrb[6].mxu1  ;;  %v897_v31 = vmul.f32 %v1490_v21, %v873_v24 }
 0x2b0   : > { %v903_v29 = vmul.f32 %v1494_v25, %v1395_v26  ;;  %v876_v30 = vpop.f32.mrb[7].mxu1 }
 0x2b1   : > { %v899_v32 = vmul.f32 %v1496_v27, %v876_v30 }
 0x2b2   : > { %v907_v33 = vpack.c.bf16 %v903_v29, %v901_v28 }
 0x2b3   : > { %v906_v34 = vpack.c.bf16 %v899_v32, %v897_v31 }
 0x2b5   : > { %1416 = vmatprep.mubr.bf16.mxu1 %v906_v34 }
 0x2b6   : > { %1417 = vmatmul.mubr.bf16.gmra.mrb[12].mxu1 %v907_v33 }
 0x380   : > { %v1414_v39 = vpop.f32.mrb[8].mxu1 }
 0x381   : > { %v1022_v42 = vpop.f32.mrb[9].mxu1  ;;  %v1031_v44 = vadd.f32 %v1414_v39, %v1300_v37 }
 0x382   : > { %v1415_v43 = vpop.f32.mrb[10].mxu1  ;;  %v1023_v47 = vadd.f32 %v1296_v40, %v1022_v42 }
 0x383   : > { %v1034_v45 = vadd.f32 %v1415_v43, %v1301_v38  ;;  %v1025_v46 = vpop.f32.mrb[11].mxu1 }
 0x384   : > { %v1026_v48 = vadd.f32 %v1297_v41, %v1025_v46 }
 0x385   : > { %v1318_v49 = vpack.c.bf16 %v1034_v45, %v1031_v44 }
 0x386   : > { %v1313_v51 = vpack.c.bf16 %v1026_v48, %v1023_v47 }
 0x387   : > { %1333 = vst [vmem:[%s545_s18 + $0x8] sm:$0xff] %v1318_v49  }
 0x388   : > { %1314 = vst [vmem:[%s545_s18] sm:$0xff] %v1313_v51  }
 0x389   : > { %v1418_v55 = vpop.f32.mrb[12].mxu1 }
 0x38a   : > { %v1038_v58 = vpop.f32.mrb[13].mxu1  ;;  %v1047_v60 = vadd.f32 %v1418_v55, %v1308_v53 }
 0x38b   : > { %v1419_v59 = vpop.f32.mrb[14].mxu1  ;;  %v1039_v63 = vadd.f32 %v1304_v56, %v1038_v58 }
 0x38c   : > { %v1050_v61 = vadd.f32 %v1419_v59, %v1309_v54  ;;  %v1041_v62 = vpop.f32.mrb[15].mxu1 }
 0x38d   : > { %v1042_v0 = vadd.f32 %v1305_v57, %v1041_v62 }
 0x38e   : > { %v1328_v1 = vpack.c.bf16 %v1050_v61, %v1047_v60 }
 0x38f   : > { %v1323_v2 = vpack.c.bf16 %v1042_v0, %v1039_v63 }
 0x390   : > { %1335 = vst [vmem:[%s545_s18 + $0x18] sm:$0xff] %v1328_v1  }
 0x391   : > { %1334 = vst [vmem:[%s545_s18 + $0x10] sm:$0xff] %v1323_v2  }
 0x392 PF: > { %p13_p10 = scmp.ge.s32.totalorder %s1575_s25, 4   ;;  %s1694_s21 = smov %s1515_s22 }
 0x393   : > { %s1695_s22 = smov %s1584_s28  ;;  %s1696_s23 = smov %s1575_s25 }
 0x394   :  { %15 = sbr.rel (!%p13_p10) target bundleno = 2 (0x2), region = 224 }

// kernel: transformer_vae_forward.39
= control target key start
LH: loop header
LB: loop body
LE: loop exit
PB: predicated region body
PF: predicated region fallthrough
CT: control target
= control target key end

     0   :  { %s882_s12 = smov 0   ;;  %s884_s13 = smov 0   ;;  %s994_s0 = inlined_call_operand.vmem [shape: bf16[128,128], index: 0, kind: input, shape index: {}]   ;;  %s995_s1 = inlined_call_operand.vmem [shape: bf16[128,256], index: 1, kind: input, shape index: {}]   ;;  %s996_s2 = inlined_call_operand.vmem [shape: f32[1,256], index: 2, kind: input, shape index: {}]   ;;  %s997_s3 = inlined_call_operand.vmem [shape: f32[128,256], index: 3, kind: output, shape index: {}]  }
   0x1   :  { %s886_s14 = smov 0  }
   0x2 LB: > { %s32_s15 = sadd.s32 1, %s855_s13  ;;  %p739_p0 = scmp.ge.s32.totalorder %s859_s14, 1  ;;  %s859_s14 = sphi %s886_s14, %s13_s14   ;;  %s855_s13 = sphi %s884_s13, %s999_s13   ;;  %s851_s12 = sphi %s882_s12, %s998_s12  }
   0x3   : > { %p34_p1 = scmp.ge.s32.totalorder %s32_s15, 2  ;;  %p193_p2 = scmp.lt.s32.totalorder %s859_s14, 3 }
   0x5   : > { %s1001_s15 = smov (%p34_p1, %s32_s15), 0  ;;  %p194_p3 = pnand %p739_p0, %p193_p2 }
   0x6   : > { %v809_v0 = vld [vmem:[%s995_s1 + $0x4] ss:$8 sps:$4 sm:$0xff] (!%p194_p3)   ;;  %s740_s18 = sshll.u32 (!%p194_p3), %s851_s12, 3  ;;  %v811_v1 = vld [vmem:[%s995_s1] ss:$8 sps:$4 sm:$0xff] (!%p194_p3)   ;;  %v861_v2 = vmov (!%p194_p3), 0   ;;  %v568_v21 = vlaneseq (!%p194_p3) }
   0x7   : > { %197 = sbr.rel (%p194_p3) target bundleno = 266 (0x10a), region = 32  ;;  %474 = vmatprep.mubr.bf16.mxu0 (!%p194_p3), %v861_v2  ;;  %494 = vmatprep.mubr.bf16.mxu1 (!%p194_p3), %v861_v2  ;;  %p240_p4 = scmp.lt.s32.totalorder (!%p194_p3), %s740_s18, 15  ;;  %v812_v3 = vld [vmem:[%s995_s1 + $0x14] ss:$8 sps:$4 sm:$0xff] (!%p194_p3)   ;;  %v814_v4 = vld [vmem:[%s995_s1 + $0x10] ss:$8 sps:$4 sm:$0xff] (!%p194_p3)  }
   0x8   : > { %442 = vmatprep.subr.bf16.mxu0 (!%p194_p3), %v809_v0  ;;  %768 = vmatprep.subr.bf16.mxu1 (!%p194_p3), %v809_v0  ;;  %v815_v5 = vld [vmem:[%s995_s1 + $0x24] ss:$8 sps:$4 sm:$0xff] (!%p194_p3)   ;;  %v817_v6 = vld [vmem:[%s995_s1 + $0x20] ss:$8 sps:$4 sm:$0xff] (!%p194_p3)   ;;  %v818_v7 = vld [vmem:[%s995_s1 + $0x34] ss:$8 sps:$4 sm:$0xff] (!%p194_p3)  }
   0x9   : > { %443 = vmatpush1.bf16.msra.mxu0 (!%p194_p3), %v811_v1  ;;  %776 = vmatpush1.bf16.msra.mxu1 (!%p194_p3), %v811_v1  ;;  %v820_v8 = vld [vmem:[%s995_s1 + $0x30] ss:$8 sps:$4 sm:$0xff] (!%p194_p3)   ;;  %v821_v9 = vld [vmem:[%s995_s1 + $0x44] ss:$8 sps:$4 sm:$0xff] (!%p194_p3)   ;;  %v823_v10 = vld [vmem:[%s995_s1 + $0x40] ss:$8 sps:$4 sm:$0xff] (!%p194_p3)  }
   0xa   : > { %444 = vmatprep.subr.bf16.mxu0 (!%p194_p3), %v812_v3  ;;  %769 = vmatprep.subr.bf16.mxu1 (!%p194_p3), %v812_v3  ;;  %v824_v11 = vld [vmem:[%s995_s1 + $0x54] ss:$8 sps:$4 sm:$0xff] (!%p194_p3)   ;;  %v826_v12 = vld [vmem:[%s995_s1 + $0x50] ss:$8 sps:$4 sm:$0xff] (!%p194_p3)   ;;  %v827_v13 = vld [vmem:[%s995_s1 + $0x64] ss:$8 sps:$4 sm:$0xff] (!%p194_p3)  }
   0xb   : > { %v829_v14 = vld [vmem:[%s995_s1 + $0x60] ss:$8 sps:$4 sm:$0xff] (!%p194_p3)   ;;  %v830_v15 = vld [vmem:[%s995_s1 + $0x74] ss:$8 sps:$4 sm:$0xff] (!%p194_p3)   ;;  %v832_v16 = vld [vmem:[%s995_s1 + $0x70] ss:$8 sps:$4 sm:$0xff] (!%p194_p3)  }
   0xc   : > { %v569_v22 = vshrl.u32 (!%p194_p3), %v568_v21, 7  ;;  %v566_v24 = vld [vmem:[%s996_s2] sm:$0x3] (!%p194_p3) }
   0xd   : > { %445 = vmatpush1.bf16.msra.mxu0 (!%p194_p3), %v814_v4  ;;  %777 = vmatpush1.bf16.msra.mxu1 (!%p194_p3), %v814_v4 }
   0xe   : > { %s1003_s18 = smov (!%p240_p4, %s740_s18), 15  ;;  %446 = vmatprep.subr.bf16.mxu0 %v815_v5  ;;  %770 = vmatprep.subr.bf16.mxu1 %v815_v5  ;;  %v570_v23 = vsub.s32 0, %v569_v22  ;;  %v574_v25 = vsub.s32 1, %v569_v22 }
   0xf   : > { %s741_s27 = sshll.u32 %s1003_s18, 2  ;;  %s767_s5 = sshll.u32 %s1003_s18, 4 }
  0x10   : > { %s927_s7 = scalar_lea.vmem %s994_s0, %s741_s27  ;;  %v571_v26 = vrot.slane %v566_v24, %v570_v23  ;;  %v575_v27 = vrot.slane %v566_v24, %v574_v25  ;;  %s967_s9 = scalar_lea.vmem %s997_s3, %s767_s5 }
  0x11   : > { %447 = vmatpush1.bf16.msra.mxu0 %v817_v6  ;;  %778 = vmatpush1.bf16.msra.mxu1 %v817_v6  ;;  %v833_v17 = vld [vmem:[%s927_s7] sm:$0xff]   ;;  %v834_v18 = vld [vmem:[%s927_s7 + $0x10] sm:$0xff]   ;;  %v835_v19 = vld [vmem:[%s927_s7 + $0x8] sm:$0xff]  }
  0x12   : > { %448 = vmatprep.subr.bf16.mxu0 %v818_v7  ;;  %771 = vmatprep.subr.bf16.mxu1 %v818_v7  ;;  %v836_v20 = vld [vmem:[%s927_s7 + $0x18] sm:$0xff]  }
  0x15   : > { %449 = vmatpush1.bf16.msra.mxu0 %v820_v8  ;;  %779 = vmatpush1.bf16.msra.mxu1 %v820_v8 }
  0x16   : > { %450 = vmatprep.subr.bf16.mxu0 %v821_v9  ;;  %772 = vmatprep.subr.bf16.mxu1 %v821_v9 }
  0x19   : > { %451 = vmatpush1.bf16.msra.mxu0 %v823_v10  ;;  %780 = vmatpush1.bf16.msra.mxu1 %v823_v10 }
  0x1a   : > { %452 = vmatprep.subr.bf16.mxu0 %v824_v11  ;;  %773 = vmatprep.subr.bf16.mxu1 %v824_v11 }
  0x1d   : > { %453 = vmatpush1.bf16.msra.mxu0 %v826_v12  ;;  %781 = vmatpush1.bf16.msra.mxu1 %v826_v12 }
  0x1e   : > { %454 = vmatprep.subr.bf16.mxu0 %v827_v13  ;;  %774 = vmatprep.subr.bf16.mxu1 %v827_v13 }
  0x21   : > { %455 = vmatpush1.bf16.msra.mxu0 %v829_v14  ;;  %782 = vmatpush1.bf16.msra.mxu1 %v829_v14 }
  0x22   : > { %456 = vmatprep.subr.bf16.mxu0 %v830_v15  ;;  %775 = vmatprep.subr.bf16.mxu1 %v830_v15 }
  0x25   : > { %457 = vmatpush1.bf16.msra.mxu0 %v832_v16  ;;  %783 = vmatpush1.bf16.msra.mxu1 %v832_v16 }
  0x28   : > { %475 = vmatmul.mubr.bf16.vlgmr.msra.gmra.mrb[0].mxu0 %v833_v17  ;;  %495 = vmatmul.mubr.bf16.vlgmr.msra.gmra.mrb[0].mxu1 %v834_v18 }
  0x29   : > { %484 = vmatprep.mubr.bf16.mxu0 %v861_v2  ;;  %504 = vmatprep.mubr.bf16.mxu1 %v861_v2 }
  0x30   : > { %485 = vmatmul.mubr.bf16.gmra.mrb[4].mxu0 %v835_v19  ;;  %505 = vmatmul.mubr.bf16.gmra.mrb[4].mxu1 %v836_v20 }
  0xfb   : > { %v476_v28 = vpop.f32.mrb[0].mxu0  ;;  %v496_v29 = vpop.f32.mrb[0].mxu1 }
  0xfc   : > { %v578_v30 = vadd.f32 %v571_v26, %v476_v28  ;;  %v586_v31 = vadd.f32 %v571_v26, %v496_v29  ;;  %v478_v32 = vpop.f32.mrb[1].mxu0  ;;  %v498_v33 = vpop.f32.mrb[1].mxu1 }
  0xfd   : > { %v579_v34 = vadd.f32 %v575_v27, %v478_v32  ;;  %v587_v35 = vadd.f32 %v575_v27, %v498_v33  ;;  %v480_v36 = vpop.f32.mrb[2].mxu0  ;;  %v500_v37 = vpop.f32.mrb[2].mxu1 }
  0xfe   : > { %594 = vst [vmem:[%s967_s9] sm:$0xff] %v578_v30  ;;  %602 = vst [vmem:[%s967_s9 + $0x40] sm:$0xff] %v586_v31  ;;  %v580_v38 = vadd.f32 %v571_v26, %v480_v36  ;;  %v588_v39 = vadd.f32 %v571_v26, %v500_v37  ;;  %v482_v40 = vpop.f32.mrb[3].mxu0  ;;  %v502_v41 = vpop.f32.mrb[3].mxu1 }
  0xff   : > { %595 = vst [vmem:[%s967_s9 + $0x8] sm:$0xff] %v579_v34  ;;  %603 = vst [vmem:[%s967_s9 + $0x48] sm:$0xff] %v587_v35  ;;  %v581_v42 = vadd.f32 %v575_v27, %v482_v40  ;;  %v589_v43 = vadd.f32 %v575_v27, %v502_v41 }
 0x100   : > { %596 = vst [vmem:[%s967_s9 + $0x10] sm:$0xff] %v580_v38  ;;  %604 = vst [vmem:[%s967_s9 + $0x50] sm:$0xff] %v588_v39 }
 0x101   : > { %597 = vst [vmem:[%s967_s9 + $0x18] sm:$0xff] %v581_v42  ;;  %605 = vst [vmem:[%s967_s9 + $0x58] sm:$0xff] %v589_v43 }
 0x103   : > { %v486_v44 = vpop.f32.mrb[4].mxu0  ;;  %v506_v45 = vpop.f32.mrb[4].mxu1 }
 0x104   : > { %v582_v46 = vadd.f32 %v571_v26, %v486_v44  ;;  %v590_v47 = vadd.f32 %v571_v26, %v506_v45  ;;  %v488_v48 = vpop.f32.mrb[5].mxu0  ;;  %v508_v49 = vpop.f32.mrb[5].mxu1 }
 0x105   : > { %v583_v50 = vadd.f32 %v575_v27, %v488_v48  ;;  %v591_v51 = vadd.f32 %v575_v27, %v508_v49  ;;  %v490_v52 = vpop.f32.mrb[6].mxu0  ;;  %v510_v53 = vpop.f32.mrb[6].mxu1 }
 0x106   : > { %598 = vst [vmem:[%s967_s9 + $0x20] sm:$0xff] %v582_v46  ;;  %606 = vst [vmem:[%s967_s9 + $0x60] sm:$0xff] %v590_v47  ;;  %v584_v54 = vadd.f32 %v571_v26, %v490_v52  ;;  %v592_v55 = vadd.f32 %v571_v26, %v510_v53  ;;  %v492_v56 = vpop.f32.mrb[7].mxu0  ;;  %v512_v57 = vpop.f32.mrb[7].mxu1 }
 0x107   : > { %599 = vst [vmem:[%s967_s9 + $0x28] sm:$0xff] %v583_v50  ;;  %607 = vst [vmem:[%s967_s9 + $0x68] sm:$0xff] %v591_v51  ;;  %v585_v58 = vadd.f32 %v575_v27, %v492_v56  ;;  %v593_v59 = vadd.f32 %v575_v27, %v512_v57 }
 0x108   : > { %600 = vst [vmem:[%s967_s9 + $0x30] sm:$0xff] %v584_v54  ;;  %608 = vst [vmem:[%s967_s9 + $0x70] sm:$0xff] %v592_v55 }
 0x109   : > { %601 = vst [vmem:[%s967_s9 + $0x38] sm:$0xff] %v585_v58  ;;  %609 = vst [vmem:[%s967_s9 + $0x78] sm:$0xff] %v593_v59 }
 0x10a PF: > { %s13_s14 = sadd.s32 1, %s859_s14   ;;  %s998_s12 = smov %s855_s13 }
 0x10b   : > { %p10_p5 = scmp.ge.s32.totalorder %s13_s14, 4   ;;  %s999_s13 = smov %s1001_s15 }
 0x10d   :  { %12 = sbr.rel (!%p10_p5) target bundleno = 2 (0x2), region = 76 }

// kernel: transformer_vae_forward.38
= control target key start
LH: loop header
LB: loop body
LE: loop exit
PB: predicated region body
PF: predicated region fallthrough
CT: control target
= control target key end

     0   :  { %s839_s12 = smov 0   ;;  %s841_s13 = smov 0   ;;  %s912_s0 = inlined_call_operand.vmem [shape: bf16[128,128], index: 0, kind: input, shape index: {}]   ;;  %s913_s1 = inlined_call_operand.vmem [shape: bf16[128,128], index: 1, kind: input, shape index: {}]   ;;  %s914_s2 = inlined_call_operand.vmem [shape: f32[1,128], index: 2, kind: input, shape index: {}]   ;;  %s915_s3 = inlined_call_operand.vmem [shape: bf16[128,128], index: 3, kind: output, shape index: {}]  }
   0x1   :  { %s843_s14 = smov 0  }
   0x2 LB: > { %s32_s15 = sadd.s32 1, %s813_s13  ;;  %p648_p0 = scmp.ge.s32.totalorder %s817_s14, 1  ;;  %s817_s14 = sphi %s843_s14, %s13_s14   ;;  %s813_s13 = sphi %s841_s13, %s917_s13   ;;  %s809_s12 = sphi %s839_s12, %s916_s12  }
   0x3   : > { %p34_p1 = scmp.ge.s32.totalorder %s32_s15, 2  ;;  %p188_p2 = scmp.lt.s32.totalorder %s817_s14, 3 }
   0x5   : > { %s919_s15 = smov (%p34_p1, %s32_s15), 0  ;;  %p189_p3 = pnand %p648_p0, %p188_p2 }
   0x6   : > { %v783_v0 = vld [vmem:[%s913_s1] sm:$0xff] (!%p189_p3)   ;;  %s649_s18 = sshll.u32 (!%p189_p3), %s809_s12, 3  ;;  %v784_v1 = vld [vmem:[%s913_s1 + $0x8] sm:$0xff] (!%p189_p3)   ;;  %v785_v2 = vld [vmem:[%s913_s1 + $0x10] sm:$0xff] (!%p189_p3)  }
   0x7   : > { %192 = sbr.rel (%p189_p3) target bundleno = 261 (0x105), region = 32  ;;  %p230_p4 = scmp.lt.s32.totalorder (!%p189_p3), %s649_s18, 15  ;;  %719 = vmatprep.subr.bf16.mxu0 (!%p189_p3), %v783_v0  ;;  %743 = vmatprep.subr.bf16.mxu1 (!%p189_p3), %v783_v0  ;;  %v786_v3 = vld [vmem:[%s913_s1 + $0x18] sm:$0xff] (!%p189_p3)   ;;  %v787_v6 = vld [vmem:[%s913_s1 + $0x20] sm:$0xff] (!%p189_p3)   ;;  %v788_v7 = vld [vmem:[%s913_s1 + $0x28] sm:$0xff] (!%p189_p3)  }
   0x8   : > { %720 = vmatpush3.bf16.msra.mxu0 (!%p189_p3), %v783_v0  ;;  %751 = vmatpush3.bf16.msra.mxu1 (!%p189_p3), %v783_v0  ;;  %v789_v8 = vld [vmem:[%s913_s1 + $0x30] sm:$0xff] (!%p189_p3)   ;;  %v790_v9 = vld [vmem:[%s913_s1 + $0x38] sm:$0xff] (!%p189_p3)   ;;  %v665_v12 = vld [vmem:[%s914_s2] ss:$0 sm:$0xff] (!%p189_p3) }
   0x9   : > { %721 = vmatprep.subr.bf16.mxu0 (!%p189_p3), %v784_v1  ;;  %744 = vmatprep.subr.bf16.mxu1 (!%p189_p3), %v784_v1 }
   0xc   : > { %722 = vmatpush3.bf16.msra.mxu0 (!%p189_p3), %v784_v1  ;;  %752 = vmatpush3.bf16.msra.mxu1 (!%p189_p3), %v784_v1 }
   0xd   : > { %723 = vmatprep.subr.bf16.mxu0 (!%p189_p3), %v785_v2  ;;  %745 = vmatprep.subr.bf16.mxu1 (!%p189_p3), %v785_v2 }
   0xe   : > { %s921_s18 = smov (!%p230_p4, %s649_s18), 15 }
   0xf   : > { %s650_s23 = sshll.u32 %s921_s18, 2 }
  0x10   : > { %s874_s26 = scalar_lea.vmem %s912_s0, %s650_s23  ;;  %724 = vmatpush3.bf16.msra.mxu0 %v785_v2  ;;  %753 = vmatpush3.bf16.msra.mxu1 %v785_v2  ;;  %s257_s17 = scalar_lea.vmem %s915_s3, %s650_s23 }
  0x11   : > { %v791_v4 = vld [vmem:[%s874_s26] sm:$0xff]   ;;  %v792_v5 = vld [vmem:[%s874_s26 + $0x10] sm:$0xff]   ;;  %725 = vmatprep.subr.bf16.mxu0 %v786_v3  ;;  %746 = vmatprep.subr.bf16.mxu1 %v786_v3  ;;  %v793_v10 = vld [vmem:[%s874_s26 + $0x8] sm:$0xff]  }
  0x12   : > { %735 = vmatprep.mubr.bf16.mxu0 %v791_v4  ;;  %739 = vmatprep.mubr.bf16.mxu1 %v792_v5  ;;  %v794_v11 = vld [vmem:[%s874_s26 + $0x18] sm:$0xff]  }
  0x14   : > { %726 = vmatpush3.bf16.msra.mxu0 %v786_v3  ;;  %754 = vmatpush3.bf16.msra.mxu1 %v786_v3 }
  0x15   : > { %727 = vmatprep.subr.bf16.mxu0 %v787_v6  ;;  %747 = vmatprep.subr.bf16.mxu1 %v787_v6 }
  0x18   : > { %728 = vmatpush3.bf16.msra.mxu0 %v787_v6  ;;  %755 = vmatpush3.bf16.msra.mxu1 %v787_v6 }
  0x19   : > { %729 = vmatprep.subr.bf16.mxu0 %v788_v7  ;;  %748 = vmatprep.subr.bf16.mxu1 %v788_v7 }
  0x1c   : > { %730 = vmatpush3.bf16.msra.mxu0 %v788_v7  ;;  %756 = vmatpush3.bf16.msra.mxu1 %v788_v7 }
  0x1d   : > { %731 = vmatprep.subr.bf16.mxu0 %v789_v8  ;;  %749 = vmatprep.subr.bf16.mxu1 %v789_v8 }
  0x20   : > { %732 = vmatpush3.bf16.msra.mxu0 %v789_v8  ;;  %757 = vmatpush3.bf16.msra.mxu1 %v789_v8 }
  0x21   : > { %733 = vmatprep.subr.bf16.mxu0 %v790_v9  ;;  %750 = vmatprep.subr.bf16.mxu1 %v790_v9 }
  0x24   : > { %734 = vmatpush3.bf16.msra.mxu0 %v790_v9  ;;  %758 = vmatpush3.bf16.msra.mxu1 %v790_v9 }
  0x27   : > { %736 = vmatmul.mubr.bf16.vlgmr.msra.gmra.mrb[0].mxu0 %v793_v10  ;;  %740 = vmatmul.mubr.bf16.vlgmr.msra.gmra.mrb[0].mxu1 %v794_v11 }
  0xfa   : > { %v737_v13 = vpop.f32.mrb[0].mxu0  ;;  %v741_v14 = vpop.f32.mrb[0].mxu1 }
  0xfb   : > { %v477_v15 = vadd.f32 %v737_v13, %v665_v12  ;;  %v481_v16 = vadd.f32 %v741_v14, %v665_v12  ;;  %v410_v17 = vpop.f32.mrb[1].mxu0  ;;  %v426_v18 = vpop.f32.mrb[1].mxu1 }
  0xfc   : > { %v475_v19 = vadd.f32 %v665_v12, %v410_v17  ;;  %v479_v20 = vadd.f32 %v665_v12, %v426_v18  ;;  %v738_v21 = vpop.f32.mrb[2].mxu0  ;;  %v742_v22 = vpop.f32.mrb[2].mxu1 }
  0xfd   : > { %v478_v23 = vadd.f32 %v738_v21, %v665_v12  ;;  %v482_v24 = vadd.f32 %v742_v22, %v665_v12  ;;  %v413_v25 = vpop.f32.mrb[3].mxu0  ;;  %v429_v26 = vpop.f32.mrb[3].mxu1  ;;  %v485_v29 = vmax.f32 %v477_v15, 0.0  ;;  %v489_v30 = vmax.f32 %v481_v16, 0.0 }
  0xfe   : > { %v476_v27 = vadd.f32 %v665_v12, %v413_v25  ;;  %v480_v28 = vadd.f32 %v665_v12, %v429_v26  ;;  %v483_v33 = vmax.f32 %v475_v19, 0.0  ;;  %v487_v34 = vmax.f32 %v479_v20, 0.0 }
  0xff   : > { %v486_v31 = vmax.f32 %v478_v23, 0.0  ;;  %v490_v32 = vmax.f32 %v482_v24, 0.0 }
 0x100   : > { %v484_v35 = vmax.f32 %v476_v27, 0.0  ;;  %v488_v36 = vmax.f32 %v480_v28, 0.0 }
 0x101   : > { %v692_v37 = vpack.c.bf16 %v486_v31, %v485_v29  ;;  %v702_v38 = vpack.c.bf16 %v490_v32, %v489_v30 }
 0x102   : > { %v687_v39 = vpack.c.bf16 %v484_v35, %v483_v33  ;;  %v697_v40 = vpack.c.bf16 %v488_v36, %v487_v34 }
 0x103   : > { %704 = vst [vmem:[%s257_s17 + $0x8] sm:$0xff] %v692_v37   ;;  %706 = vst [vmem:[%s257_s17 + $0x18] sm:$0xff] %v702_v38  }
 0x104   : > { %688 = vst [vmem:[%s257_s17] sm:$0xff] %v687_v39   ;;  %705 = vst [vmem:[%s257_s17 + $0x10] sm:$0xff] %v697_v40  }
 0x105 PF: > { %s13_s14 = sadd.s32 1, %s817_s14   ;;  %s916_s12 = smov %s813_s13 }
 0x106   : > { %p10_p5 = scmp.ge.s32.totalorder %s13_s14, 4   ;;  %s917_s13 = smov %s919_s15 }
 0x108   :  { %12 = sbr.rel (!%p10_p5) target bundleno = 2 (0x2), region = 76 }

// kernel: transformer_vae_forward.40
= control target key start
LH: loop header
LB: loop body
LE: loop exit
PB: predicated region body
PF: predicated region fallthrough
CT: control target
= control target key end

     0   :  { %12 = vsyncpa [#allocation7], 0  ;;  %s1200_s21 = smov 0   ;;  %s1202_s22 = smov 0   ;;  %s1474_s0 = inlined_call_operand.vmem [shape: f32[128,256], index: 0, kind: input, shape index: {}, may-alias: {0,1}]   ;;  %s1475_s1 = inlined_call_operand.vmem [shape: f32[128,256], index: 1, kind: input, shape index: {}, may-alias: {0,1}]   ;;  %s1476_s2 = inlined_call_operand.vmem [shape: f32[128,128], index: 2, kind: input, shape index: {}]   ;;  %s1477_s3 = inlined_call_operand.vmem [shape: f32[128,1], index: 3, kind: input, shape index: {}]   ;;  %s1478_s4 = inlined_call_operand.vmem [shape: bf16[128,128], index: 4, kind: input, shape index: {}]   ;;  %s1479_s5 = inlined_call_operand.vmem [shape: bf16[128,128], index: 5, kind: output, shape index: {0}]   ;;  %s1480_s6 = inlined_call_operand.hbm [shape: f32[1,1], index: 6, kind: output, shape index: {1}]  }
   0x1   :  { %s1204_s23 = smov 0  }
   0x2 LB: > { %s1216_s24 = sadd.s32 4294967295, %s1161_s23   ;;  %s1219_s25 = sadd.s32 1, %s1161_s23   ;;  %s1161_s23 = sphi %s1204_s23, %s1484_s23   ;;  %s1157_s22 = sphi %s1202_s22, %s1483_s22   ;;  %s1153_s21 = sphi %s1200_s21, %s1482_s21  }
   0x3   : > { %s22_s26 = ssub.s32 %s1161_s23, %s1219_s25  ;;  %s25_s27 = sadd.s32 1, %s1157_s22 }
   0x4   : > { %p23_p0 = scmp.eq.s32.totalorder %s22_s26, 0  ;;  %p32_p1 = scmp.ne.s32.totalorder %s1157_s22, %s1153_s21 }
   0x5   : > { %p33_p2 = scmp.eq.s32.totalorder %s1161_s23, 0  ;;  %p929_p4 = scmp.ge.s32.totalorder %s1161_s23, 2 }
   0x6   : > { %s1228_s28 = scalar_select %p23_p0, %s1157_s22, %s25_s27  }
   0x7   : > { %p1230_p3 = por %p33_p2, %p32_p1  ;;  %209 = sbr.rel (%p929_p4) target bundleno = 30 (0x1e), region = 16 }
   0xe   : > { %212 = sbr.rel (!%p1230_p3) target bundleno = 22 (0x16), region = 20  ;;  %s214_s30 = sand.u32 (%p1230_p3), 1, %s1157_s22  }
   0xf   : > { %s987_s7 = sshll.u32 (%p1230_p3), %s1161_s23, 7  ;;  %s930_s8 = sshll.u32 (%p1230_p3), %s214_s30, 6 }
  0x10   : > { %s220_s11 = scalar_lea.vmem (%p1230_p3), %s1474_s0, %s987_s7  ;;  %s216_s12 = scalar_lea.vmem (%p1230_p3), [#allocation4], %s930_s8 }
  0x11   : > { %v262_v0 = vld [vmem:[%s220_s11] sm:$0xff] (%p1230_p3)  ;;  %v264_v1 = vld [vmem:[%s220_s11 + $0x10] sm:$0xff] (%p1230_p3) }
  0x12   : > { %v266_v2 = vld [vmem:[%s220_s11 + $0x20] sm:$0xff] (%p1230_p3)  ;;  %263 = vst [vmem:[%s216_s12] sm:$0xff] (%p1230_p3), %v262_v0  ;;  %265 = vst [vmem:[%s216_s12 + $0x8] sm:$0xff] (%p1230_p3), %v264_v1  ;;  %v268_v3 = vld [vmem:[%s220_s11 + $0x30] sm:$0xff] (%p1230_p3) }
  0x13   : > { %267 = vst [vmem:[%s216_s12 + $0x10] sm:$0xff] (%p1230_p3), %v266_v2  ;;  %v270_v4 = vld [vmem:[%s220_s11 + $0x40] sm:$0xff] (%p1230_p3)  ;;  %v272_v5 = vld [vmem:[%s220_s11 + $0x50] sm:$0xff] (%p1230_p3)  ;;  %269 = vst [vmem:[%s216_s12 + $0x18] sm:$0xff] (%p1230_p3), %v268_v3 }
  0x14   : > { %271 = vst [vmem:[%s216_s12 + $0x20] sm:$0xff] (%p1230_p3), %v270_v4  ;;  %273 = vst [vmem:[%s216_s12 + $0x28] sm:$0xff] (%p1230_p3), %v272_v5  ;;  %v274_v6 = vld [vmem:[%s220_s11 + $0x60] sm:$0xff] (%p1230_p3)  ;;  %v276_v7 = vld [vmem:[%s220_s11 + $0x70] sm:$0xff] (%p1230_p3) }
  0x15   : > { %275 = vst [vmem:[%s216_s12 + $0x30] sm:$0xff] %v274_v6  ;;  %277 = vst [vmem:[%s216_s12 + $0x38] sm:$0xff] %v276_v7 }
  0x16 PF: > { %283 = sbr.rel (!%p1230_p3) target bundleno = 30 (0x1e), region = 58  ;;  %s285_s13 = sand.u32 (%p1230_p3), 1, %s1157_s22  }
  0x17   : > { %s988_s14 = sshll.u32 (%p1230_p3), %s1161_s23, 7  ;;  %s934_s15 = sshll.u32 (%p1230_p3), %s285_s13, 6 }
  0x18   : > { %s832_s18 = scalar_lea.vmem (%p1230_p3), %s1475_s1, %s988_s14  ;;  %s287_s19 = scalar_lea.vmem (%p1230_p3), [#allocation5], %s934_s15 }
  0x19   : > { %v937_v8 = vld [vmem:[%s832_s18 + $0x8] sm:$0xff] (%p1230_p3)  ;;  %v938_v9 = vld [vmem:[%s832_s18 + $0x18] sm:$0xff] (%p1230_p3) }
  0x1a   : > { %v939_v10 = vld [vmem:[%s832_s18 + $0x28] sm:$0xff] (%p1230_p3)  ;;  %335 = vst [vmem:[%s287_s19] sm:$0xff] (%p1230_p3), %v937_v8  ;;  %337 = vst [vmem:[%s287_s19 + $0x8] sm:$0xff] (%p1230_p3), %v938_v9  ;;  %v940_v11 = vld [vmem:[%s832_s18 + $0x38] sm:$0xff] (%p1230_p3) }
  0x1b   : > { %339 = vst [vmem:[%s287_s19 + $0x10] sm:$0xff] (%p1230_p3), %v939_v10  ;;  %v941_v12 = vld [vmem:[%s832_s18 + $0x48] sm:$0xff] (%p1230_p3)  ;;  %v942_v13 = vld [vmem:[%s832_s18 + $0x58] sm:$0xff] (%p1230_p3)  ;;  %341 = vst [vmem:[%s287_s19 + $0x18] sm:$0xff] (%p1230_p3), %v940_v11 }
  0x1c   : > { %343 = vst [vmem:[%s287_s19 + $0x20] sm:$0xff] (%p1230_p3), %v941_v12  ;;  %345 = vst [vmem:[%s287_s19 + $0x28] sm:$0xff] (%p1230_p3), %v942_v13  ;;  %v943_v14 = vld [vmem:[%s832_s18 + $0x68] sm:$0xff] (%p1230_p3)  ;;  %v944_v15 = vld [vmem:[%s832_s18 + $0x78] sm:$0xff] (%p1230_p3) }
  0x1d   : > { %347 = vst [vmem:[%s287_s19 + $0x30] sm:$0xff] %v943_v14  ;;  %349 = vst [vmem:[%s287_s19 + $0x38] sm:$0xff] %v944_v15 }
  0x1e PF: > { %p945_p5 = scmp.ge.s32.totalorder %s1161_s23, 1  ;;  %p381_p6 = scmp.lt.s32.totalorder %s1161_s23, 3 }
  0x20   : > { %p382_p7 = pnand %p945_p5, %p381_p6 }
  0x21   : > { %s388_s20 = sand.u32 (!%p382_p7), 1, %s1153_s21   ;;  %s948_s26 = sshll.u32 (!%p382_p7), %s1216_s24, 3 }
  0x22   : > { %385 = sbr.rel (%p382_p7) target bundleno = 498 (0x1f2), region = 108  ;;  %s946_s27 = sshll.u32 (!%p382_p7), %s388_s20, 6 }
  0x23   : > { %p446_p8 = scmp.lt.s32.totalorder (!%p382_p7), %s948_s26, 15  ;;  %s1273_s17 = scalar_lea.vmem (!%p382_p7), [#allocation4], %s946_s27 }
  0x24   : > { %s1275_s18 = scalar_lea.vmem (!%p382_p7), [#allocation5], %s946_s27  ;;  %p956_p9 = scmp.ne.s32.totalorder (!%p382_p7), %s1216_s24, 0 }
  0x29   : > { %s1486_s26 = smov (!%p446_p8, %s948_s26), 15  ;;  %472 = sbr.rel (%p956_p9) target bundleno = 48 (0x30), region = 120 }
  0x2a   : > { %s949_s29 = sshll.u32 %s1486_s26, 3  ;;  %s953_s30 = sshll.u32 %s1486_s26, 2  ;;  %vm473_vm0 = vcmask (!%p956_p9), 0   ;;  %v1163_v16 = vmov (!%p956_p9), 0.0  }
  0x2b   : > { %s1256_s9 = scalar_lea.vmem %s1476_s2, %s949_s29  ;;  %s1261_s23 = scalar_lea.vmem %s1477_s3, %s949_s29  ;;  %474 = vst.msk [vmem:[#allocation2] sm:$0x1] (!%p956_p9), %vm473_vm0, %v1163_v16  ;;  %475 = vst.msk [vmem:[#allocation3] sm:$0x1] (!%p956_p9), %vm473_vm0, %v1163_v16 }
  0x2c   : > { %s1266_s21 = scalar_lea.vmem %s1478_s4, %s953_s30  ;;  %s1271_s16 = scalar_lea.vmem %s1479_s5, %s953_s30 }
  0x30 PF: > { %v1279_v17 = vld [vmem:[%s1273_s17] sm:$0xff]  ;;  %v1291_v23 = vld [vmem:[%s1273_s17 + $0x10] sm:$0xff]  ;;  %v1304_v31 = vld [vmem:[%s1273_s17 + $0x8] sm:$0xff]  ;;  %vm717_vm1 = vcmask 7168   ;;  %vm744_vm2 = vcmask 0   ;;  %p981_p10 = scmp.ne.s32.totalorder %s1216_s24, 1 }
  0x31   : > { %v1282_v18 = vld [vmem:[%s1275_s18] sm:$0xff]  ;;  %v965_v22 = vadd.f32 -1.0, %v1279_v17  ;;  %v1296_v26 = vld [vmem:[%s1275_s18 + $0x10] sm:$0xff]  ;;  %v967_v30 = vadd.f32 -1.0, %v1291_v23  ;;  %v1307_v32 = vld [vmem:[%s1275_s18 + $0x8] sm:$0xff]  ;;  %v966_v43 = vadd.f32 -1.0, %v1304_v31 }
  0x32   : > { %v500_v19 = vmul.f32 0.5, %v1282_v18  ;;  %v1286_v20 = vld [vmem:[%s1266_s21] sm:$0xff]   ;;  %v604_v21 = vmul.f32 1.442695, %v1282_v18  ;;  %v652_v25 = vsub.f32 -1.0986123, %v1282_v18 }
  0x33   : > { %v999_v24 = vunpack.c.l.bf16 %v1286_v20  ;;  %v1299_v27 = vld [vmem:[%s1266_s21 + $0x8] sm:$0xff]   ;;  %v502_v29 = vmul.f32 0.5, %v1296_v26  ;;  %v628_v33 = vmul.f32 %v965_v22, %v965_v22  ;;  %v608_v35 = vmul.f32 1.442695, %v1296_v26  ;;  %v1313_v37 = vld [vmem:[%s1275_s18 + $0x18] sm:$0xff]  ;;  %v1333_v53 = vld [vmem:[%s1266_s21 + $0x10] sm:$0xff]  }
  0x34   : > { %v508_v28 = vmul.f32 1.442695, %v500_v19  ;;  %1075 = vpow2.f32 %v604_v21  ;;  %v1003_v34 = vunpack.c.l.bf16 %v1299_v27  ;;  %v1000_v36 = vunpack.c.h.bf16 %v1286_v20  ;;  %v1318_v41 = vld [vmem:[%s1273_s17 + $0x18] sm:$0xff]  ;;  %v1325_v48 = vld [vmem:[%s1273_s17 + $0x20] sm:$0xff]  ;;  %v1338_v57 = vld [vmem:[%s1275_s18 + $0x28] sm:$0xff] }
  0x35   : > { %v512_v38 = vmul.f32 1.442695, %v502_v29  ;;  %v501_v39 = vmul.f32 0.5, %v1307_v32  ;;  %v606_v40 = vmul.f32 1.442695, %v1307_v32  ;;  %v503_v44 = vmul.f32 0.5, %v1313_v37 }
  0x36   : > { %1077 = vpow2.f32 %v508_v28  ;;  %v654_v42 = vsub.f32 -1.0986123, %v1296_v26  ;;  %v630_v45 = vmul.f32 %v967_v30, %v967_v30  ;;  %v610_v47 = vmul.f32 1.442695, %v1313_v37  ;;  %v1328_v49 = vld [vmem:[%s1275_s18 + $0x20] sm:$0xff]  ;;  %v1344_v61 = vld [vmem:[%s1273_s17 + $0x28] sm:$0xff] }
  0x37   : > { %1079 = vpow2.f32 %v608_v35  ;;  %v510_v46 = vmul.f32 1.442695, %v501_v39  ;;  %v653_v50 = vsub.f32 -1.0986123, %v1307_v32  ;;  %v514_v51 = vmul.f32 1.442695, %v503_v44 }
  0x38   : > { %1081 = vpow2.f32 %v512_v38  ;;  %v968_v52 = vadd.f32 -1.0, %v1318_v41  ;;  %v629_v54 = vmul.f32 %v966_v43, %v966_v43  ;;  %v1004_v55 = vunpack.c.h.bf16 %v1299_v27  ;;  %v1351_v4 = vld [vmem:[%s1273_s17 + $0x30] sm:$0xff]  ;;  %v492_v7 = vld [vmem:[%s1256_s9] sm:$0xff] }
  0x39   : > { %1083 = vpow2.f32 %v606_v40  ;;  %v504_v56 = vmul.f32 0.5, %v1328_v49  ;;  %v655_v58 = vsub.f32 -1.0986123, %v1313_v37  ;;  %v612_v59 = vmul.f32 1.442695, %v1328_v49  ;;  %v1354_v5 = vld [vmem:[%s1275_s18 + $0x30] sm:$0xff] }
  0x3a   : > { %1085 = vpow2.f32 %v510_v46  ;;  %v969_v60 = vadd.f32 -1.0, %v1325_v48  ;;  %v1007_v63 = vunpack.c.l.bf16 %v1333_v53  ;;  %v505_v0 = vmul.f32 0.5, %v1338_v57  ;;  %v494_v15 = vld [vmem:[%s1256_s9 + $0x10] sm:$0xff]  ;;  %v1365_v35 = vld [vmem:[%s1275_s18 + $0x38] sm:$0xff]  ;;  %v493_v40 = vld [vmem:[%s1256_s9 + $0x8] sm:$0xff] }
  0x3b   : > { %1087 = vpow2.f32 %v514_v51  ;;  %v516_v62 = vmul.f32 1.442695, %v504_v56  ;;  %v631_v1 = vmul.f32 %v968_v52, %v968_v52  ;;  %v656_v2 = vsub.f32 -1.0986123, %v1328_v49  ;;  %v495_v56 = vld [vmem:[%s1256_s9 + $0x18] sm:$0xff] }
  0x3c   : > { %1089 = vpow2.f32 %v610_v47  ;;  %v614_v3 = vmul.f32 1.442695, %v1338_v57  ;;  %v632_v8 = vmul.f32 %v969_v60, %v969_v60  ;;  %v518_v9 = vmul.f32 1.442695, %v505_v0  ;;  %v499_v49 = vld [vmem:[%s1256_s9 + $0x38] sm:$0xff] }
  0x3d   : > { %1091 = vpow2.f32 %v612_v59  ;;  %v970_v10 = vadd.f32 -1.0, %v1344_v61  ;;  %v1008_v12 = vunpack.c.h.bf16 %v1333_v53  ;;  %v506_v13 = vmul.f32 0.5, %v1354_v5 }
  0x3e   : > { %v1076_v6 = vpop.eup %1075  ;;  %1093 = vpow2.f32 %v516_v62  ;;  %v657_v16 = vsub.f32 -1.0986123, %v1338_v57  ;;  %v616_v19 = vmul.f32 1.442695, %v1354_v5  ;;  %v971_v21 = vadd.f32 -1.0, %v1351_v4 }
  0x3f   : > { %v636_v11 = vadd.f32 %v1076_v6, %v628_v33  ;;  %1095 = vpow2.f32 %v614_v3  ;;  %v633_v30 = vmul.f32 %v970_v10, %v970_v10  ;;  %v520_v33 = vmul.f32 1.442695, %v506_v13  ;;  %v496_v13 = vld [vmem:[%s1256_s9 + $0x20] sm:$0xff] }
  0x40   : > { %v1078_v14 = vpop.eup %1077  ;;  %1097 = vpow2.f32 %v518_v9  ;;  %v658_v43 = vsub.f32 -1.0986123, %v1354_v5  ;;  %v507_v44 = vmul.f32 0.5, %v1365_v35 }
  0x41   : > { %v1080_v22 = vpop.eup %1079  ;;  %v524_v28 = vmul.f32 %v1078_v14, %v492_v7  ;;  %v644_v29 = vmul.f32 3.0, %v636_v11  ;;  %1099 = vpow2.f32 %v616_v19 }
  0x42   : > { %v1082_v38 = vpop.eup %1081  ;;  %v638_v39 = vadd.f32 %v1080_v22, %v630_v45  ;;  %1101 = vpow2.f32 %v520_v33  ;;  %v634_v45 = vmul.f32 %v971_v21, %v971_v21  ;;  %v522_v0 = vmul.f32 1.442695, %v507_v44  ;;  %v498_v44 = vld [vmem:[%s1256_s9 + $0x30] sm:$0xff] }
  0x43   : > { %v1084_v46 = vpop.eup %1083  ;;  %v660_v47 = vadd.f32 %v652_v25, %v644_v29  ;;  %v532_v51 = vadd.f32 %v524_v28, %v1279_v17  ;;  %v526_v52 = vmul.f32 %v1082_v38, %v494_v15  ;;  %v497_v28 = vld [vmem:[%s1256_s9 + $0x28] sm:$0xff] }
  0x44   : > { %v1086_v59 = vpop.eup %1085  ;;  %v646_v60 = vmul.f32 3.0, %v638_v39  ;;  %v637_v62 = vadd.f32 %v1084_v46, %v629_v54  ;;  %1103 = vpow2.f32 %v522_v0 }
  0x45   : > { %v1088_v3 = vpop.eup %1087  ;;  %v973_v6 = vadd.f32 -1.0, %v660_v47  ;;  %v556_v7 = vmul.f32 %v999_v24, %v532_v51  ;;  %v534_v9 = vadd.f32 %v526_v52, %v1291_v23  ;;  %v525_v18 = vmul.f32 %v1086_v59, %v493_v40  ;;  %v1035_v51 = vld [vmem:[%s1266_s21 + $0x18] sm:$0xff]  }
  0x46   : > { %v1090_v25 = vpop.eup %1089  ;;  %v662_v17 = vadd.f32 %v654_v42, %v646_v60  ;;  %v645_v10 = vmul.f32 3.0, %v637_v62  ;;  %v527_v11 = vmul.f32 %v1088_v3, %v495_v56  ;;  %v618_v23 = vmul.f32 1.442695, %v1365_v35 }
  0x47   : > { %v1092_v54 = vpop.eup %1091  ;;  %676 = vadd.xlane.f32.xlu0 %v973_v6  ;;  %v558_v14 = vmul.f32 %v1003_v34, %v534_v9  ;;  %v533_v24 = vadd.f32 %v525_v18, %v1304_v31  ;;  %v639_v15 = vadd.f32 %v1090_v25, %v631_v1  ;;  %v483_v31 = vld [vmem:[%s1273_s17 + $0x38] sm:$0xff]  ;;  %v1011_v0 = vunpack.c.l.bf16 %v1035_v51 }
  0x48   : > { %v1094_v19 = vpop.eup %1093  ;;  %v975_v21 = vadd.f32 -1.0, %v662_v17  ;;  %v661_v26 = vadd.f32 %v653_v50, %v645_v10  ;;  %v535_v42 = vadd.f32 %v527_v11, %v1318_v41  ;;  %v640_v22 = vadd.f32 %v1092_v54, %v632_v8  ;;  %v702_v54 = vld [vmem:[%s1261_s23 + $0x10] sm:$0xff] }
  0x49   : > { %v1096_v29 = vpop.eup %1095  ;;  %v557_v33 = vmul.f32 %v1000_v36, %v533_v24  ;;  %v647_v34 = vmul.f32 3.0, %v639_v15  ;;  %v528_v38 = vmul.f32 %v1094_v19, %v496_v13  ;;  %1105 = vpow2.f32 %v618_v23  ;;  %v701_v15 = vld [vmem:[%s1261_s23 + $0x8] sm:$0xff] }
  0x4a   : > { %v1098_v1 = vpop.eup %1097  ;;  %680 = vadd.xlane.f32.xlu1 %v975_v21  ;;  %v974_v39 = vadd.f32 -1.0, %v661_v26  ;;  %v559_v32 = vmul.f32 %v1004_v55, %v535_v42  ;;  %v648_v41 = vmul.f32 3.0, %v640_v22  ;;  %v641_v50 = vadd.f32 %v1096_v29, %v633_v30  ;;  %v703_v21 = vld [vmem:[%s1261_s23 + $0x18] sm:$0xff] }
  0x4b   : > { %v1016_v8 = vpack.c.bf16 %v557_v33, %v556_v7  ;;  %v663_v20 = vadd.f32 %v655_v58, %v647_v34  ;;  %v536_v36 = vadd.f32 %v528_v38, %v1325_v48  ;;  %v529_v40 = vmul.f32 %v1098_v1, %v497_v28  ;;  %v1100_v46 = vpop.eup %1099  ;;  %v704_v28 = vld [vmem:[%s1261_s23 + $0x20] sm:$0xff]  ;;  %v705_v34 = vld [vmem:[%s1261_s23 + $0x28] sm:$0xff]  ;;  %v707_v1 = vld [vmem:[%s1261_s23 + $0x38] sm:$0xff] }
  0x4c   : > { %678 = vadd.xlane.f32.xlu0 %v974_v39  ;;  %v1021_v47 = vpack.c.bf16 %v559_v32, %v558_v14  ;;  %v664_v27 = vadd.f32 %v656_v2, %v648_v41  ;;  %v649_v55 = vmul.f32 3.0, %v641_v50  ;;  %v972_v52 = vadd.f32 -1.0, %v483_v31  ;;  %v1102_v30 = vpop.eup %1101 }
  0x4d   : > { %1017 = vst [vmem:[%s1271_s16] sm:$0xff] %v1016_v8   ;;  %v976_v56 = vadd.f32 -1.0, %v663_v20  ;;  %v560_v37 = vmul.f32 %v1007_v63, %v536_v36  ;;  %v537_v48 = vadd.f32 %v529_v40, %v1344_v61  ;;  %v642_v58 = vadd.f32 %v1100_v46, %v634_v45 }
  0x4e   : > { %1036 = vst [vmem:[%s1271_s16 + $0x8] sm:$0xff] %v1021_v47   ;;  %v977_v59 = vadd.f32 -1.0, %v664_v27  ;;  %v665_v60 = vadd.f32 %v657_v16, %v649_v55  ;;  %v530_v62 = vmul.f32 %v1102_v30, %v498_v44  ;;  %v1104_v6 = vpop.eup %1103  ;;  %v635_v45 = vmul.f32 %v972_v52, %v972_v52 }
  0x4f   : > { %682 = vadd.xlane.f32.xlu1 %v976_v56  ;;  %v561_v2 = vmul.f32 %v1008_v12, %v537_v48  ;;  %v650_v3 = vmul.f32 3.0, %v642_v58  ;;  %v531_v16 = vmul.f32 %v1104_v6, %v499_v49  ;;  %v1012_v9 = vunpack.c.h.bf16 %v1035_v51 }
  0x50   : > { %684 = vadd.xlane.f32.xlu0 %v977_v59  ;;  %v978_v63 = vadd.f32 -1.0, %v665_v60  ;;  %v538_v61 = vadd.f32 %v530_v62, %v1351_v4  ;;  %v659_v4 = vsub.f32 -1.0986123, %v1365_v35  ;;  %v750_v35 = vsel %vm717_vm1, %v702_v54, 0.0 }
  0x51   : > { %v1026_v7 = vpack.c.bf16 %v561_v2, %v560_v37  ;;  %v666_v57 = vadd.f32 %v658_v43, %v650_v3  ;;  %v539_v25 = vadd.f32 %v531_v16, %v483_v31  ;;  %v700_v43 = vld [vmem:[%s1261_s23] sm:$0xff]  ;;  %v748_v23 = vsel %vm717_vm1, %v701_v15, 0.0  ;;  %v706_v31 = vld [vmem:[%s1261_s23 + $0x30] sm:$0xff] }
  0x52   : > { %v562_v53 = vmul.f32 %v1011_v0, %v538_v61  ;;  %v747_v24 = vsel %vm717_vm1, %v700_v43, 0.0  ;;  %v752_v42 = vsel %vm717_vm1, %v703_v21, 0.0  ;;  %v754_v29 = vsel %vm717_vm1, %v704_v28, 0.0 }
  0x53   : > { %v1106_v18 = vpop.eup %1105  ;;  %1037 = vst [vmem:[%s1271_s16 + $0x10] sm:$0xff] %v1026_v7   ;;  %686 = vadd.xlane.f32.xlu1 %v978_v63  ;;  %v979_v12 = vadd.f32 -1.0, %v666_v57  ;;  %v563_v10 = vmul.f32 %v1012_v9, %v539_v25  ;;  %v749_v19 = vadd.f32 %v748_v23, %v747_v24  ;;  %v756_v38 = vsel %vm717_vm1, %v705_v34, 0.0 }
  0x54   : > { %v643_v17 = vadd.f32 %v1106_v18, %v635_v45  ;;  %v758_v32 = vsel %vm717_vm1, %v706_v31, 0.0  ;;  %v760_v50 = vsel %vm717_vm1, %v707_v1, 0.0 }
  0x55   : > { %688 = vadd.xlane.f32.xlu0 %v979_v12  ;;  %v1031_v11 = vpack.c.bf16 %v563_v10, %v562_v53  ;;  %v751_v26 = vadd.f32 %v750_v35, %v749_v19 }
  0x56   : > { %v651_v5 = vmul.f32 3.0, %v643_v17 }
  0x57   : > { %1038 = vst [vmem:[%s1271_s16 + $0x18] sm:$0xff] %v1031_v11   ;;  %v753_v22 = vadd.f32 %v752_v42, %v751_v26 }
  0x58   : > { %v667_v13 = vadd.f32 %v659_v4, %v651_v5 }
  0x59   : > { %v755_v33 = vadd.f32 %v754_v29, %v753_v22  ;;  %v708_v29 = vld [vmem:[#allocation2] sm:$0x1] }
  0x5a   : > { %v980_v14 = vadd.f32 -1.0, %v667_v13 }
  0x5b   : > { %v757_v39 = vadd.f32 %v756_v38, %v755_v33  ;;  %v746_v33 = vld [vmem:[#allocation3] sm:$0x1] }
  0x5c   : > { %690 = vadd.xlane.f32.xlu1 %v980_v14 }
  0x5d   : > { %v759_v41 = vadd.f32 %v758_v32, %v757_v39 }
  0x5f   : > { %v761_v8 = vadd.f32 %v760_v50, %v759_v41 }
  0x61   : > { %762 = vadd.xlane.f32.xlu1 %v761_v8 }
  0xd4   : > { %v677_v20 = vpop.xlane.xlu0 %676 }
  0xd5   : > { %v692_v36 = vmul.f32 0.5, %v677_v20 }
  0xd7   : > { %v681_v40 = vpop.xlane.xlu1 %680  ;;  %v709_v47 = vmul.f32 %v700_v43, %v692_v36 }
  0xd8   : > { %v694_v44 = vmul.f32 0.5, %v681_v40 }
  0xd9   : > { %v679_v46 = vpop.xlane.xlu0 %678  ;;  %v718_v37 = vsel %vm717_vm1, %v709_v47, 0.0 }
  0xda   : > { %v693_v27 = vmul.f32 0.5, %v679_v46  ;;  %v711_v55 = vmul.f32 %v702_v54, %v694_v44 }
  0xdc   : > { %v710_v51 = vmul.f32 %v701_v15, %v693_v27  ;;  %v683_v52 = vpop.xlane.xlu1 %682  ;;  %v721_v62 = vsel %vm717_vm1, %v711_v55, 0.0 }
  0xdd   : > { %v695_v30 = vmul.f32 0.5, %v683_v52  ;;  %v685_v56 = vpop.xlane.xlu0 %684 }
  0xde   : > { %v719_v48 = vsel %vm717_vm1, %v710_v51, 0.0  ;;  %v696_v58 = vmul.f32 0.5, %v685_v56 }
  0xdf   : > { %v720_v59 = vadd.f32 %v719_v48, %v718_v37  ;;  %v712_v60 = vmul.f32 %v703_v21, %v695_v30 }
  0xe0   : > { %v713_v49 = vmul.f32 %v704_v28, %v696_v58  ;;  %v687_v2 = vpop.xlane.xlu1 %686 }
  0xe1   : > { %v722_v0 = vadd.f32 %v721_v62, %v720_v59  ;;  %v723_v3 = vsel %vm717_vm1, %v712_v60, 0.0  ;;  %v697_v6 = vmul.f32 0.5, %v687_v2 }
  0xe2   : > { %v725_v63 = vsel %vm717_vm1, %v713_v49, 0.0  ;;  %v689_v61 = vpop.xlane.xlu0 %688 }
  0xe3   : > { %v724_v45 = vadd.f32 %v723_v3, %v722_v0  ;;  %v714_v7 = vmul.f32 %v705_v34, %v697_v6  ;;  %v698_v57 = vmul.f32 0.5, %v689_v61 }
  0xe5   : > { %v726_v16 = vadd.f32 %v725_v63, %v724_v45  ;;  %v727_v9 = vsel %vm717_vm1, %v714_v7, 0.0  ;;  %v715_v18 = vmul.f32 %v706_v31, %v698_v57 }
  0xe7   : > { %v728_v53 = vadd.f32 %v727_v9, %v726_v16  ;;  %v729_v12 = vsel %vm717_vm1, %v715_v18, 0.0 }
  0xe9   : > { %v691_v25 = vpop.xlane.xlu1 %690  ;;  %v730_v4 = vadd.f32 %v729_v12, %v728_v53 }
  0xea   : > { %v699_v17 = vmul.f32 0.5, %v691_v25 }
  0xec   : > { %v716_v10 = vmul.f32 %v707_v1, %v699_v17 }
  0xee   : > { %v731_v5 = vsel %vm717_vm1, %v716_v10, 0.0  ;;  %v763_v43 = vpop.xlane.xlu1 %762 }
  0xef   : > { %v732_v11 = vadd.f32 %v731_v5, %v730_v4  ;;  %v764_v13 = vrot.slane %v763_v43, 4 }
  0xf1   : > { %733 = vadd.xlane.f32.xlu0 %v732_v11  ;;  %v765_v54 = vadd.f32 %v764_v13, %v763_v43 }
  0xf3   : > { %v766_v14 = vrot.slane %v765_v54, 2 }
  0xf5   : > { %v767_v23 = vadd.f32 %v766_v14, %v765_v54 }
  0xf7   : > { %v768_v26 = vrot.slane %v767_v23, 1 }
  0xf9   : > { %v769_v28 = vadd.f32 %v768_v26, %v767_v23 }
 0x17e   : > { %v734_v24 = vpop.xlane.xlu0 %733 }
 0x17f   : > { %v735_v15 = vrot.slane %v734_v24, 4 }
 0x181   : > { %v736_v35 = vadd.f32 %v735_v15, %v734_v24 }
 0x183   : > { %v737_v19 = vrot.slane %v736_v35, 2 }
 0x185   : > { %v738_v21 = vadd.f32 %v737_v19, %v736_v35 }
 0x187   : > { %v739_v42 = vrot.slane %v738_v21, 1 }
 0x189   : > { %v740_v22 = vadd.f32 %v739_v42, %v738_v21 }
 0x18b   : > { %1039 = vpush %v740_v22 }
 0x18c   : > { %1041 = vpush %v769_v28 }
 0x1bb   : > { %777 = sbr.rel (%p981_p10) target bundleno = 473 (0x1d9), region = 124 }
 0x1bc   : > { %s1040_s19 = spop %1039 }
 0x1bd   : > { %v742_v34 = vstv %s1040_s19  ;;  %s1042_s20 = spop %1041 }
 0x1be   : > { %v743_v38 = vadd.f32 %v742_v34, %v708_v29  ;;  %v771_v31 = vstv %s1042_s20 }
 0x1bf   : > { %v772_v1 = vadd.f32 %v771_v31, %v746_v33 }
 0x1c0   : > { %745 = vst.msk [vmem:[#allocation2] sm:$0x1] %vm744_vm2, %v743_v38 }
 0x1c1   : > { %773 = vst.msk [vmem:[#allocation3] sm:$0x1] %vm744_vm2, %v772_v1 }
 0x1c7   : > { %v778_v41 = vld [vmem:[#allocation2] sm:$0x1] }
 0x1c8   : > { %v779_v39 = vld [vmem:[#allocation3] sm:$0x1] }
 0x1c9   : > { %v780_v32 = vmax.f32 %v779_v39, 1.0 }
 0x1cb   : > { %1107 = vrcp.f32 %v780_v32 }
 0x1d5   : > { %v1108_v50 = vpop.eup %1107 }
 0x1d6   : > { %v782_v8 = vmul.f32 %v1108_v50, %v778_v41 }
 0x1d8   : > { %783 = vst.msk [vmem:[#allocation6] sm:$0x1] %vm744_vm2, %v782_v8 }
 0x1d9 PF: > { %p1047_p11 = scmp.eq.s32.totalorder %s1216_s24, 1  ;;  %s1164_s26 = smov [#allocation6]  }
 0x1da   : > { %s800_s27 = sshll.u32 %s1164_s26, 4  ;;  %s801_s27 = int_to_ptr.vmem [resolvable:$true] %s800_s27 }
 0x1db   : > { %s1109_s29 = scalar_lea.vmem %s801_s27, 16  ;;  %s1115_s30 = scalar_lea.vmem %s801_s27, 32 }
 0x1dc   : > { %p1110_p12 = scmp.ne.s32.totalorder %s801_s27, %s1109_s29  ;;  %p1116_p1 = scmp.lt.s32.totalorder %s801_s27, %s801_s27 }
 0x1dd   : > { %p1117_p2 = scmp.lt.s32.totalorder %s1115_s30, %s1109_s29 }
 0x1de   : > { %p1111_p13 = pnand %p1110_p12, %p1047_p11 }
 0x1df   : > { %p1118_p3 = por %p1117_p2, %p1116_p1 }
 0x1e0   : > { %p1112_p0 = pneg %p1111_p13 }
 0x1e2   : > { %p1119_p4 = pnand %p1118_p3, %p1112_p0 }
 0x1e4   : > { %1122 = shalt.err (!%p1119_p4)
}
 0x1e5   : > { %s1123_s9 = scalar_lea.hbm %s1480_s6, 16 }
 0x1e6   : > { %p1124_p5 = scmp.ne.s32.totalorder %s1480_s6, %s1123_s9  ;;  %p1129_p8 = scmp.lt.u32.totalorder %s1123_s9, %s1480_s6 }
 0x1e8   : > { %p1125_p6 = pnand %p1124_p5, %p1047_p11 }
 0x1ea   : > { %p1126_p7 = pneg %p1125_p6 }
 0x1ec   : > { %p1131_p9 = pnand %p1129_p8, %p1126_p7 }
 0x1ee   : > { %1134 = shalt.err (!%p1131_p9)
}
 0x1ef   : > { %1044 = dma.vmem_to_hbm [thread:$0]  (%p1047_p11), %s801_s27, 16, %s1480_s6, [#allocation7]  }
 0x1f0   : > { %1148 = dma.done.wait (%p1047_p11), [#allocation7], 16  }
 0x1f1   : > { %1150 = vsyncadd (%p1047_p11), [#allocation7], 4294967280 }
 0x1f2 PF: > { %p15_p10 = scmp.ge.s32.totalorder %s1219_s25, 4   ;;  %s1482_s21 = smov %s1157_s22 }
 0x1f3   : > { %s1483_s22 = smov %s1228_s28  ;;  %s1484_s23 = smov %s1219_s25 }
 0x1f4   :  { %17 = sbr.rel (!%p15_p10) target bundleno = 2 (0x2), region = 185 }
 0x1fb   :  { %821 = vsyncpa [#allocation7], 1 }
 0x1fc   :  { %823 = vsyncpa [#allocation7 + $0x1], 1 }

// kernel: transformer_vae_forward.51
= control target key start
LH: loop header
LB: loop body
LE: loop exit
PB: predicated region body
PF: predicated region fallthrough
CT: control target
= control target key end

     0   :  { %s846_s9 = smov 0   ;;  %s848_s10 = smov 0   ;;  %s937_s0 = inlined_call_operand.vmem [shape: bf16[128,128], index: 0, kind: input, shape index: {}]   ;;  %s938_s1 = inlined_call_operand.vmem [shape: bf16[128,256], index: 1, kind: input, shape index: {}]   ;;  %s939_s2 = inlined_call_operand.vmem [shape: bf16[128,256], index: 2, kind: output, shape index: {}]  }
   0x1   :  { %s850_s11 = smov 0  }
   0x2 LB: > { %s31_s12 = sadd.s32 1, %s824_s10  ;;  %p692_p0 = scmp.ge.s32.totalorder %s828_s11, 1  ;;  %s828_s11 = sphi %s850_s11, %s12_s11   ;;  %s824_s10 = sphi %s848_s10, %s941_s10   ;;  %s820_s9 = sphi %s846_s9, %s940_s9  }
   0x3   : > { %p33_p1 = scmp.ge.s32.totalorder %s31_s12, 2  ;;  %p158_p2 = scmp.lt.s32.totalorder %s828_s11, 3 }
   0x5   : > { %s943_s12 = smov (%p33_p1, %s31_s12), 0  ;;  %p159_p3 = pnand %p692_p0, %p158_p2 }
   0x6   : > { %v778_v0 = vld [vmem:[%s938_s1 + $0x4] ss:$8 sps:$4 sm:$0xff] (!%p159_p3)   ;;  %s693_s15 = sshll.u32 (!%p159_p3), %s820_s9, 3  ;;  %v780_v1 = vld [vmem:[%s938_s1] ss:$8 sps:$4 sm:$0xff] (!%p159_p3)   ;;  %v830_v2 = vmov (!%p159_p3), 0  }
   0x7   : > { %162 = sbr.rel (%p159_p3) target bundleno = 266 (0x10a), region = 28  ;;  %428 = vmatprep.mubr.bf16.mxu0 (!%p159_p3), %v830_v2  ;;  %448 = vmatprep.mubr.bf16.mxu1 (!%p159_p3), %v830_v2  ;;  %p199_p4 = scmp.lt.s32.totalorder (!%p159_p3), %s693_s15, 15  ;;  %v781_v3 = vld [vmem:[%s938_s1 + $0x14] ss:$8 sps:$4 sm:$0xff] (!%p159_p3)   ;;  %v783_v4 = vld [vmem:[%s938_s1 + $0x10] ss:$8 sps:$4 sm:$0xff] (!%p159_p3)  }
   0x8   : > { %396 = vmatprep.subr.bf16.mxu0 (!%p159_p3), %v778_v0  ;;  %737 = vmatprep.subr.bf16.mxu1 (!%p159_p3), %v778_v0  ;;  %v784_v5 = vld [vmem:[%s938_s1 + $0x24] ss:$8 sps:$4 sm:$0xff] (!%p159_p3)   ;;  %v786_v6 = vld [vmem:[%s938_s1 + $0x20] ss:$8 sps:$4 sm:$0xff] (!%p159_p3)   ;;  %v787_v7 = vld [vmem:[%s938_s1 + $0x34] ss:$8 sps:$4 sm:$0xff] (!%p159_p3)  }
   0x9   : > { %397 = vmatpush1.bf16.msra.mxu0 (!%p159_p3), %v780_v1  ;;  %745 = vmatpush1.bf16.msra.mxu1 (!%p159_p3), %v780_v1  ;;  %v789_v8 = vld [vmem:[%s938_s1 + $0x30] ss:$8 sps:$4 sm:$0xff] (!%p159_p3)   ;;  %v790_v9 = vld [vmem:[%s938_s1 + $0x44] ss:$8 sps:$4 sm:$0xff] (!%p159_p3)   ;;  %v792_v10 = vld [vmem:[%s938_s1 + $0x40] ss:$8 sps:$4 sm:$0xff] (!%p159_p3)  }
   0xa   : > { %398 = vmatprep.subr.bf16.mxu0 (!%p159_p3), %v781_v3  ;;  %738 = vmatprep.subr.bf16.mxu1 (!%p159_p3), %v781_v3  ;;  %v793_v11 = vld [vmem:[%s938_s1 + $0x54] ss:$8 sps:$4 sm:$0xff] (!%p159_p3)   ;;  %v795_v12 = vld [vmem:[%s938_s1 + $0x50] ss:$8 sps:$4 sm:$0xff] (!%p159_p3)   ;;  %v796_v13 = vld [vmem:[%s938_s1 + $0x64] ss:$8 sps:$4 sm:$0xff] (!%p159_p3)  }
   0xb   : > { %v798_v14 = vld [vmem:[%s938_s1 + $0x60] ss:$8 sps:$4 sm:$0xff] (!%p159_p3)   ;;  %v799_v15 = vld [vmem:[%s938_s1 + $0x74] ss:$8 sps:$4 sm:$0xff] (!%p159_p3)   ;;  %v801_v16 = vld [vmem:[%s938_s1 + $0x70] ss:$8 sps:$4 sm:$0xff] (!%p159_p3)  }
   0xd   : > { %399 = vmatpush1.bf16.msra.mxu0 (!%p159_p3), %v783_v4  ;;  %746 = vmatpush1.bf16.msra.mxu1 (!%p159_p3), %v783_v4 }
   0xe   : > { %s945_s15 = smov (!%p199_p4, %s693_s15), 15  ;;  %400 = vmatprep.subr.bf16.mxu0 %v784_v5  ;;  %739 = vmatprep.subr.bf16.mxu1 %v784_v5 }
   0xf   : > { %s694_s24 = sshll.u32 %s945_s15, 2  ;;  %s728_s26 = sshll.u32 %s945_s15, 3 }
  0x10   : > { %s891_s3 = scalar_lea.vmem %s937_s0, %s694_s24  ;;  %s228_s29 = scalar_lea.vmem %s939_s2, %s728_s26 }
  0x11   : > { %401 = vmatpush1.bf16.msra.mxu0 %v786_v6  ;;  %747 = vmatpush1.bf16.msra.mxu1 %v786_v6  ;;  %v802_v17 = vld [vmem:[%s891_s3] sm:$0xff]   ;;  %v803_v18 = vld [vmem:[%s891_s3 + $0x10] sm:$0xff]   ;;  %v804_v19 = vld [vmem:[%s891_s3 + $0x8] sm:$0xff]  }
  0x12   : > { %402 = vmatprep.subr.bf16.mxu0 %v787_v7  ;;  %740 = vmatprep.subr.bf16.mxu1 %v787_v7  ;;  %v805_v20 = vld [vmem:[%s891_s3 + $0x18] sm:$0xff]  }
  0x15   : > { %403 = vmatpush1.bf16.msra.mxu0 %v789_v8  ;;  %748 = vmatpush1.bf16.msra.mxu1 %v789_v8 }
  0x16   : > { %404 = vmatprep.subr.bf16.mxu0 %v790_v9  ;;  %741 = vmatprep.subr.bf16.mxu1 %v790_v9 }
  0x19   : > { %405 = vmatpush1.bf16.msra.mxu0 %v792_v10  ;;  %749 = vmatpush1.bf16.msra.mxu1 %v792_v10 }
  0x1a   : > { %406 = vmatprep.subr.bf16.mxu0 %v793_v11  ;;  %742 = vmatprep.subr.bf16.mxu1 %v793_v11 }
  0x1d   : > { %407 = vmatpush1.bf16.msra.mxu0 %v795_v12  ;;  %750 = vmatpush1.bf16.msra.mxu1 %v795_v12 }
  0x1e   : > { %408 = vmatprep.subr.bf16.mxu0 %v796_v13  ;;  %743 = vmatprep.subr.bf16.mxu1 %v796_v13 }
  0x21   : > { %409 = vmatpush1.bf16.msra.mxu0 %v798_v14  ;;  %751 = vmatpush1.bf16.msra.mxu1 %v798_v14 }
  0x22   : > { %410 = vmatprep.subr.bf16.mxu0 %v799_v15  ;;  %744 = vmatprep.subr.bf16.mxu1 %v799_v15 }
  0x25   : > { %411 = vmatpush1.bf16.msra.mxu0 %v801_v16  ;;  %752 = vmatpush1.bf16.msra.mxu1 %v801_v16 }
  0x28   : > { %429 = vmatmul.mubr.bf16.vlgmr.msra.gmra.mrb[0].mxu0 %v802_v17  ;;  %449 = vmatmul.mubr.bf16.vlgmr.msra.gmra.mrb[0].mxu1 %v803_v18 }
  0x29   : > { %438 = vmatprep.mubr.bf16.mxu0 %v830_v2  ;;  %458 = vmatprep.mubr.bf16.mxu1 %v830_v2 }
  0x30   : > { %439 = vmatmul.mubr.bf16.gmra.mrb[4].mxu0 %v804_v19  ;;  %459 = vmatmul.mubr.bf16.gmra.mrb[4].mxu1 %v805_v20 }
  0xfb   : > { %v430_v21 = vpop.f32.mrb[0].mxu0  ;;  %v450_v22 = vpop.f32.mrb[0].mxu1 }
  0xfc   : > { %v432_v23 = vpop.f32.mrb[1].mxu0  ;;  %v452_v24 = vpop.f32.mrb[1].mxu1 }
  0xfd   : > { %v729_v25 = vpack.c.bf16 %v432_v23, %v430_v21  ;;  %v733_v26 = vpack.c.bf16 %v452_v24, %v450_v22  ;;  %v434_v27 = vpop.f32.mrb[2].mxu0  ;;  %v454_v28 = vpop.f32.mrb[2].mxu1 }
  0xfe   : > { %v436_v29 = vpop.f32.mrb[3].mxu0  ;;  %v456_v30 = vpop.f32.mrb[3].mxu1 }
  0xff   : > { %568 = vst [vmem:[%s228_s29] sm:$0xff] %v729_v25  ;;  %572 = vst [vmem:[%s228_s29 + $0x20] sm:$0xff] %v733_v26  ;;  %v730_v31 = vpack.c.bf16 %v436_v29, %v434_v27  ;;  %v734_v32 = vpack.c.bf16 %v456_v30, %v454_v28 }
 0x101   : > { %569 = vst [vmem:[%s228_s29 + $0x8] sm:$0xff] %v730_v31  ;;  %573 = vst [vmem:[%s228_s29 + $0x28] sm:$0xff] %v734_v32 }
 0x103   : > { %v440_v33 = vpop.f32.mrb[4].mxu0  ;;  %v460_v34 = vpop.f32.mrb[4].mxu1 }
 0x104   : > { %v442_v35 = vpop.f32.mrb[5].mxu0  ;;  %v462_v36 = vpop.f32.mrb[5].mxu1 }
 0x105   : > { %v731_v37 = vpack.c.bf16 %v442_v35, %v440_v33  ;;  %v735_v38 = vpack.c.bf16 %v462_v36, %v460_v34  ;;  %v444_v39 = vpop.f32.mrb[6].mxu0  ;;  %v464_v40 = vpop.f32.mrb[6].mxu1 }
 0x106   : > { %v446_v41 = vpop.f32.mrb[7].mxu0  ;;  %v466_v42 = vpop.f32.mrb[7].mxu1 }
 0x107   : > { %570 = vst [vmem:[%s228_s29 + $0x10] sm:$0xff] %v731_v37  ;;  %574 = vst [vmem:[%s228_s29 + $0x30] sm:$0xff] %v735_v38  ;;  %v732_v43 = vpack.c.bf16 %v446_v41, %v444_v39  ;;  %v736_v44 = vpack.c.bf16 %v466_v42, %v464_v40 }
 0x109   : > { %571 = vst [vmem:[%s228_s29 + $0x18] sm:$0xff] %v732_v43  ;;  %575 = vst [vmem:[%s228_s29 + $0x38] sm:$0xff] %v736_v44 }
 0x10a PF: > { %s12_s11 = sadd.s32 1, %s828_s11   ;;  %s940_s9 = smov %s824_s10 }
 0x10b   : > { %p9_p5 = scmp.ge.s32.totalorder %s12_s11, 4   ;;  %s941_s10 = smov %s943_s12 }
 0x10d   :  { %11 = sbr.rel (!%p9_p5) target bundleno = 2 (0x2), region = 69 }

// kernel: transformer_vae_forward.49
= control target key start
LH: loop header
LB: loop body
LE: loop exit
PB: predicated region body
PF: predicated region fallthrough
CT: control target
= control target key end

     0   :  { %s1583_s21 = smov 0   ;;  %s1585_s22 = smov 0   ;;  %s1721_s0 = inlined_call_operand.vmem [shape: f32[2,1,64], index: 0, kind: input, shape index: {}]   ;;  %s1722_s1 = inlined_call_operand.vmem [shape: bf16[128,384], index: 1, kind: input, shape index: {}, may-alias: {1,2,3}]   ;;  %s1723_s2 = inlined_call_operand.vmem [shape: bf16[128,384], index: 2, kind: input, shape index: {}, may-alias: {1,2,3}]   ;;  %s1724_s3 = inlined_call_operand.vmem [shape: bf16[128,384], index: 3, kind: input, shape index: {}, may-alias: {1,2,3}]   ;;  %s1725_s4 = inlined_call_operand.vmem [shape: bf16[128,128], index: 4, kind: input, shape index: {}]   ;;  %s1726_s5 = inlined_call_operand.vmem [shape: bf16[128,128], index: 5, kind: input, shape index: {}]   ;;  %s1727_s6 = inlined_call_operand.vmem [shape: bf16[128,128], index: 6, kind: output, shape index: {}]  }
   0x1   :  { %s1587_s23 = smov 0  }
   0x2 LB: > { %s1599_s24 = sadd.s32 4294967295, %s1546_s23   ;;  %s1602_s25 = sadd.s32 1, %s1546_s23   ;;  %s1546_s23 = sphi %s1587_s23, %s1731_s23   ;;  %s1542_s22 = sphi %s1585_s22, %s1730_s22   ;;  %s1538_s21 = sphi %s1583_s21, %s1729_s21  }
   0x3   : > { %s46_s26 = ssub.s32 %s1546_s23, %s1602_s25  ;;  %s49_s27 = sadd.s32 1, %s1542_s22 }
   0x4   : > { %p47_p0 = scmp.eq.s32.totalorder %s46_s26, 0  ;;  %p56_p1 = scmp.ne.s32.totalorder %s1542_s22, %s1538_s21 }
   0x5   : > { %p57_p2 = scmp.eq.s32.totalorder %s1546_s23, 0  ;;  %p1246_p4 = scmp.ge.s32.totalorder %s1546_s23, 2 }
   0x6   : > { %s1611_s28 = scalar_select %p47_p0, %s1542_s22, %s49_s27  }
   0x7   : > { %p1613_p3 = por %p57_p2, %p56_p1  ;;  %210 = sbr.rel (%p1246_p4) target bundleno = 44 (0x2c), region = 20 }
   0xe   : > { %219 = sbr.rel (!%p1613_p3) target bundleno = 24 (0x18), region = 28  ;;  %s221_s30 = sand.u32 (%p1613_p3), 1, %s1542_s22  }
   0xf   : > { %s1447_s7 = smul.u32 (%p1613_p3), 96, %s1546_s23  ;;  %s1247_s8 = sshll.u32 (%p1613_p3), %s221_s30, 5 }
  0x10   : > { %s223_s12 = scalar_lea.vmem (%p1613_p3), [#allocation2], %s1247_s8 }
  0x11   : > { %s227_s11 = scalar_lea.vmem (%p1613_p3), %s1722_s1, %s1447_s7 }
  0x12   : > { %v243_v0 = vld [vmem:[%s227_s11] sm:$0xf] (%p1613_p3)  ;;  %v245_v1 = vld [vmem:[%s227_s11 + $0xc] sm:$0xf] (%p1613_p3)  ;;  %v247_v2 = vld [vmem:[%s227_s11 + $0x18] sm:$0xf] (%p1613_p3) }
  0x13   : > { %244 = vst [vmem:[%s223_s12] sm:$0xf] (%p1613_p3), %v243_v0  ;;  %246 = vst [vmem:[%s223_s12 + $0x4] sm:$0xf] (%p1613_p3), %v245_v1  ;;  %v249_v3 = vld [vmem:[%s227_s11 + $0x24] sm:$0xf] (%p1613_p3) }
  0x14   : > { %248 = vst [vmem:[%s223_s12 + $0x8] sm:$0xf] (%p1613_p3), %v247_v2  ;;  %v251_v4 = vld [vmem:[%s227_s11 + $0x30] sm:$0xf] (%p1613_p3)  ;;  %v253_v5 = vld [vmem:[%s227_s11 + $0x3c] sm:$0xf] (%p1613_p3) }
  0x15   : > { %250 = vst [vmem:[%s223_s12 + $0xc] sm:$0xf] %v249_v3  ;;  %252 = vst [vmem:[%s223_s12 + $0x10] sm:$0xf] %v251_v4  ;;  %v255_v6 = vld [vmem:[%s227_s11 + $0x48] sm:$0xf] }
  0x16   : > { %254 = vst [vmem:[%s223_s12 + $0x14] sm:$0xf] %v253_v5  ;;  %v257_v7 = vld [vmem:[%s227_s11 + $0x54] sm:$0xf]  ;;  %256 = vst [vmem:[%s223_s12 + $0x18] sm:$0xf] %v255_v6 }
  0x17   : > { %258 = vst [vmem:[%s223_s12 + $0x1c] sm:$0xf] %v257_v7 }
  0x18 PF: > { %297 = sbr.rel (!%p1613_p3) target bundleno = 34 (0x22), region = 69  ;;  %s299_s13 = sand.u32 (%p1613_p3), 1, %s1542_s22  }
  0x19   : > { %s1252_s14 = smul.u32 (%p1613_p3), 96, %s1546_s23  ;;  %s1251_s15 = sshll.u32 (%p1613_p3), %s299_s13, 5 }
  0x1a   : > { %s301_s19 = scalar_lea.vmem (%p1613_p3), [#allocation3], %s1251_s15 }
  0x1b   : > { %s1151_s18 = scalar_lea.vmem (%p1613_p3), %s1723_s2, %s1252_s14 }
  0x1c   : > { %v1253_v8 = vld [vmem:[%s1151_s18 + $0x4] sm:$0xf] (%p1613_p3)  ;;  %v1254_v9 = vld [vmem:[%s1151_s18 + $0x10] sm:$0xf] (%p1613_p3)  ;;  %v1255_v10 = vld [vmem:[%s1151_s18 + $0x1c] sm:$0xf] (%p1613_p3) }
  0x1d   : > { %323 = vst [vmem:[%s301_s19] sm:$0xf] (%p1613_p3), %v1253_v8  ;;  %325 = vst [vmem:[%s301_s19 + $0x4] sm:$0xf] (%p1613_p3), %v1254_v9  ;;  %v1256_v11 = vld [vmem:[%s1151_s18 + $0x28] sm:$0xf] (%p1613_p3) }
  0x1e   : > { %327 = vst [vmem:[%s301_s19 + $0x8] sm:$0xf] (%p1613_p3), %v1255_v10  ;;  %v1257_v12 = vld [vmem:[%s1151_s18 + $0x34] sm:$0xf] (%p1613_p3)  ;;  %v1258_v13 = vld [vmem:[%s1151_s18 + $0x40] sm:$0xf] (%p1613_p3) }
  0x1f   : > { %329 = vst [vmem:[%s301_s19 + $0xc] sm:$0xf] %v1256_v11  ;;  %331 = vst [vmem:[%s301_s19 + $0x10] sm:$0xf] %v1257_v12  ;;  %v1259_v14 = vld [vmem:[%s1151_s18 + $0x4c] sm:$0xf] }
  0x20   : > { %333 = vst [vmem:[%s301_s19 + $0x14] sm:$0xf] %v1258_v13  ;;  %v1260_v15 = vld [vmem:[%s1151_s18 + $0x58] sm:$0xf]  ;;  %335 = vst [vmem:[%s301_s19 + $0x18] sm:$0xf] %v1259_v14 }
  0x21   : > { %337 = vst [vmem:[%s301_s19 + $0x1c] sm:$0xf] %v1260_v15 }
  0x22 PF: > { %376 = sbr.rel (!%p1613_p3) target bundleno = 44 (0x2c), region = 110  ;;  %s378_s20 = sand.u32 (%p1613_p3), 1, %s1542_s22  }
  0x23   : > { %s1262_s26 = smul.u32 (%p1613_p3), 96, %s1546_s23  ;;  %s1261_s27 = sshll.u32 (%p1613_p3), %s378_s20, 5 }
  0x24   : > { %s380_s9 = scalar_lea.vmem (%p1613_p3), [#allocation4], %s1261_s27 }
  0x25   : > { %s1157_s8 = scalar_lea.vmem (%p1613_p3), %s1724_s3, %s1262_s26 }
  0x26   : > { %v1263_v16 = vld [vmem:[%s1157_s8 + $0x8] sm:$0xf] (%p1613_p3)  ;;  %v1264_v17 = vld [vmem:[%s1157_s8 + $0x14] sm:$0xf] (%p1613_p3)  ;;  %v1265_v18 = vld [vmem:[%s1157_s8 + $0x20] sm:$0xf] (%p1613_p3) }
  0x27   : > { %402 = vst [vmem:[%s380_s9] sm:$0xf] (%p1613_p3), %v1263_v16  ;;  %404 = vst [vmem:[%s380_s9 + $0x4] sm:$0xf] (%p1613_p3), %v1264_v17  ;;  %v1266_v19 = vld [vmem:[%s1157_s8 + $0x2c] sm:$0xf] (%p1613_p3) }
  0x28   : > { %406 = vst [vmem:[%s380_s9 + $0x8] sm:$0xf] (%p1613_p3), %v1265_v18  ;;  %v1267_v20 = vld [vmem:[%s1157_s8 + $0x38] sm:$0xf] (%p1613_p3)  ;;  %v1268_v21 = vld [vmem:[%s1157_s8 + $0x44] sm:$0xf] (%p1613_p3) }
  0x29   : > { %408 = vst [vmem:[%s380_s9 + $0xc] sm:$0xf] %v1266_v19  ;;  %410 = vst [vmem:[%s380_s9 + $0x10] sm:$0xf] %v1267_v20  ;;  %v1269_v22 = vld [vmem:[%s1157_s8 + $0x50] sm:$0xf] }
  0x2a   : > { %412 = vst [vmem:[%s380_s9 + $0x14] sm:$0xf] %v1268_v21  ;;  %v1270_v23 = vld [vmem:[%s1157_s8 + $0x5c] sm:$0xf]  ;;  %414 = vst [vmem:[%s380_s9 + $0x18] sm:$0xf] %v1269_v22 }
  0x2b   : > { %416 = vst [vmem:[%s380_s9 + $0x1c] sm:$0xf] %v1270_v23 }
  0x2c PF: > { %p1271_p5 = scmp.ge.s32.totalorder %s1546_s23, 1  ;;  %p463_p6 = scmp.lt.s32.totalorder %s1546_s23, 3 }
  0x2e   : > { %p464_p7 = pnand %p1271_p5, %p463_p6 }
  0x2f   : > { %s470_s29 = sand.u32 (!%p464_p7), 1, %s1538_s21   ;;  %p529_p8 = scmp.lt.s32.totalorder (!%p464_p7), %s1599_s24, 1  ;;  %v697_v32 = vlaneseq (!%p464_p7)  ;;  %vm737_vm1 = vcmask (!%p464_p7), 523264  }
  0x30   : > { %467 = sbr.rel (%p464_p7) target bundleno = 915 (0x393), region = 155  ;;  %s1642_s10 = sshll.u32 (!%p464_p7), %s470_s29, 5 }
  0x31   : > { %s479_s11 = scalar_lea.vmem (!%p464_p7), [#allocation3], %s1642_s10  ;;  %s472_s12 = scalar_lea.vmem (!%p464_p7), [#allocation2], %s1642_s10  ;;  %v698_v35 = vshrl.u32 (!%p464_p7), %v697_v32, 7  ;;  %v720_v39 = vand.u32 (!%p464_p7), 127, %v697_v32 }
  0x32   : > { %v1472_v24 = vld [vmem:[%s479_s11] sm:$0xff] (!%p464_p7)   ;;  %v1473_v25 = vld [vmem:[%s479_s11 + $0x8] sm:$0xff] (!%p464_p7)   ;;  %v1474_v27 = vld [vmem:[%s479_s11 + $0x10] sm:$0xff] (!%p464_p7)   ;;  %s486_s15 = scalar_lea.vmem (!%p464_p7), [#allocation4], %s1642_s10  ;;  %s1275_s23 = sshll.u32 (!%p464_p7), %s1599_s24, 3 }
  0x33   : > { %1391 = vmatprep.subr.bf16.mxu0 (!%p464_p7), %v1472_v24  ;;  %v1476_v26 = vld [vmem:[%s472_s12] sm:$0xff] (!%p464_p7)   ;;  %v1475_v28 = vld [vmem:[%s479_s11 + $0x18] sm:$0xff] (!%p464_p7)   ;;  %v1477_v29 = vld [vmem:[%s472_s12 + $0x8] sm:$0xff] (!%p464_p7)   ;;  %v699_v37 = vsub.s32 (!%p464_p7), 0, %v698_v35  ;;  %v713_v38 = vadd.s32 (!%p464_p7), 16, %v698_v35  ;;  %v714_v42 = vadd.s32 (!%p464_p7), 24, %v698_v35  ;;  %vm721_vm2 = vcmp.ge.s32.totalorder (!%p464_p7), %v698_v35, %v720_v39 }
  0x34   : > { %1392 = vmatpush3.bf16.xpose.msra.mxu0 (!%p464_p7), %v1472_v24  ;;  %1399 = vmatprep.mubr.bf16.mxu0 (!%p464_p7), %v1476_v26  ;;  %v1478_v30 = vld [vmem:[%s472_s12 + $0x10] sm:$0xff] (!%p464_p7)   ;;  %v1479_v31 = vld [vmem:[%s472_s12 + $0x18] sm:$0xff] (!%p464_p7)   ;;  %v712_v45 = vadd.s32 (!%p464_p7), 8, %v698_v35  ;;  %v715_v60 = vadd.s32 (!%p464_p7), 32, %v698_v35  ;;  %v716_v1 = vadd.s32 (!%p464_p7), 40, %v698_v35  ;;  %v717_v2 = vadd.s32 (!%p464_p7), 48, %v698_v35 }
  0x35   : > { %1393 = vmatprep.subr.bf16.mxu0 (!%p464_p7), %v1473_v25  ;;  %vm723_vm0 = vcmp.ge.s32.totalorder (!%p464_p7), %v713_v38, %v720_v39  ;;  %vm724_vm3 = vcmp.ge.s32.totalorder (!%p464_p7), %v714_v42, %v720_v39  ;;  %v718_v9 = vadd.s32 (!%p464_p7), 56, %v698_v35  ;;  %v1480_v23 = vld [vmem:[%s486_s15] sm:$0xff] (!%p464_p7)   ;;  %v1481_v24 = vld [vmem:[%s486_s15 + $0x8] sm:$0xff] (!%p464_p7)   ;;  %v1483_v26 = vld [vmem:[%s486_s15 + $0x18] sm:$0xff] (!%p464_p7)   ;;  %p536_p9 = scmp.lt.s32.totalorder (!%p464_p7), %s1275_s23, 15 }
  0x36   : > { %vm722_vm4 = vcmp.ge.s32.totalorder (!%p464_p7), %v712_v45, %v720_v39  ;;  %vm725_vm5 = vcmp.ge.s32.totalorder (!%p464_p7), %v715_v60, %v720_v39  ;;  %vm726_vm6 = vcmp.ge.s32.totalorder (!%p464_p7), %v716_v1, %v720_v39  ;;  %vm727_vm7 = vcmp.ge.s32.totalorder (!%p464_p7), %v717_v2, %v720_v39  ;;  %1407 = vmatprep.subr.bf16.mxu1 (!%p464_p7), %v1480_v23 }
  0x37   : > { %s530_s21 = scalar_select %p529_p8, %s1599_s24, 1  ;;  %vm728_vm8 = vcmp.ge.s32.totalorder %v718_v9, %v720_v39  ;;  %1408 = vmatpush3.bf16.msra.mxu1 %v1480_v23  ;;  %v1486_v9 = vld [vmem:[%s1725_s4 + $0x10] sm:$0xff]  }
  0x38   : > { %1409 = vmatprep.subr.bf16.mxu1 %v1481_v24  ;;  %s1733_s23 = smov (!%p536_p9, %s1275_s23), 15 }
  0x39   : > { %s531_s14 = scalar_lea.vmem %s1721_s0, %s530_s21  ;;  %s1276_s13 = sshll.u32 %s1733_s23, 2 }
  0x3a   : > { %v693_v33 = vld [vmem:[%s531_s14] sm:$0x1]  ;;  %s539_s16 = scalar_lea.vmem %s1726_s5, %s1276_s13  ;;  %s545_s18 = scalar_lea.vmem %s1727_s6, %s1276_s13 }
  0x3b   : > { %v694_v34 = vsub.f32 1.0, %v693_v33  ;;  %1410 = vmatpush3.bf16.msra.mxu1 %v1481_v24 }
  0x3c   : > { %1394 = vmatpush3.bf16.xpose.msra.mxu0 %v1473_v25  ;;  %v1482_v25 = vld [vmem:[%s486_s15 + $0x10] sm:$0xff]  }
  0x3d   : > { %1395 = vmatprep.subr.bf16.mxu0 %v1474_v27  ;;  %v695_v36 = vmul.f32 -1e+09, %v694_v34  ;;  %1411 = vmatprep.subr.bf16.mxu1 %v1482_v25 }
  0x3f   : > { %v700_v40 = vrot.slane %v695_v36, %v699_v37  ;;  %1412 = vmatpush3.bf16.msra.mxu1 %v1482_v25 }
  0x40   : > { %1413 = vmatprep.subr.bf16.mxu1 %v1483_v26 }
  0x43   : > { %1414 = vmatpush3.bf16.msra.mxu1 %v1483_v26 }
  0x44   : > { %1396 = vmatpush3.bf16.xpose.msra.mxu0 %v1474_v27 }
  0x45   : > { %1397 = vmatprep.subr.bf16.mxu0 %v1475_v28 }
  0x4c   : > { %1398 = vmatpush3.bf16.xpose.msra.mxu0 %v1475_v28 }
  0x53   : > { %1400 = vmatmul.mubr.bf16.vlgmr.msra.gmra.mrb[0].mxu0 %v1477_v29 }
  0x54   : > { %1403 = vmatprep.mubr.bf16.mxu0 %v1478_v30 }
  0x5b   : > { %1404 = vmatmul.mubr.bf16.gmra.mrb[4].mxu0 %v1479_v31 }
 0x126   : > { %v1401_v41 = vpop.f32.mrb[0].mxu0 }
 0x127   : > { %v687_v43 = vmul.f32 0.088388346, %v1401_v41  ;;  %v654_v44 = vpop.f32.mrb[1].mxu0 }
 0x128   : > { %v685_v46 = vmul.f32 0.088388346, %v654_v44  ;;  %v1402_v47 = vpop.f32.mrb[2].mxu0 }
 0x129   : > { %v704_v48 = vadd.f32 %v700_v40, %v687_v43  ;;  %v688_v49 = vmul.f32 0.088388346, %v1402_v47  ;;  %v657_v50 = vpop.f32.mrb[3].mxu0 }
 0x12a   : > { %v702_v51 = vadd.f32 %v700_v40, %v685_v46  ;;  %v686_v52 = vmul.f32 0.088388346, %v657_v50 }
 0x12b   : > { %v705_v53 = vadd.f32 %v700_v40, %v688_v49  ;;  %v1651_v54 = vsel %vm723_vm0, %v704_v48, -1e+09 }
 0x12c   : > { %v703_v55 = vadd.f32 %v700_v40, %v686_v52  ;;  %v744_v56 = vsel %vm737_vm1, %v1651_v54, -inf  ;;  %v729_v57 = vsel %vm721_vm2, %v702_v51, -1e+09 }
 0x12d   : > { %745 = vmax.xlane.f32.xlu1 %v744_v56  ;;  %v738_v58 = vsel %vm737_vm1, %v729_v57, -inf  ;;  %v1656_v59 = vsel %vm724_vm3, %v705_v53, -1e+09 }
 0x12e   : > { %739 = vmax.xlane.f32.xlu0 %v738_v58  ;;  %v1405_v61 = vpop.f32.mrb[4].mxu0  ;;  %v730_v62 = vsel %vm722_vm4, %v703_v55, -1e+09  ;;  %v747_v5 = vsel %vm737_vm1, %v1656_v59, -inf }
 0x12f   : > { %v691_v63 = vmul.f32 0.088388346, %v1405_v61  ;;  %v670_v0 = vpop.f32.mrb[5].mxu0  ;;  %v741_v8 = vsel %vm737_vm1, %v730_v62, -inf }
 0x130   : > { %v689_v3 = vmul.f32 0.088388346, %v670_v0  ;;  %v1406_v4 = vpop.f32.mrb[6].mxu0 }
 0x131   : > { %v692_v6 = vmul.f32 0.088388346, %v1406_v4  ;;  %748 = vmax.xlane.f32.xlu1 %v747_v5  ;;  %v673_v7 = vpop.f32.mrb[7].mxu0  ;;  %v708_v10 = vadd.f32 %v700_v40, %v691_v63 }
 0x132   : > { %v706_v11 = vadd.f32 %v700_v40, %v689_v3  ;;  %v690_v12 = vmul.f32 0.088388346, %v673_v7  ;;  %742 = vmax.xlane.f32.xlu0 %v741_v8  ;;  %v1484_v7 = vld [vmem:[%s1725_s4] sm:$0xff]   ;;  %v1485_v8 = vld [vmem:[%s1725_s4 + $0x8] sm:$0xff]  }
 0x133   : > { %v709_v13 = vadd.f32 %v700_v40, %v692_v6  ;;  %v735_v18 = vsel %vm727_vm7, %v708_v10, -1e+09  ;;  %1423 = vmatprep.subr.bf16.mxu1 %v1484_v7  ;;  %v1487_v10 = vld [vmem:[%s1725_s4 + $0x18] sm:$0xff]  }
 0x134   : > { %v707_v14 = vadd.f32 %v700_v40, %v690_v12  ;;  %v733_v15 = vsel %vm725_vm5, %v706_v11, -1e+09  ;;  %v756_v21 = vsel %vm737_vm1, %v735_v18, -inf  ;;  %v1488_v11 = vld [vmem:[%s1725_s4 + $0x20] sm:$0xff]   ;;  %v1489_v12 = vld [vmem:[%s1725_s4 + $0x28] sm:$0xff]  }
 0x135   : > { %v750_v16 = vsel %vm737_vm1, %v733_v15, -inf  ;;  %v736_v20 = vsel %vm728_vm8, %v709_v13, -1e+09  ;;  %v1490_v13 = vld [vmem:[%s1725_s4 + $0x30] sm:$0xff]  }
 0x136   : > { %751 = vmax.xlane.f32.xlu0 %v750_v16  ;;  %v734_v17 = vsel %vm726_vm6, %v707_v14, -1e+09  ;;  %v759_v22 = vsel %vm737_vm1, %v736_v20, -inf  ;;  %v1491_v14 = vld [vmem:[%s1725_s4 + $0x38] sm:$0xff]  }
 0x137   : > { %v753_v19 = vsel %vm737_vm1, %v734_v17, -inf }
 0x138   : > { %754 = vmax.xlane.f32.xlu1 %v753_v19 }
 0x13a   : > { %757 = vmax.xlane.f32.xlu0 %v756_v21 }
 0x13c   : > { %760 = vmax.xlane.f32.xlu1 %v759_v22 }
 0x1ba   : > { %v746_v27 = vpop.xlane.xlu1 %745 }
 0x1bb   : > { %v764_v28 = vsub.f32 %v1651_v54, %v746_v27  ;;  %v740_v29 = vpop.xlane.xlu0 %739 }
 0x1bc   : > { %v762_v30 = vsub.f32 %v729_v57, %v740_v29 }
 0x1bd   : > { %v774_v31 = vmul.f32 1.442695, %v764_v28 }
 0x1be   : > { %v770_v32 = vmul.f32 1.442695, %v762_v30  ;;  %v749_v33 = vpop.xlane.xlu1 %748 }
 0x1bf   : > { %v765_v34 = vsub.f32 %v1656_v59, %v749_v33  ;;  %v743_v35 = vpop.xlane.xlu0 %742 }
 0x1c0   : > { %1492 = vpow2.f32 %v770_v32  ;;  %v763_v36 = vsub.f32 %v730_v62, %v743_v35 }
 0x1c1   : > { %v776_v37 = vmul.f32 1.442695, %v765_v34  ;;  %1494 = vpow2.f32 %v774_v31 }
 0x1c2   : > { %v772_v38 = vmul.f32 1.442695, %v763_v36 }
 0x1c3   : > { %1496 = vpow2.f32 %v776_v37  ;;  %v752_v39 = vpop.xlane.xlu0 %751 }
 0x1c4   : > { %1498 = vpow2.f32 %v772_v38  ;;  %v766_v40 = vsub.f32 %v733_v15, %v752_v39 }
 0x1c5   : > { %v755_v41 = vpop.xlane.xlu1 %754 }
 0x1c6   : > { %v778_v42 = vmul.f32 1.442695, %v766_v40  ;;  %v767_v43 = vsub.f32 %v734_v17, %v755_v41 }
 0x1c7   : > { %v758_v44 = vpop.xlane.xlu0 %757 }
 0x1c8   : > { %1500 = vpow2.f32 %v778_v42  ;;  %v780_v45 = vmul.f32 1.442695, %v767_v43  ;;  %v768_v46 = vsub.f32 %v735_v18, %v758_v44 }
 0x1c9   : > { %v761_v47 = vpop.xlane.xlu1 %760 }
 0x1ca   : > { %v1493_v48 = vpop.eup %1492  ;;  %1502 = vpow2.f32 %v780_v45  ;;  %v782_v49 = vmul.f32 1.442695, %v768_v46  ;;  %v769_v50 = vsub.f32 %v736_v20, %v761_v47 }
 0x1cb   : > { %v786_v51 = vsel %vm737_vm1, %v1493_v48, 0.0  ;;  %v1495_v52 = vpop.eup %1494 }
 0x1cc   : > { %1504 = vpow2.f32 %v782_v49  ;;  %v784_v53 = vmul.f32 1.442695, %v769_v50  ;;  %787 = vadd.xlane.f32.xlu0 %v786_v51  ;;  %v792_v56 = vsel %vm737_vm1, %v1495_v52, 0.0  ;;  %v1357_v51 = vld [vmem:[%s539_s16 + $0x8] sm:$0xff]  }
 0x1cd   : > { %v1497_v54 = vpop.eup %1496 }
 0x1ce   : > { %v1499_v55 = vpop.eup %1498  ;;  %1506 = vpow2.f32 %v784_v53  ;;  %v811_v59 = vpack.c.bf16 %v1497_v54, %v1495_v52  ;;  %v795_v62 = vsel %vm737_vm1, %v1497_v54, 0.0  ;;  %v1322_v52 = vld [vmem:[%s539_s16] sm:$0xff]   ;;  %v1327_v53 = vunpack.c.l.bf16 %v1357_v51 }
 0x1cf   : > { %v789_v57 = vsel %vm737_vm1, %v1499_v55, 0.0  ;;  %v810_v58 = vpack.c.bf16 %v1499_v55, %v1493_v48  ;;  %v1328_v54 = vunpack.c.h.bf16 %v1357_v51 }
 0x1d0   : > { %793 = vadd.xlane.f32.xlu0 %v792_v56  ;;  %790 = vadd.xlane.f32.xlu1 %v789_v57  ;;  %v1323_v56 = vunpack.c.l.bf16 %v1322_v52  ;;  %v1324_v57 = vunpack.c.h.bf16 %v1322_v52 }
 0x1d1   : > { %1415 = vmatprep.mubr.msk.bf16.mxu1 %vm737_vm1, %v810_v58 }
 0x1d2   : > { %v1501_v60 = vpop.eup %1500  ;;  %1416 = vmatmul.mubr.msk.bf16.vlgmr.msra.gmra.mrb[0].mxu1 %vm737_vm1, %v811_v59 }
 0x1d3   : > { %v798_v61 = vsel %vm737_vm1, %v1501_v60, 0.0  ;;  %1424 = vmatpush3.bf16.msra.mxu1 %v1484_v7 }
 0x1d4   : > { %v1503_v63 = vpop.eup %1502  ;;  %799 = vadd.xlane.f32.xlu0 %v798_v61  ;;  %796 = vadd.xlane.f32.xlu1 %v795_v62 }
 0x1d5   : > { %v812_v0 = vpack.c.bf16 %v1503_v63, %v1501_v60  ;;  %v801_v3 = vsel %vm737_vm1, %v1503_v63, 0.0  ;;  %1425 = vmatprep.subr.bf16.mxu1 %v1485_v8 }
 0x1d6   : > { %v1505_v1 = vpop.eup %1504 }
 0x1d7   : > { %1419 = vmatprep.mubr.msk.bf16.mxu1 %vm737_vm1, %v812_v0  ;;  %v804_v2 = vsel %vm737_vm1, %v1505_v1, 0.0  ;;  %1426 = vmatpush3.bf16.msra.mxu1 %v1485_v8 }
 0x1d8   : > { %v1507_v4 = vpop.eup %1506  ;;  %805 = vadd.xlane.f32.xlu0 %v804_v2  ;;  %802 = vadd.xlane.f32.xlu1 %v801_v3  ;;  %v1359_v2 = vld [vmem:[%s539_s16 + $0x18] sm:$0xff]  }
 0x1d9   : > { %v813_v5 = vpack.c.bf16 %v1507_v4, %v1505_v1  ;;  %v807_v6 = vsel %vm737_vm1, %v1507_v4, 0.0  ;;  %1427 = vmatprep.subr.bf16.mxu1 %v1486_v9  ;;  %v1358_v4 = vld [vmem:[%s539_s16 + $0x10] sm:$0xff]  }
 0x1da   : > { %v1331_v8 = vunpack.c.l.bf16 %v1358_v4 }
 0x1db   : > { %1420 = vmatmul.mubr.msk.bf16.gmra.mrb[4].mxu1 %vm737_vm1, %v813_v5  ;;  %v1335_v5 = vunpack.c.l.bf16 %v1359_v2 }
 0x1dc   : > { %808 = vadd.xlane.f32.xlu1 %v807_v6  ;;  %1428 = vmatpush3.bf16.msra.mxu1 %v1486_v9  ;;  %v1336_v6 = vunpack.c.h.bf16 %v1359_v2  ;;  %v1332_v9 = vunpack.c.h.bf16 %v1358_v4 }
 0x1dd   : > { %1429 = vmatprep.subr.bf16.mxu1 %v1487_v10 }
 0x1e0   : > { %1430 = vmatpush3.bf16.msra.mxu1 %v1487_v10 }
 0x1e1   : > { %1431 = vmatprep.subr.bf16.mxu1 %v1488_v11 }
 0x1e4   : > { %1432 = vmatpush3.bf16.msra.mxu1 %v1488_v11 }
 0x1e5   : > { %1433 = vmatprep.subr.bf16.mxu1 %v1489_v12 }
 0x1e8   : > { %1434 = vmatpush3.bf16.msra.mxu1 %v1489_v12 }
 0x1e9   : > { %1435 = vmatprep.subr.bf16.mxu1 %v1490_v13 }
 0x1ec   : > { %1436 = vmatpush3.bf16.msra.mxu1 %v1490_v13 }
 0x1ed   : > { %1437 = vmatprep.subr.bf16.mxu1 %v1491_v14 }
 0x1f0   : > { %1438 = vmatpush3.bf16.msra.mxu1 %v1491_v14 }
 0x259   : > { %v788_v15 = vpop.xlane.xlu0 %787 }
 0x25a   : > { %1508 = vrcp.f32 %v788_v15 }
 0x25d   : > { %v791_v16 = vpop.xlane.xlu1 %790  ;;  %v794_v17 = vpop.xlane.xlu0 %793 }
 0x25e   : > { %1510 = vrcp.f32 %v794_v17 }
 0x261   : > { %v797_v18 = vpop.xlane.xlu1 %796  ;;  %v800_v19 = vpop.xlane.xlu0 %799 }
 0x262   : > { %1512 = vrcp.f32 %v797_v18 }
 0x263   : > { %1514 = vrcp.f32 %v791_v16 }
 0x264   : > { %1516 = vrcp.f32 %v800_v19  ;;  %v1509_v23 = vpop.eup %1508 }
 0x265   : > { %v803_v20 = vpop.xlane.xlu1 %802  ;;  %v806_v21 = vpop.xlane.xlu0 %805 }
 0x266   : > { %1518 = vrcp.f32 %v806_v21 }
 0x268   : > { %v1511_v25 = vpop.eup %1510 }
 0x269   : > { %v809_v22 = vpop.xlane.xlu1 %808 }
 0x26a   : > { %1520 = vrcp.f32 %v809_v22 }
 0x26b   : > { %1522 = vrcp.f32 %v803_v20 }
 0x26c   : > { %v1513_v27 = vpop.eup %1512 }
 0x26d   : > { %v1515_v29 = vpop.eup %1514 }
 0x26e   : > { %v1517_v37 = vpop.eup %1516 }
 0x270   : > { %v1519_v39 = vpop.eup %1518 }
 0x274   : > { %v1521_v41 = vpop.eup %1520 }
 0x275   : > { %v1523_v43 = vpop.eup %1522 }
 0x2a5   : > { %v1417_v24 = vpop.f32.mrb[0].mxu1 }
 0x2a6   : > { %v884_v26 = vpop.f32.mrb[1].mxu1  ;;  %v920_v30 = vmul.f32 %v1511_v25, %v1417_v24 }
 0x2a7   : > { %v1418_v28 = vpop.f32.mrb[2].mxu1  ;;  %v916_v33 = vmul.f32 %v1509_v23, %v884_v26 }
 0x2a8   : > { %v922_v31 = vmul.f32 %v1513_v27, %v1418_v28  ;;  %v887_v32 = vpop.f32.mrb[3].mxu1 }
 0x2a9   : > { %v918_v34 = vmul.f32 %v1515_v29, %v887_v32 }
 0x2aa   : > { %v932_v35 = vpack.c.bf16 %v922_v31, %v920_v30 }
 0x2ab   : > { %v931_v36 = vpack.c.bf16 %v918_v34, %v916_v33 }
 0x2ad   : > { %1439 = vmatprep.mubr.bf16.mxu1 %v931_v36 }
 0x2ae   : > { %v1421_v38 = vpop.f32.mrb[4].mxu1  ;;  %1440 = vmatmul.mubr.bf16.vlgmr.msra.gmra.mrb[8].mxu1 %v932_v35 }
 0x2af   : > { %v900_v40 = vpop.f32.mrb[5].mxu1  ;;  %v928_v44 = vmul.f32 %v1519_v39, %v1421_v38 }
 0x2b0   : > { %v1422_v42 = vpop.f32.mrb[6].mxu1  ;;  %v924_v47 = vmul.f32 %v1517_v37, %v900_v40 }
 0x2b1   : > { %v930_v45 = vmul.f32 %v1521_v41, %v1422_v42  ;;  %v903_v46 = vpop.f32.mrb[7].mxu1 }
 0x2b2   : > { %v926_v48 = vmul.f32 %v1523_v43, %v903_v46 }
 0x2b3   : > { %v934_v49 = vpack.c.bf16 %v930_v45, %v928_v44 }
 0x2b4   : > { %v933_v50 = vpack.c.bf16 %v926_v48, %v924_v47 }
 0x2b6   : > { %1443 = vmatprep.mubr.bf16.mxu1 %v933_v50 }
 0x2b7   : > { %1444 = vmatmul.mubr.bf16.gmra.mrb[12].mxu1 %v934_v49 }
 0x381   : > { %v1441_v55 = vpop.f32.mrb[8].mxu1 }
 0x382   : > { %v1049_v58 = vpop.f32.mrb[9].mxu1  ;;  %v1058_v60 = vadd.f32 %v1441_v55, %v1327_v53 }
 0x383   : > { %v1442_v59 = vpop.f32.mrb[10].mxu1  ;;  %v1050_v63 = vadd.f32 %v1323_v56, %v1049_v58 }
 0x384   : > { %v1061_v61 = vadd.f32 %v1442_v59, %v1328_v54  ;;  %v1052_v62 = vpop.f32.mrb[11].mxu1 }
 0x385   : > { %v1053_v0 = vadd.f32 %v1324_v57, %v1052_v62 }
 0x386   : > { %v1345_v1 = vpack.c.bf16 %v1061_v61, %v1058_v60 }
 0x387   : > { %v1340_v3 = vpack.c.bf16 %v1053_v0, %v1050_v63 }
 0x388   : > { %1360 = vst [vmem:[%s545_s18 + $0x8] sm:$0xff] %v1345_v1  }
 0x389   : > { %1341 = vst [vmem:[%s545_s18] sm:$0xff] %v1340_v3  }
 0x38a   : > { %v1445_v7 = vpop.f32.mrb[12].mxu1 }
 0x38b   : > { %v1065_v10 = vpop.f32.mrb[13].mxu1  ;;  %v1074_v12 = vadd.f32 %v1445_v7, %v1335_v5 }
 0x38c   : > { %v1446_v11 = vpop.f32.mrb[14].mxu1  ;;  %v1066_v15 = vadd.f32 %v1331_v8, %v1065_v10 }
 0x38d   : > { %v1077_v13 = vadd.f32 %v1446_v11, %v1336_v6  ;;  %v1068_v14 = vpop.f32.mrb[15].mxu1 }
 0x38e   : > { %v1069_v16 = vadd.f32 %v1332_v9, %v1068_v14 }
 0x38f   : > { %v1355_v17 = vpack.c.bf16 %v1077_v13, %v1074_v12 }
 0x390   : > { %v1350_v18 = vpack.c.bf16 %v1069_v16, %v1066_v15 }
 0x391   : > { %1362 = vst [vmem:[%s545_s18 + $0x18] sm:$0xff] %v1355_v17  }
 0x392   : > { %1361 = vst [vmem:[%s545_s18 + $0x10] sm:$0xff] %v1350_v18  }
 0x393 PF: > { %p13_p10 = scmp.ge.s32.totalorder %s1602_s25, 4   ;;  %s1729_s21 = smov %s1542_s22 }
 0x394   : > { %s1730_s22 = smov %s1611_s28  ;;  %s1731_s23 = smov %s1602_s25 }
 0x395   :  { %15 = sbr.rel (!%p13_p10) target bundleno = 2 (0x2), region = 224 }

// kernel: transformer_vae_forward.50
= control target key start
LH: loop header
LB: loop body
LE: loop exit
PB: predicated region body
PF: predicated region fallthrough
CT: control target
= control target key end

     0   :  { %s798_s12 = smov 0   ;;  %s800_s13 = smov 0   ;;  %s905_s0 = inlined_call_operand.vmem [shape: bf16[128,128], index: 0, kind: input, shape index: {}]   ;;  %s906_s1 = inlined_call_operand.vmem [shape: f32[1,128], index: 1, kind: input, shape index: {}]   ;;  %s907_s2 = inlined_call_operand.vmem [shape: bf16[128,128], index: 2, kind: input, shape index: {}]   ;;  %s908_s3 = inlined_call_operand.vmem [shape: bf16[128,128], index: 3, kind: output, shape index: {}]  }
   0x1   :  { %s802_s14 = smov 0  }
   0x2 LB: > { %s25_s15 = sadd.s32 1, %s772_s13  ;;  %p580_p0 = scmp.ge.s32.totalorder %s776_s14, 1  ;;  %s776_s14 = sphi %s802_s14, %s13_s14   ;;  %s772_s13 = sphi %s800_s13, %s910_s13   ;;  %s768_s12 = sphi %s798_s12, %s909_s12  }
   0x3   : > { %p27_p1 = scmp.ge.s32.totalorder %s25_s15, 2  ;;  %p161_p2 = scmp.lt.s32.totalorder %s776_s14, 3 }
   0x5   : > { %s912_s15 = smov (%p27_p1, %s25_s15), 0  ;;  %p162_p3 = pnand %p580_p0, %p161_p2 }
   0x6   : > { %s581_s16 = sshll.u32 (!%p162_p3), %s768_s12, 3  ;;  %v730_v0 = vld [vmem:[%s907_s2] sm:$0xff] (!%p162_p3)   ;;  %v731_v21 = vld [vmem:[%s907_s2 + $0x8] sm:$0xff] (!%p162_p3)   ;;  %v732_v22 = vld [vmem:[%s907_s2 + $0x10] sm:$0xff] (!%p162_p3)  }
   0x7   : > { %165 = sbr.rel (%p162_p3) target bundleno = 416 (0x1a0), region = 32  ;;  %p193_p4 = scmp.lt.s32.totalorder (!%p162_p3), %s581_s16, 15  ;;  %666 = vmatprep.subr.bf16.mxu0 (!%p162_p3), %v730_v0  ;;  %690 = vmatprep.subr.bf16.mxu1 (!%p162_p3), %v730_v0  ;;  %v733_v23 = vld [vmem:[%s907_s2 + $0x18] sm:$0xff] (!%p162_p3)   ;;  %v734_v24 = vld [vmem:[%s907_s2 + $0x20] sm:$0xff] (!%p162_p3)   ;;  %v735_v25 = vld [vmem:[%s907_s2 + $0x28] sm:$0xff] (!%p162_p3)  }
   0x8   : > { %667 = vmatpush3.bf16.msra.mxu0 (!%p162_p3), %v730_v0  ;;  %698 = vmatpush3.bf16.msra.mxu1 (!%p162_p3), %v730_v0  ;;  %v736_v26 = vld [vmem:[%s907_s2 + $0x30] sm:$0xff] (!%p162_p3)   ;;  %v737_v27 = vld [vmem:[%s907_s2 + $0x38] sm:$0xff] (!%p162_p3)   ;;  %v585_v57 = vld [vmem:[%s906_s1] ss:$0 sm:$0xff] (!%p162_p3) }
   0x9   : > { %668 = vmatprep.subr.bf16.mxu0 (!%p162_p3), %v731_v21  ;;  %691 = vmatprep.subr.bf16.mxu1 (!%p162_p3), %v731_v21 }
   0xc   : > { %669 = vmatpush3.bf16.msra.mxu0 (!%p162_p3), %v731_v21  ;;  %699 = vmatpush3.bf16.msra.mxu1 (!%p162_p3), %v731_v21 }
   0xd   : > { %670 = vmatprep.subr.bf16.mxu0 (!%p162_p3), %v732_v22  ;;  %692 = vmatprep.subr.bf16.mxu1 (!%p162_p3), %v732_v22 }
   0xe   : > { %s914_s16 = smov (!%p193_p4, %s581_s16), 15 }
   0xf   : > { %s582_s19 = sshll.u32 %s914_s16, 2 }
  0x10   : > { %s196_s22 = scalar_lea.vmem %s905_s0, %s582_s19  ;;  %671 = vmatpush3.bf16.msra.mxu0 %v732_v22  ;;  %700 = vmatpush3.bf16.msra.mxu1 %v732_v22  ;;  %s209_s18 = scalar_lea.vmem %s908_s3, %s582_s19 }
  0x11   : > { %v649_v1 = vld [vmem:[%s196_s22 + $0x10] sm:$0xff]   ;;  %v613_v2 = vld [vmem:[%s196_s22] sm:$0xff]   ;;  %v648_v7 = vld [vmem:[%s196_s22 + $0x8] sm:$0xff]   ;;  %672 = vmatprep.subr.bf16.mxu0 %v733_v23  ;;  %693 = vmatprep.subr.bf16.mxu1 %v733_v23 }
  0x12   : > { %v827_v3 = vunpack.c.l.bf16 %v649_v1  ;;  %v829_v4 = vunpack.c.l.bf16 %v613_v2  ;;  %v831_v5 = vunpack.c.h.bf16 %v649_v1  ;;  %v833_v6 = vunpack.c.h.bf16 %v613_v2  ;;  %v650_v14 = vld [vmem:[%s196_s22 + $0x18] sm:$0xff]  }
  0x13   : > { %v843_v12 = vunpack.c.h.bf16 %v648_v7  ;;  %v845_v13 = vunpack.c.l.bf16 %v648_v7  ;;  %v851_v17 = vunpack.c.h.bf16 %v650_v14  ;;  %v853_v18 = vunpack.c.l.bf16 %v650_v14 }
  0x14   : > { %v236_v8 = vmul.f32 %v827_v3, %v827_v3  ;;  %v232_v9 = vmul.f32 %v829_v4, %v829_v4  ;;  %v237_v10 = vmul.f32 %v831_v5, %v831_v5  ;;  %v233_v11 = vmul.f32 %v833_v6, %v833_v6  ;;  %673 = vmatpush3.bf16.msra.mxu0 %v733_v23 }
  0x15   : > { %v235_v15 = vmul.f32 %v843_v12, %v843_v12  ;;  %v234_v16 = vmul.f32 %v845_v13, %v845_v13  ;;  %v239_v19 = vmul.f32 %v851_v17, %v851_v17  ;;  %v238_v20 = vmul.f32 %v853_v18, %v853_v18  ;;  %701 = vmatpush3.bf16.msra.mxu1 %v733_v23 }
  0x16   : > { %248 = vadd.xlane.f32.xlu1 %v236_v8  ;;  %240 = vadd.xlane.f32.xlu0 %v232_v9 }
  0x17   : > { %674 = vmatprep.subr.bf16.mxu0 %v734_v24  ;;  %694 = vmatprep.subr.bf16.mxu1 %v734_v24 }
  0x18   : > { %675 = vmatpush3.bf16.msra.mxu0 %v734_v24 }
  0x19   : > { %702 = vmatpush3.bf16.msra.mxu1 %v734_v24  ;;  %676 = vmatprep.subr.bf16.mxu0 %v735_v25 }
  0x1a   : > { %250 = vadd.xlane.f32.xlu1 %v237_v10  ;;  %242 = vadd.xlane.f32.xlu0 %v233_v11 }
  0x1b   : > { %695 = vmatprep.subr.bf16.mxu1 %v735_v25 }
  0x1c   : > { %677 = vmatpush3.bf16.msra.mxu0 %v735_v25 }
  0x1d   : > { %703 = vmatpush3.bf16.msra.mxu1 %v735_v25  ;;  %678 = vmatprep.subr.bf16.mxu0 %v736_v26 }
  0x1e   : > { %246 = vadd.xlane.f32.xlu1 %v235_v15  ;;  %244 = vadd.xlane.f32.xlu0 %v234_v16 }
  0x1f   : > { %696 = vmatprep.subr.bf16.mxu1 %v736_v26 }
  0x20   : > { %679 = vmatpush3.bf16.msra.mxu0 %v736_v26 }
  0x21   : > { %704 = vmatpush3.bf16.msra.mxu1 %v736_v26  ;;  %680 = vmatprep.subr.bf16.mxu0 %v737_v27 }
  0x22   : > { %254 = vadd.xlane.f32.xlu1 %v239_v19  ;;  %252 = vadd.xlane.f32.xlu0 %v238_v20 }
  0x23   : > { %697 = vmatprep.subr.bf16.mxu1 %v737_v27 }
  0x24   : > { %681 = vmatpush3.bf16.msra.mxu0 %v737_v27 }
  0x25   : > { %705 = vmatpush3.bf16.msra.mxu1 %v737_v27 }
  0xa3   : > { %v249_v28 = vpop.xlane.xlu1 %248  ;;  %v241_v29 = vpop.xlane.xlu0 %240 }
  0xa4   : > { %v261_v30 = vmul.f32 0.0078125, %v249_v28  ;;  %v257_v31 = vmul.f32 0.0078125, %v241_v29 }
  0xa6   : > { %v269_v32 = vadd.f32 1e-06, %v261_v30  ;;  %v265_v33 = vadd.f32 1e-06, %v257_v31 }
  0xa7   : > { %v251_v34 = vpop.xlane.xlu1 %250  ;;  %v243_v35 = vpop.xlane.xlu0 %242 }
  0xa8   : > { %738 = vrsqrt.f32 %v269_v32  ;;  %v262_v36 = vmul.f32 0.0078125, %v251_v34  ;;  %v258_v37 = vmul.f32 0.0078125, %v243_v35 }
  0xa9   : > { %740 = vrsqrt.f32 %v265_v33 }
  0xaa   : > { %v270_v38 = vadd.f32 1e-06, %v262_v36  ;;  %v266_v39 = vadd.f32 1e-06, %v258_v37 }
  0xab   : > { %v247_v40 = vpop.xlane.xlu1 %246  ;;  %v245_v41 = vpop.xlane.xlu0 %244 }
  0xac   : > { %742 = vrsqrt.f32 %v270_v38  ;;  %v260_v42 = vmul.f32 0.0078125, %v247_v40  ;;  %v259_v43 = vmul.f32 0.0078125, %v245_v41 }
  0xad   : > { %744 = vrsqrt.f32 %v266_v39 }
  0xae   : > { %v268_v44 = vadd.f32 1e-06, %v260_v42  ;;  %v267_v45 = vadd.f32 1e-06, %v259_v43 }
  0xaf   : > { %v255_v46 = vpop.xlane.xlu1 %254  ;;  %v253_v47 = vpop.xlane.xlu0 %252 }
  0xb0   : > { %746 = vrsqrt.f32 %v268_v44  ;;  %v264_v48 = vmul.f32 0.0078125, %v255_v46  ;;  %v263_v49 = vmul.f32 0.0078125, %v253_v47 }
  0xb1   : > { %748 = vrsqrt.f32 %v267_v45 }
  0xb2   : > { %v739_v50 = vpop.eup %738  ;;  %v272_v51 = vadd.f32 1e-06, %v264_v48  ;;  %v271_v52 = vadd.f32 1e-06, %v263_v49 }
  0xb3   : > { %v741_v53 = vpop.eup %740  ;;  %v285_v54 = vmul.f32 %v739_v50, %v827_v3 }
  0xb4   : > { %750 = vrsqrt.f32 %v272_v51  ;;  %v281_v56 = vmul.f32 %v741_v53, %v829_v4 }
  0xb5   : > { %752 = vrsqrt.f32 %v271_v52  ;;  %v300_v61 = vmul.f32 %v585_v57, %v285_v54 }
  0xb6   : > { %v743_v55 = vpop.eup %742  ;;  %v296_v0 = vmul.f32 %v585_v57, %v281_v56 }
  0xb7   : > { %v745_v58 = vpop.eup %744  ;;  %v286_v59 = vmul.f32 %v743_v55, %v831_v5 }
  0xb8   : > { %v282_v60 = vmul.f32 %v745_v58, %v833_v6 }
  0xb9   : > { %v301_v62 = vmul.f32 %v585_v57, %v286_v59 }
  0xba   : > { %v747_v63 = vpop.eup %746  ;;  %v297_v1 = vmul.f32 %v585_v57, %v282_v60 }
  0xbb   : > { %v749_v2 = vpop.eup %748  ;;  %v306_v7 = vpack.c.bf16 %v301_v62, %v300_v61  ;;  %v284_v3 = vmul.f32 %v747_v63, %v843_v12 }
  0xbc   : > { %v304_v8 = vpack.c.bf16 %v297_v1, %v296_v0  ;;  %v283_v4 = vmul.f32 %v749_v2, %v845_v13 }
  0xbd   : > { %686 = vmatprep.mubr.bf16.mxu1 %v306_v7  ;;  %v299_v9 = vmul.f32 %v585_v57, %v284_v3 }
  0xbe   : > { %v751_v10 = vpop.eup %750  ;;  %682 = vmatprep.mubr.bf16.mxu0 %v304_v8  ;;  %v298_v5 = vmul.f32 %v585_v57, %v283_v4 }
  0xbf   : > { %v753_v11 = vpop.eup %752  ;;  %v288_v6 = vmul.f32 %v751_v10, %v851_v17 }
  0xc0   : > { %v305_v14 = vpack.c.bf16 %v299_v9, %v298_v5  ;;  %v287_v15 = vmul.f32 %v753_v11, %v853_v18 }
  0xc1   : > { %v303_v16 = vmul.f32 %v585_v57, %v288_v6 }
  0xc2   : > { %683 = vmatmul.mubr.bf16.vlgmr.msra.gmra.mrb[0].mxu0 %v305_v14  ;;  %v302_v19 = vmul.f32 %v585_v57, %v287_v15 }
  0xc4   : > { %v307_v20 = vpack.c.bf16 %v303_v16, %v302_v19 }
  0xc6   : > { %687 = vmatmul.mubr.bf16.vlgmr.msra.gmra.mrb[0].mxu1 %v307_v20 }
 0x195   : > { %v684_v12 = vpop.f32.mrb[0].mxu0 }
 0x196   : > { %v414_v21 = vpop.f32.mrb[1].mxu0 }
 0x197   : > { %v685_v13 = vpop.f32.mrb[2].mxu0 }
 0x198   : > { %v636_v22 = vpack.c.bf16 %v685_v13, %v684_v12  ;;  %v417_v23 = vpop.f32.mrb[3].mxu0 }
 0x199   : > { %v631_v24 = vpack.c.bf16 %v417_v23, %v414_v21  ;;  %v688_v17 = vpop.f32.mrb[0].mxu1 }
 0x19a   : > { %651 = vst [vmem:[%s209_s18 + $0x8] sm:$0xff] %v636_v22   ;;  %v430_v25 = vpop.f32.mrb[1].mxu1 }
 0x19b   : > { %632 = vst [vmem:[%s209_s18] sm:$0xff] %v631_v24   ;;  %v689_v18 = vpop.f32.mrb[2].mxu1 }
 0x19c   : > { %v646_v26 = vpack.c.bf16 %v689_v18, %v688_v17  ;;  %v433_v27 = vpop.f32.mrb[3].mxu1 }
 0x19d   : > { %v641_v28 = vpack.c.bf16 %v433_v27, %v430_v25 }
 0x19e   : > { %653 = vst [vmem:[%s209_s18 + $0x18] sm:$0xff] %v646_v26  }
 0x19f   : > { %652 = vst [vmem:[%s209_s18 + $0x10] sm:$0xff] %v641_v28  }
 0x1a0 PF: > { %s13_s14 = sadd.s32 1, %s776_s14   ;;  %s909_s12 = smov %s772_s13 }
 0x1a1   : > { %p10_p5 = scmp.ge.s32.totalorder %s13_s14, 4   ;;  %s910_s13 = smov %s912_s15 }
 0x1a3   :  { %12 = sbr.rel (!%p10_p5) target bundleno = 2 (0x2), region = 69 }

// kernel: transformer_vae_forward.61
= control target key start
LH: loop header
LB: loop body
LE: loop exit
PB: predicated region body
PF: predicated region fallthrough
CT: control target
= control target key end

     0   :  { %7 = vsyncpa [#allocation4], 0  ;;  %s1107_s0 = inlined_call_operand.vmem [shape: bf16[128,128], index: 0, kind: input, shape index: {}]   ;;  %s1108_s1 = inlined_call_operand.vmem [shape: bf16[128,256], index: 1, kind: input, shape index: {}]   ;;  %s1109_s2 = inlined_call_operand.hbm [shape: bf16[128,256], index: 2, kind: output, shape index: {}]  }
   0x1   :  { %9 = vsyncpa [#allocation4 + $0x1], 0  ;;  %s935_s9 = smov 0   ;;  %s937_s10 = smov 0  }
   0x2   :  { %s939_s11 = smov 0   ;;  %s941_s12 = smov 0  }
   0x3   :  { %s943_s13 = smov 0   ;;  %s945_s14 = smov 0  }
   0x4 LB: > { %s681_s15 = sadd.s32 4294967295, %s914_s14   ;;  %s682_s16 = sadd.s32 4294967294, %s914_s14   ;;  %s914_s14 = sphi %s945_s14, %s15_s14   ;;  %s910_s13 = sphi %s943_s13, %s1116_s13   ;;  %s906_s12 = sphi %s941_s12, %s1115_s12   ;;  %s902_s11 = sphi %s939_s11, %s1114_s11   ;;  %s898_s10 = sphi %s937_s10, %s1113_s10   ;;  %s894_s9 = sphi %s935_s9, %s1112_s9  }
   0x5   : > { %s34_s17 = sadd.s32 1, %s910_s13  ;;  %s99_s18 = sadd.s32 1, %s902_s11 }
   0x6   : > { %p36_p0 = scmp.ge.s32.totalorder %s34_s17, 2  ;;  %p109_p1 = scmp.ne.s32.totalorder %s902_s11, %s898_s10 }
   0x7   : > { %p110_p2 = scmp.eq.s32.totalorder %s681_s15, 1  ;;  %p115_p3 = scmp.ne.s32.totalorder %s898_s10, %s894_s9 }
   0x8   : > { %s1118_s17 = smov (%p36_p0, %s34_s17), 0  ;;  %p116_p5 = scmp.eq.s32.totalorder %s682_s16, 1 }
   0x9   : > { %p975_p4 = por %p110_p2, %p109_p1  ;;  %s94_s20 = ssub.s32 %s910_s13, %s1118_s17 }
   0xa   : > { %p686_p6 = scmp.ge.s32.totalorder %s914_s14, 1  ;;  %p97_p7 = scmp.eq.s32.totalorder %s94_s20, 0 }
   0xb   : > { %p982_p8 = por %p116_p5, %p115_p3  ;;  %p161_p9 = scmp.lt.s32.totalorder %s914_s14, 3 }
   0xc   : > { %s988_s22 = scalar_select %p97_p7, %s902_s11, %s99_s18  }
   0xd   : > { %p162_p10 = pnand %p686_p6, %p161_p9 }
   0xe   : > { %v808_v0 = vld [vmem:[%s1108_s1 + $0x4] ss:$8 sps:$4 sm:$0xff] (!%p162_p10)   ;;  %s688_s25 = sshll.u32 (!%p162_p10), %s906_s12, 3  ;;  %v810_v1 = vld [vmem:[%s1108_s1] ss:$8 sps:$4 sm:$0xff] (!%p162_p10)   ;;  %v916_v2 = vmov (!%p162_p10), 0  }
   0xf   : > { %165 = sbr.rel (%p162_p10) target bundleno = 288 (0x120), region = 28  ;;  %416 = vmatprep.mubr.bf16.mxu0 (!%p162_p10), %v916_v2  ;;  %436 = vmatprep.mubr.bf16.mxu1 (!%p162_p10), %v916_v2  ;;  %p197_p11 = scmp.lt.s32.totalorder (!%p162_p10), %s688_s25, 15  ;;  %v811_v3 = vld [vmem:[%s1108_s1 + $0x14] ss:$8 sps:$4 sm:$0xff] (!%p162_p10)   ;;  %v813_v4 = vld [vmem:[%s1108_s1 + $0x10] ss:$8 sps:$4 sm:$0xff] (!%p162_p10)  }
  0x10   : > { %384 = vmatprep.subr.bf16.mxu0 (!%p162_p10), %v808_v0  ;;  %734 = vmatprep.subr.bf16.mxu1 (!%p162_p10), %v808_v0  ;;  %v814_v5 = vld [vmem:[%s1108_s1 + $0x24] ss:$8 sps:$4 sm:$0xff] (!%p162_p10)   ;;  %v816_v6 = vld [vmem:[%s1108_s1 + $0x20] ss:$8 sps:$4 sm:$0xff] (!%p162_p10)   ;;  %v817_v7 = vld [vmem:[%s1108_s1 + $0x34] ss:$8 sps:$4 sm:$0xff] (!%p162_p10)  }
  0x11   : > { %385 = vmatpush1.bf16.msra.mxu0 (!%p162_p10), %v810_v1  ;;  %742 = vmatpush1.bf16.msra.mxu1 (!%p162_p10), %v810_v1  ;;  %v819_v8 = vld [vmem:[%s1108_s1 + $0x30] ss:$8 sps:$4 sm:$0xff] (!%p162_p10)   ;;  %v820_v9 = vld [vmem:[%s1108_s1 + $0x44] ss:$8 sps:$4 sm:$0xff] (!%p162_p10)   ;;  %v822_v10 = vld [vmem:[%s1108_s1 + $0x40] ss:$8 sps:$4 sm:$0xff] (!%p162_p10)  }
  0x12   : > { %386 = vmatprep.subr.bf16.mxu0 (!%p162_p10), %v811_v3  ;;  %735 = vmatprep.subr.bf16.mxu1 (!%p162_p10), %v811_v3  ;;  %v823_v11 = vld [vmem:[%s1108_s1 + $0x54] ss:$8 sps:$4 sm:$0xff] (!%p162_p10)   ;;  %v825_v12 = vld [vmem:[%s1108_s1 + $0x50] ss:$8 sps:$4 sm:$0xff] (!%p162_p10)   ;;  %v826_v13 = vld [vmem:[%s1108_s1 + $0x64] ss:$8 sps:$4 sm:$0xff] (!%p162_p10)  }
  0x13   : > { %v828_v14 = vld [vmem:[%s1108_s1 + $0x60] ss:$8 sps:$4 sm:$0xff] (!%p162_p10)   ;;  %v829_v15 = vld [vmem:[%s1108_s1 + $0x74] ss:$8 sps:$4 sm:$0xff] (!%p162_p10)   ;;  %v831_v16 = vld [vmem:[%s1108_s1 + $0x70] ss:$8 sps:$4 sm:$0xff] (!%p162_p10)  }
  0x14   : > { %s917_s5 = smov (!%p162_p10), [#allocation3]  }
  0x15   : > { %387 = vmatpush1.bf16.msra.mxu0 (!%p162_p10), %v813_v4  ;;  %743 = vmatpush1.bf16.msra.mxu1 (!%p162_p10), %v813_v4 }
  0x16   : > { %s1120_s25 = smov (!%p197_p11, %s688_s25), 15  ;;  %388 = vmatprep.subr.bf16.mxu0 %v814_v5  ;;  %736 = vmatprep.subr.bf16.mxu1 %v814_v5 }
  0x17   : > { %s689_s6 = sshll.u32 %s1120_s25, 2  ;;  %s193_s25 = sand.u32 1, %s898_s10  }
  0x18   : > { %s1015_s23 = scalar_lea.vmem %s1107_s0, %s689_s6  ;;  %s687_s26 = sshll.u32 %s193_s25, 6 }
  0x19   : > { %389 = vmatpush1.bf16.msra.mxu0 %v816_v6  ;;  %744 = vmatpush1.bf16.msra.mxu1 %v816_v6  ;;  %v832_v17 = vld [vmem:[%s1015_s23] sm:$0xff]   ;;  %v833_v18 = vld [vmem:[%s1015_s23 + $0x10] sm:$0xff]   ;;  %v834_v19 = vld [vmem:[%s1015_s23 + $0x8] sm:$0xff]   ;;  %s195_s27 = scalar_lea.vmem [#allocation3], %s687_s26  ;;  %s840_s6 = sshll.u32 %s917_s5, 4  ;;  %s841_s6 = int_to_ptr.vmem [resolvable:$false] %s840_s6 }
  0x1a   : > { %390 = vmatprep.subr.bf16.mxu0 %v817_v7  ;;  %737 = vmatprep.subr.bf16.mxu1 %v817_v7  ;;  %v835_v20 = vld [vmem:[%s1015_s23 + $0x18] sm:$0xff]   ;;  %s733_s23 = sshll.u32 %s906_s12, 10  ;;  %s581_s28 = sshll.u32 %s195_s27, 4  ;;  %s1057_s28 = int_to_ptr.vmem [resolvable:$true] %s581_s28 }
  0x1b   : > { %s1055_s3 = scalar_lea.hbm %s1109_s2, %s733_s23  ;;  %s1061_s12 = scalar_lea.sflag [#allocation4], %s193_s25 }
  0x1c   : > { %s836_s4 = scalar_lea.vmem %s1057_s28, 1024  ;;  %s842_s7 = scalar_lea.vmem %s841_s6, 2048 }
  0x1d   : > { %391 = vmatpush1.bf16.msra.mxu0 %v819_v8  ;;  %745 = vmatpush1.bf16.msra.mxu1 %v819_v8  ;;  %p837_p12 = scmp.ne.s32.totalorder %s1057_s28, %s836_s4  ;;  %p843_p1 = scmp.lt.s32.totalorder %s1057_s28, %s841_s6 }
  0x1e   : > { %392 = vmatprep.subr.bf16.mxu0 %v820_v9  ;;  %738 = vmatprep.subr.bf16.mxu1 %v820_v9  ;;  %p844_p2 = scmp.lt.s32.totalorder %s842_s7, %s836_s4 }
  0x1f   : > { %p838_p13 = pnand %p837_p12, %p975_p4 }
  0x20   : > { %p845_p3 = por %p844_p2, %p843_p1 }
  0x21   : > { %393 = vmatpush1.bf16.msra.mxu0 %v822_v10  ;;  %746 = vmatpush1.bf16.msra.mxu1 %v822_v10  ;;  %p839_p0 = pneg %p838_p13 }
  0x22   : > { %394 = vmatprep.subr.bf16.mxu0 %v823_v11  ;;  %739 = vmatprep.subr.bf16.mxu1 %v823_v11 }
  0x23   : > { %p846_p5 = pnand %p845_p3, %p839_p0 }
  0x25   : > { %395 = vmatpush1.bf16.msra.mxu0 %v825_v12  ;;  %747 = vmatpush1.bf16.msra.mxu1 %v825_v12 }
  0x26   : > { %396 = vmatprep.subr.bf16.mxu0 %v826_v13  ;;  %740 = vmatprep.subr.bf16.mxu1 %v826_v13 }
  0x29   : > { %397 = vmatpush1.bf16.msra.mxu0 %v828_v14  ;;  %748 = vmatpush1.bf16.msra.mxu1 %v828_v14 }
  0x2a   : > { %398 = vmatprep.subr.bf16.mxu0 %v829_v15  ;;  %741 = vmatprep.subr.bf16.mxu1 %v829_v15 }
  0x2d   : > { %399 = vmatpush1.bf16.msra.mxu0 %v831_v16  ;;  %749 = vmatpush1.bf16.msra.mxu1 %v831_v16 }
  0x30   : > { %417 = vmatmul.mubr.bf16.vlgmr.msra.gmra.mrb[0].mxu0 %v832_v17  ;;  %437 = vmatmul.mubr.bf16.vlgmr.msra.gmra.mrb[0].mxu1 %v833_v18 }
  0x31   : > { %426 = vmatprep.mubr.bf16.mxu0 %v916_v2  ;;  %446 = vmatprep.mubr.bf16.mxu1 %v916_v2 }
  0x38   : > { %427 = vmatmul.mubr.bf16.gmra.mrb[4].mxu0 %v834_v19  ;;  %447 = vmatmul.mubr.bf16.gmra.mrb[4].mxu1 %v835_v20 }
 0x103   : > { %v418_v21 = vpop.f32.mrb[0].mxu0  ;;  %v438_v22 = vpop.f32.mrb[0].mxu1 }
 0x104   : > { %v420_v23 = vpop.f32.mrb[1].mxu0  ;;  %v440_v24 = vpop.f32.mrb[1].mxu1 }
 0x105   : > { %v724_v25 = vpack.c.bf16 %v420_v23, %v418_v21  ;;  %v728_v26 = vpack.c.bf16 %v440_v24, %v438_v22  ;;  %v422_v27 = vpop.f32.mrb[2].mxu0  ;;  %v442_v28 = vpop.f32.mrb[2].mxu1 }
 0x106   : > { %v424_v29 = vpop.f32.mrb[3].mxu0  ;;  %v444_v30 = vpop.f32.mrb[3].mxu1 }
 0x107   : > { %556 = vst [vmem:[%s195_s27] sm:$0xff] %v724_v25  ;;  %560 = vst [vmem:[%s195_s27 + $0x20] sm:$0xff] %v728_v26  ;;  %v725_v31 = vpack.c.bf16 %v424_v29, %v422_v27  ;;  %v729_v32 = vpack.c.bf16 %v444_v30, %v442_v28 }
 0x109   : > { %557 = vst [vmem:[%s195_s27 + $0x8] sm:$0xff] %v725_v31  ;;  %561 = vst [vmem:[%s195_s27 + $0x28] sm:$0xff] %v729_v32 }
 0x10b   : > { %v428_v33 = vpop.f32.mrb[4].mxu0  ;;  %v448_v34 = vpop.f32.mrb[4].mxu1 }
 0x10c   : > { %v430_v35 = vpop.f32.mrb[5].mxu0  ;;  %v450_v36 = vpop.f32.mrb[5].mxu1 }
 0x10d   : > { %v726_v37 = vpack.c.bf16 %v430_v35, %v428_v33  ;;  %v730_v38 = vpack.c.bf16 %v450_v36, %v448_v34  ;;  %v432_v39 = vpop.f32.mrb[6].mxu0  ;;  %v452_v40 = vpop.f32.mrb[6].mxu1 }
 0x10e   : > { %v434_v41 = vpop.f32.mrb[7].mxu0  ;;  %v454_v42 = vpop.f32.mrb[7].mxu1 }
 0x10f   : > { %558 = vst [vmem:[%s195_s27 + $0x10] sm:$0xff] %v726_v37  ;;  %562 = vst [vmem:[%s195_s27 + $0x30] sm:$0xff] %v730_v38  ;;  %v727_v43 = vpack.c.bf16 %v434_v41, %v432_v39  ;;  %v731_v44 = vpack.c.bf16 %v454_v42, %v452_v40 }
 0x111   : > { %559 = vst [vmem:[%s195_s27 + $0x18] sm:$0xff] %v727_v43  ;;  %563 = vst [vmem:[%s195_s27 + $0x38] sm:$0xff] %v731_v44 }
 0x112   : > { %849 = shalt.err (!%p846_p5)
}
 0x113   : > { %s850_s8 = scalar_lea.hbm %s1055_s3, 1024  ;;  %s854_s18 = scalar_lea.hbm %s1109_s2, 2048 }
 0x114   : > { %p851_p6 = scmp.ne.s32.totalorder %s1055_s3, %s850_s8  ;;  %p855_p10 = scmp.lt.u32.totalorder %s1055_s3, %s1109_s2 }
 0x115   : > { %p856_p11 = scmp.lt.u32.totalorder %s854_s18, %s850_s8  ;;  %p858_p13 = scmp.lt.u32.totalorder %s850_s8, %s1055_s3 }
 0x116   : > { %p852_p7 = pnand %p851_p6, %p975_p4 }
 0x117   : > { %p857_p12 = por %p856_p11, %p855_p10 }
 0x118   : > { %p853_p9 = pneg %p852_p7 }
 0x119   : > { %p859_p0 = por %p858_p13, %p857_p12 }
 0x11b   : > { %p860_p1 = pnand %p859_p0, %p853_p9 }
 0x11d   : > { %863 = shalt.err (!%p860_p1)
}
 0x11e   : > { %s918_s25 = smov 128   ;;  %s919_s26 = smov 8  }
 0x11f   : > { %750 = dma.vmem_to_hbm [thread:$0]  (%p975_p4), %s1057_s28, 1024, %s1055_s3, %s1061_s12, %s918_s25, %s918_s25, %s919_s26  }
 0x120 PF: > { %p756_p2 = scmp.ge.s32.totalorder %s914_s14, 2  ;;  %s596_s27 = sand.u32 1, %s894_s9  }
 0x121   : > { %s597_s23 = scalar_lea.sflag [#allocation4], %s596_s27 }
 0x122   : > { %p753_p3 = pnand %p756_p2, %p982_p8 }
 0x124   : > { %889 = dma.done.wait (!%p753_p3), %s597_s23, 1024  }
 0x125   : > { %891 = vsyncadd (!%p753_p3), %s597_s23, 4294966272  ;;  %s15_s14 = sadd.s32 1, %s914_s14   ;;  %s1112_s9 = smov %s898_s10 }
 0x126   : > { %p12_p5 = scmp.ge.s32.totalorder %s15_s14, 4   ;;  %s1113_s10 = smov %s902_s11 }
 0x127   : > { %s1114_s11 = smov %s988_s22  ;;  %s1115_s12 = smov %s910_s13 }
 0x128   : > { %s1116_s13 = smov %s1118_s17  ;;  %14 = sbr.rel (!%p12_p5) target bundleno = 4 (0x4), region = 74 }
 0x12f   :  { %602 = vsyncpa [#allocation4], 1 }
 0x130   :  { %604 = vsyncpa [#allocation4 + $0x1], 1 }

// kernel: transformer_vae_forward.52
= control target key start
LH: loop header
LB: loop body
LE: loop exit
PB: predicated region body
PF: predicated region fallthrough
CT: control target
= control target key end

     0   :  { %s1471_s21 = smov 0   ;;  %s1473_s22 = smov 0   ;;  %s1601_s0 = inlined_call_operand.vmem [shape: f32[2,1,64], index: 0, kind: input, shape index: {}]   ;;  %s1602_s1 = inlined_call_operand.vmem [shape: bf16[128,128], index: 1, kind: input, shape index: {}]   ;;  %s1603_s2 = inlined_call_operand.vmem [shape: bf16[128,256], index: 2, kind: input, shape index: {}, may-alias: {2,3}]   ;;  %s1604_s3 = inlined_call_operand.vmem [shape: bf16[128,256], index: 3, kind: input, shape index: {}, may-alias: {2,3}]   ;;  %s1605_s4 = inlined_call_operand.vmem [shape: bf16[128,128], index: 4, kind: input, shape index: {}]   ;;  %s1606_s5 = inlined_call_operand.vmem [shape: bf16[128,128], index: 5, kind: input, shape index: {}]   ;;  %s1607_s6 = inlined_call_operand.vmem [shape: bf16[128,128], index: 6, kind: output, shape index: {}]  }
   0x1   :  { %s1475_s23 = smov 0  }
   0x2 LB: > { %s1487_s24 = sadd.s32 4294967295, %s1434_s23   ;;  %s1490_s25 = sadd.s32 1, %s1434_s23   ;;  %s1434_s23 = sphi %s1475_s23, %s1611_s23   ;;  %s1430_s22 = sphi %s1473_s22, %s1610_s22   ;;  %s1426_s21 = sphi %s1471_s21, %s1609_s21  }
   0x3   : > { %s72_s26 = ssub.s32 %s1434_s23, %s1490_s25  ;;  %s75_s27 = sadd.s32 1, %s1430_s22 }
   0x4   : > { %p73_p0 = scmp.eq.s32.totalorder %s72_s26, 0  ;;  %p82_p1 = scmp.ne.s32.totalorder %s1430_s22, %s1426_s21 }
   0x5   : > { %p83_p2 = scmp.eq.s32.totalorder %s1434_s23, 0  ;;  %p1140_p4 = scmp.ge.s32.totalorder %s1434_s23, 2 }
   0x6   : > { %s1499_s28 = scalar_select %p73_p0, %s1430_s22, %s75_s27  }
   0x7   : > { %p1501_p3 = por %p83_p2, %p82_p1  ;;  %210 = sbr.rel (%p1140_p4) target bundleno = 32 (0x20), region = 20 }
   0xe   : > { %228 = sbr.rel (!%p1501_p3) target bundleno = 23 (0x17), region = 32  ;;  %s230_s30 = sand.u32 (%p1501_p3), 1, %s1430_s22  }
   0xf   : > { %s1200_s7 = sshll.u32 (%p1501_p3), %s1434_s23, 6  ;;  %s1141_s8 = sshll.u32 (%p1501_p3), %s230_s30, 5 }
  0x10   : > { %s236_s11 = scalar_lea.vmem (%p1501_p3), %s1603_s2, %s1200_s7  ;;  %s232_s12 = scalar_lea.vmem (%p1501_p3), [#allocation2], %s1141_s8 }
  0x11   : > { %v252_v0 = vld [vmem:[%s236_s11] sm:$0xf] (%p1501_p3)  ;;  %v254_v1 = vld [vmem:[%s236_s11 + $0x8] sm:$0xf] (%p1501_p3)  ;;  %v256_v2 = vld [vmem:[%s236_s11 + $0x10] sm:$0xf] (%p1501_p3) }
  0x12   : > { %253 = vst [vmem:[%s232_s12] sm:$0xf] (%p1501_p3), %v252_v0  ;;  %255 = vst [vmem:[%s232_s12 + $0x4] sm:$0xf] (%p1501_p3), %v254_v1  ;;  %v258_v3 = vld [vmem:[%s236_s11 + $0x18] sm:$0xf] (%p1501_p3) }
  0x13   : > { %v260_v4 = vld [vmem:[%s236_s11 + $0x20] sm:$0xf] (%p1501_p3)  ;;  %257 = vst [vmem:[%s232_s12 + $0x8] sm:$0xf] (%p1501_p3), %v256_v2  ;;  %259 = vst [vmem:[%s232_s12 + $0xc] sm:$0xf] (%p1501_p3), %v258_v3 }
  0x14   : > { %261 = vst [vmem:[%s232_s12 + $0x10] sm:$0xf] (%p1501_p3), %v260_v4  ;;  %v262_v5 = vld [vmem:[%s236_s11 + $0x28] sm:$0xf] (%p1501_p3)  ;;  %v264_v6 = vld [vmem:[%s236_s11 + $0x30] sm:$0xf] (%p1501_p3) }
  0x15   : > { %v266_v7 = vld [vmem:[%s236_s11 + $0x38] sm:$0xf]  ;;  %263 = vst [vmem:[%s232_s12 + $0x14] sm:$0xf] %v262_v5  ;;  %265 = vst [vmem:[%s232_s12 + $0x18] sm:$0xf] %v264_v6 }
  0x16   : > { %267 = vst [vmem:[%s232_s12 + $0x1c] sm:$0xf] %v266_v7 }
  0x17 PF: > { %306 = sbr.rel (!%p1501_p3) target bundleno = 32 (0x20), region = 73  ;;  %s308_s13 = sand.u32 (%p1501_p3), 1, %s1430_s22  }
  0x18   : > { %s1201_s14 = sshll.u32 (%p1501_p3), %s1434_s23, 6  ;;  %s1145_s15 = sshll.u32 (%p1501_p3), %s308_s13, 5 }
  0x19   : > { %s1055_s18 = scalar_lea.vmem (%p1501_p3), %s1604_s3, %s1201_s14  ;;  %s310_s19 = scalar_lea.vmem (%p1501_p3), [#allocation3], %s1145_s15 }
  0x1a   : > { %v1148_v8 = vld [vmem:[%s1055_s18 + $0x4] sm:$0xf] (%p1501_p3)  ;;  %v1149_v9 = vld [vmem:[%s1055_s18 + $0xc] sm:$0xf] (%p1501_p3)  ;;  %v1150_v10 = vld [vmem:[%s1055_s18 + $0x14] sm:$0xf] (%p1501_p3) }
  0x1b   : > { %332 = vst [vmem:[%s310_s19] sm:$0xf] (%p1501_p3), %v1148_v8  ;;  %334 = vst [vmem:[%s310_s19 + $0x4] sm:$0xf] (%p1501_p3), %v1149_v9  ;;  %v1151_v11 = vld [vmem:[%s1055_s18 + $0x1c] sm:$0xf] (%p1501_p3) }
  0x1c   : > { %v1152_v12 = vld [vmem:[%s1055_s18 + $0x24] sm:$0xf] (%p1501_p3)  ;;  %336 = vst [vmem:[%s310_s19 + $0x8] sm:$0xf] (%p1501_p3), %v1150_v10  ;;  %338 = vst [vmem:[%s310_s19 + $0xc] sm:$0xf] (%p1501_p3), %v1151_v11 }
  0x1d   : > { %340 = vst [vmem:[%s310_s19 + $0x10] sm:$0xf] (%p1501_p3), %v1152_v12  ;;  %v1153_v13 = vld [vmem:[%s1055_s18 + $0x2c] sm:$0xf] (%p1501_p3)  ;;  %v1154_v14 = vld [vmem:[%s1055_s18 + $0x34] sm:$0xf] (%p1501_p3) }
  0x1e   : > { %v1155_v15 = vld [vmem:[%s1055_s18 + $0x3c] sm:$0xf]  ;;  %342 = vst [vmem:[%s310_s19 + $0x14] sm:$0xf] %v1153_v13  ;;  %344 = vst [vmem:[%s310_s19 + $0x18] sm:$0xf] %v1154_v14 }
  0x1f   : > { %346 = vst [vmem:[%s310_s19 + $0x1c] sm:$0xf] %v1155_v15 }
  0x20 PF: > { %p1156_p5 = scmp.ge.s32.totalorder %s1434_s23, 1  ;;  %p393_p6 = scmp.lt.s32.totalorder %s1434_s23, 3 }
  0x22   : > { %p394_p7 = pnand %p1156_p5, %p393_p6 }
  0x23   : > { %s400_s20 = sand.u32 (!%p394_p7), 1, %s1426_s21   ;;  %s1159_s26 = sshll.u32 (!%p394_p7), %s1487_s24, 3  ;;  %v626_v24 = vlaneseq (!%p394_p7)  ;;  %vm639_vm0 = vcmask (!%p394_p7), 523264  }
  0x24   : > { %397 = sbr.rel (%p394_p7) target bundleno = 902 (0x386), region = 118  ;;  %s1524_s27 = sshll.u32 (!%p394_p7), %s400_s20, 5 }
  0x25   : > { %p457_p8 = scmp.lt.s32.totalorder (!%p394_p7), %s1159_s26, 15  ;;  %s402_s29 = scalar_lea.vmem (!%p394_p7), [#allocation2], %s1524_s27  ;;  %v627_v27 = vshrl.u32 (!%p394_p7), %v626_v24, 7 }
  0x26   : > { %v1360_v16 = vld [vmem:[%s402_s29] sm:$0xff] (!%p394_p7)   ;;  %v1361_v17 = vld [vmem:[%s402_s29 + $0x8] sm:$0xff] (!%p394_p7)   ;;  %v1362_v19 = vld [vmem:[%s402_s29 + $0x10] sm:$0xff] (!%p394_p7)   ;;  %p453_p9 = scmp.lt.s32.totalorder (!%p394_p7), %s1487_s24, 1 }
  0x27   : > { %1280 = vmatprep.subr.bf16.mxu0 (!%p394_p7), %v1360_v16  ;;  %v1363_v20 = vld [vmem:[%s402_s29 + $0x18] sm:$0xff] (!%p394_p7)   ;;  %v628_v29 = vsub.s32 (!%p394_p7), 0, %v627_v27 }
  0x28   : > { %1281 = vmatpush3.bf16.xpose.msra.mxu0 (!%p394_p7), %v1360_v16 }
  0x29   : > { %1282 = vmatprep.subr.bf16.mxu0 (!%p394_p7), %v1361_v17 }
  0x2b   : > { %s1613_s26 = smov (!%p457_p8, %s1159_s26), 15  ;;  %s1615_s24 = smov (!%p453_p9, %s1487_s24), 1 }
  0x2c   : > { %s1527_s30 = sshll.u32 %s1613_s26, 2  ;;  %s455_s10 = scalar_lea.vmem %s1601_s0, %s1615_s24 }
  0x2d   : > { %s460_s8 = scalar_lea.vmem %s1602_s1, %s1527_s30  ;;  %v622_v25 = vld [vmem:[%s455_s10] sm:$0x1]  ;;  %s409_s24 = scalar_lea.vmem [#allocation3], %s1524_s27 }
  0x2e   : > { %v1364_v18 = vld [vmem:[%s460_s8] sm:$0xff]   ;;  %v1365_v21 = vld [vmem:[%s460_s8 + $0x8] sm:$0xff]   ;;  %v1366_v22 = vld [vmem:[%s460_s8 + $0x10] sm:$0xff]   ;;  %v623_v26 = vsub.f32 1.0, %v622_v25  ;;  %s468_s10 = scalar_lea.vmem %s1606_s5, %s1527_s30  ;;  %s474_s12 = scalar_lea.vmem %s1607_s6, %s1527_s30 }
  0x2f   : > { %1288 = vmatprep.mubr.bf16.mxu0 %v1364_v18  ;;  %v1367_v23 = vld [vmem:[%s460_s8 + $0x18] sm:$0xff]   ;;  %v1368_v63 = vld [vmem:[%s409_s24] sm:$0xff]   ;;  %v1369_v0 = vld [vmem:[%s409_s24 + $0x8] sm:$0xff]  }
  0x30   : > { %1283 = vmatpush3.bf16.xpose.msra.mxu0 %v1361_v17  ;;  %v624_v28 = vmul.f32 -1e+09, %v623_v26  ;;  %1296 = vmatprep.subr.bf16.mxu1 %v1368_v63  ;;  %v1370_v1 = vld [vmem:[%s409_s24 + $0x10] sm:$0xff]   ;;  %v1371_v2 = vld [vmem:[%s409_s24 + $0x18] sm:$0xff]  }
  0x31   : > { %1284 = vmatprep.subr.bf16.mxu0 %v1362_v19  ;;  %1297 = vmatpush3.bf16.msra.mxu1 %v1368_v63 }
  0x32   : > { %v629_v30 = vrot.slane %v624_v28, %v628_v29  ;;  %1298 = vmatprep.subr.bf16.mxu1 %v1369_v0 }
  0x35   : > { %1299 = vmatpush3.bf16.msra.mxu1 %v1369_v0 }
  0x36   : > { %1300 = vmatprep.subr.bf16.mxu1 %v1370_v1 }
  0x38   : > { %1285 = vmatpush3.bf16.xpose.msra.mxu0 %v1362_v19 }
  0x39   : > { %1286 = vmatprep.subr.bf16.mxu0 %v1363_v20  ;;  %1301 = vmatpush3.bf16.msra.mxu1 %v1370_v1 }
  0x3a   : > { %1302 = vmatprep.subr.bf16.mxu1 %v1371_v2 }
  0x3d   : > { %1303 = vmatpush3.bf16.msra.mxu1 %v1371_v2 }
  0x40   : > { %1287 = vmatpush3.bf16.xpose.msra.mxu0 %v1363_v20 }
  0x47   : > { %1289 = vmatmul.mubr.bf16.vlgmr.msra.gmra.mrb[0].mxu0 %v1365_v21 }
  0x48   : > { %1292 = vmatprep.mubr.bf16.mxu0 %v1366_v22 }
  0x4f   : > { %1293 = vmatmul.mubr.bf16.gmra.mrb[4].mxu0 %v1367_v23 }
 0x11a   : > { %v1290_v31 = vpop.f32.mrb[0].mxu0 }
 0x11b   : > { %v616_v32 = vmul.f32 0.088388346, %v1290_v31  ;;  %v583_v33 = vpop.f32.mrb[1].mxu0 }
 0x11c   : > { %v614_v34 = vmul.f32 0.088388346, %v583_v33  ;;  %v1291_v35 = vpop.f32.mrb[2].mxu0 }
 0x11d   : > { %v617_v36 = vmul.f32 0.088388346, %v1291_v35  ;;  %v586_v37 = vpop.f32.mrb[3].mxu0  ;;  %v633_v38 = vadd.f32 %v629_v30, %v616_v32 }
 0x11e   : > { %v615_v39 = vmul.f32 0.088388346, %v586_v37  ;;  %v631_v40 = vadd.f32 %v629_v30, %v614_v34 }
 0x11f   : > { %v646_v41 = vsel %vm639_vm0, %v633_v38, -inf  ;;  %v634_v42 = vadd.f32 %v629_v30, %v617_v36 }
 0x120   : > { %647 = vmax.xlane.f32.xlu1 %v646_v41  ;;  %v640_v43 = vsel %vm639_vm0, %v631_v40, -inf  ;;  %v632_v44 = vadd.f32 %v629_v30, %v615_v39 }
 0x121   : > { %641 = vmax.xlane.f32.xlu0 %v640_v43  ;;  %v649_v47 = vsel %vm639_vm0, %v634_v42, -inf }
 0x122   : > { %v1294_v45 = vpop.f32.mrb[4].mxu0  ;;  %v643_v51 = vsel %vm639_vm0, %v632_v44, -inf }
 0x123   : > { %v599_v46 = vpop.f32.mrb[5].mxu0  ;;  %v620_v48 = vmul.f32 0.088388346, %v1294_v45 }
 0x124   : > { %v618_v49 = vmul.f32 0.088388346, %v599_v46  ;;  %650 = vmax.xlane.f32.xlu1 %v649_v47  ;;  %v1295_v50 = vpop.f32.mrb[6].mxu0  ;;  %v1372_v47 = vld [vmem:[%s1605_s4] sm:$0xff]  }
 0x125   : > { %644 = vmax.xlane.f32.xlu0 %v643_v51  ;;  %v602_v52 = vpop.f32.mrb[7].mxu0  ;;  %v621_v53 = vmul.f32 0.088388346, %v1295_v50  ;;  %v637_v58 = vadd.f32 %v629_v30, %v620_v48  ;;  %v1373_v48 = vld [vmem:[%s1605_s4 + $0x8] sm:$0xff]   ;;  %1312 = vmatprep.subr.bf16.mxu1 %v1372_v47  ;;  %v1375_v50 = vld [vmem:[%s1605_s4 + $0x18] sm:$0xff]   ;;  %v1376_v51 = vld [vmem:[%s1605_s4 + $0x20] sm:$0xff]  }
 0x126   : > { %v619_v54 = vmul.f32 0.088388346, %v602_v52  ;;  %v635_v55 = vadd.f32 %v629_v30, %v618_v49  ;;  %v1374_v49 = vld [vmem:[%s1605_s4 + $0x10] sm:$0xff]   ;;  %v1377_v52 = vld [vmem:[%s1605_s4 + $0x28] sm:$0xff]  }
 0x127   : > { %v638_v60 = vadd.f32 %v629_v30, %v621_v53  ;;  %v658_v61 = vsel %vm639_vm0, %v637_v58, -inf  ;;  %v1378_v53 = vld [vmem:[%s1605_s4 + $0x30] sm:$0xff]  }
 0x128   : > { %v636_v56 = vadd.f32 %v629_v30, %v619_v54  ;;  %v652_v57 = vsel %vm639_vm0, %v635_v55, -inf  ;;  %v1379_v54 = vld [vmem:[%s1605_s4 + $0x38] sm:$0xff]  }
 0x129   : > { %653 = vmax.xlane.f32.xlu0 %v652_v57  ;;  %v661_v62 = vsel %vm639_vm0, %v638_v60, -inf }
 0x12a   : > { %v655_v59 = vsel %vm639_vm0, %v636_v56, -inf }
 0x12b   : > { %656 = vmax.xlane.f32.xlu1 %v655_v59 }
 0x12d   : > { %659 = vmax.xlane.f32.xlu0 %v658_v61 }
 0x12f   : > { %662 = vmax.xlane.f32.xlu1 %v661_v62 }
 0x1ad   : > { %v648_v3 = vpop.xlane.xlu1 %647 }
 0x1ae   : > { %v666_v4 = vsub.f32 %v633_v38, %v648_v3  ;;  %v642_v5 = vpop.xlane.xlu0 %641 }
 0x1af   : > { %v664_v6 = vsub.f32 %v631_v40, %v642_v5 }
 0x1b0   : > { %v676_v7 = vmul.f32 1.442695, %v666_v4 }
 0x1b1   : > { %v672_v8 = vmul.f32 1.442695, %v664_v6  ;;  %v651_v9 = vpop.xlane.xlu1 %650 }
 0x1b2   : > { %v667_v10 = vsub.f32 %v634_v42, %v651_v9  ;;  %v645_v11 = vpop.xlane.xlu0 %644 }
 0x1b3   : > { %1380 = vpow2.f32 %v672_v8  ;;  %v665_v12 = vsub.f32 %v632_v44, %v645_v11 }
 0x1b4   : > { %v678_v13 = vmul.f32 1.442695, %v667_v10  ;;  %1382 = vpow2.f32 %v676_v7 }
 0x1b5   : > { %v674_v14 = vmul.f32 1.442695, %v665_v12 }
 0x1b6   : > { %1384 = vpow2.f32 %v678_v13  ;;  %v654_v15 = vpop.xlane.xlu0 %653 }
 0x1b7   : > { %1386 = vpow2.f32 %v674_v14  ;;  %v668_v16 = vsub.f32 %v635_v55, %v654_v15 }
 0x1b8   : > { %v657_v17 = vpop.xlane.xlu1 %656 }
 0x1b9   : > { %v680_v18 = vmul.f32 1.442695, %v668_v16  ;;  %v669_v19 = vsub.f32 %v636_v56, %v657_v17 }
 0x1ba   : > { %v660_v20 = vpop.xlane.xlu0 %659 }
 0x1bb   : > { %1388 = vpow2.f32 %v680_v18  ;;  %v682_v21 = vmul.f32 1.442695, %v669_v19  ;;  %v670_v22 = vsub.f32 %v637_v58, %v660_v20 }
 0x1bc   : > { %v663_v23 = vpop.xlane.xlu1 %662 }
 0x1bd   : > { %v1381_v24 = vpop.eup %1380  ;;  %1390 = vpow2.f32 %v682_v21  ;;  %v684_v25 = vmul.f32 1.442695, %v670_v22  ;;  %v671_v26 = vsub.f32 %v638_v60, %v663_v23 }
 0x1be   : > { %v688_v27 = vsel %vm639_vm0, %v1381_v24, 0.0  ;;  %v1383_v28 = vpop.eup %1382 }
 0x1bf   : > { %1392 = vpow2.f32 %v684_v25  ;;  %v686_v29 = vmul.f32 1.442695, %v671_v26  ;;  %689 = vadd.xlane.f32.xlu0 %v688_v27  ;;  %v694_v32 = vsel %vm639_vm0, %v1383_v28, 0.0  ;;  %v1246_v27 = vld [vmem:[%s468_s10 + $0x8] sm:$0xff]  }
 0x1c0   : > { %v1385_v30 = vpop.eup %1384 }
 0x1c1   : > { %v1387_v31 = vpop.eup %1386  ;;  %1394 = vpow2.f32 %v686_v29  ;;  %v713_v35 = vpack.c.bf16 %v1385_v30, %v1383_v28  ;;  %v697_v38 = vsel %vm639_vm0, %v1385_v30, 0.0  ;;  %v1211_v28 = vld [vmem:[%s468_s10] sm:$0xff]   ;;  %v1216_v29 = vunpack.c.l.bf16 %v1246_v27 }
 0x1c2   : > { %v691_v33 = vsel %vm639_vm0, %v1387_v31, 0.0  ;;  %v712_v34 = vpack.c.bf16 %v1387_v31, %v1381_v24  ;;  %v1217_v30 = vunpack.c.h.bf16 %v1246_v27 }
 0x1c3   : > { %695 = vadd.xlane.f32.xlu0 %v694_v32  ;;  %692 = vadd.xlane.f32.xlu1 %v691_v33  ;;  %v1212_v32 = vunpack.c.l.bf16 %v1211_v28  ;;  %v1213_v33 = vunpack.c.h.bf16 %v1211_v28 }
 0x1c4   : > { %1304 = vmatprep.mubr.msk.bf16.mxu1 %vm639_vm0, %v712_v34 }
 0x1c5   : > { %v1389_v36 = vpop.eup %1388  ;;  %1305 = vmatmul.mubr.msk.bf16.vlgmr.msra.gmra.mrb[0].mxu1 %vm639_vm0, %v713_v35 }
 0x1c6   : > { %v700_v37 = vsel %vm639_vm0, %v1389_v36, 0.0  ;;  %1313 = vmatpush3.bf16.msra.mxu1 %v1372_v47 }
 0x1c7   : > { %v1391_v39 = vpop.eup %1390  ;;  %701 = vadd.xlane.f32.xlu0 %v700_v37  ;;  %698 = vadd.xlane.f32.xlu1 %v697_v38 }
 0x1c8   : > { %v714_v40 = vpack.c.bf16 %v1391_v39, %v1389_v36  ;;  %v703_v43 = vsel %vm639_vm0, %v1391_v39, 0.0  ;;  %1314 = vmatprep.subr.bf16.mxu1 %v1373_v48 }
 0x1c9   : > { %v1393_v41 = vpop.eup %1392 }
 0x1ca   : > { %1308 = vmatprep.mubr.msk.bf16.mxu1 %vm639_vm0, %v714_v40  ;;  %v706_v42 = vsel %vm639_vm0, %v1393_v41, 0.0  ;;  %1315 = vmatpush3.bf16.msra.mxu1 %v1373_v48 }
 0x1cb   : > { %v1395_v44 = vpop.eup %1394  ;;  %707 = vadd.xlane.f32.xlu0 %v706_v42  ;;  %704 = vadd.xlane.f32.xlu1 %v703_v43  ;;  %v1248_v42 = vld [vmem:[%s468_s10 + $0x18] sm:$0xff]  }
 0x1cc   : > { %v715_v45 = vpack.c.bf16 %v1395_v44, %v1393_v41  ;;  %v709_v46 = vsel %vm639_vm0, %v1395_v44, 0.0  ;;  %1316 = vmatprep.subr.bf16.mxu1 %v1374_v49  ;;  %v1247_v44 = vld [vmem:[%s468_s10 + $0x10] sm:$0xff]  }
 0x1cd   : > { %v1220_v48 = vunpack.c.l.bf16 %v1247_v44 }
 0x1ce   : > { %1309 = vmatmul.mubr.msk.bf16.gmra.mrb[4].mxu1 %vm639_vm0, %v715_v45  ;;  %v1224_v45 = vunpack.c.l.bf16 %v1248_v42 }
 0x1cf   : > { %710 = vadd.xlane.f32.xlu1 %v709_v46  ;;  %1317 = vmatpush3.bf16.msra.mxu1 %v1374_v49  ;;  %v1225_v46 = vunpack.c.h.bf16 %v1248_v42  ;;  %v1221_v49 = vunpack.c.h.bf16 %v1247_v44 }
 0x1d0   : > { %1318 = vmatprep.subr.bf16.mxu1 %v1375_v50 }
 0x1d3   : > { %1319 = vmatpush3.bf16.msra.mxu1 %v1375_v50 }
 0x1d4   : > { %1320 = vmatprep.subr.bf16.mxu1 %v1376_v51 }
 0x1d7   : > { %1321 = vmatpush3.bf16.msra.mxu1 %v1376_v51 }
 0x1d8   : > { %1322 = vmatprep.subr.bf16.mxu1 %v1377_v52 }
 0x1db   : > { %1323 = vmatpush3.bf16.msra.mxu1 %v1377_v52 }
 0x1dc   : > { %1324 = vmatprep.subr.bf16.mxu1 %v1378_v53 }
 0x1df   : > { %1325 = vmatpush3.bf16.msra.mxu1 %v1378_v53 }
 0x1e0   : > { %1326 = vmatprep.subr.bf16.mxu1 %v1379_v54 }
 0x1e3   : > { %1327 = vmatpush3.bf16.msra.mxu1 %v1379_v54 }
 0x24c   : > { %v690_v55 = vpop.xlane.xlu0 %689 }
 0x24d   : > { %1396 = vrcp.f32 %v690_v55 }
 0x250   : > { %v693_v56 = vpop.xlane.xlu1 %692  ;;  %v696_v57 = vpop.xlane.xlu0 %695 }
 0x251   : > { %1398 = vrcp.f32 %v696_v57 }
 0x254   : > { %v699_v58 = vpop.xlane.xlu1 %698  ;;  %v702_v59 = vpop.xlane.xlu0 %701 }
 0x255   : > { %1400 = vrcp.f32 %v699_v58 }
 0x256   : > { %1402 = vrcp.f32 %v693_v56 }
 0x257   : > { %1404 = vrcp.f32 %v702_v59  ;;  %v1397_v63 = vpop.eup %1396 }
 0x258   : > { %v705_v60 = vpop.xlane.xlu1 %704  ;;  %v708_v61 = vpop.xlane.xlu0 %707 }
 0x259   : > { %1406 = vrcp.f32 %v708_v61 }
 0x25b   : > { %v1399_v1 = vpop.eup %1398 }
 0x25c   : > { %v711_v62 = vpop.xlane.xlu1 %710 }
 0x25d   : > { %1408 = vrcp.f32 %v711_v62 }
 0x25e   : > { %1410 = vrcp.f32 %v705_v60 }
 0x25f   : > { %v1401_v3 = vpop.eup %1400 }
 0x260   : > { %v1403_v5 = vpop.eup %1402 }
 0x261   : > { %v1405_v13 = vpop.eup %1404 }
 0x263   : > { %v1407_v15 = vpop.eup %1406 }
 0x267   : > { %v1409_v17 = vpop.eup %1408 }
 0x268   : > { %v1411_v19 = vpop.eup %1410 }
 0x298   : > { %v1306_v0 = vpop.f32.mrb[0].mxu1 }
 0x299   : > { %v786_v2 = vpop.f32.mrb[1].mxu1  ;;  %v822_v6 = vmul.f32 %v1399_v1, %v1306_v0 }
 0x29a   : > { %v1307_v4 = vpop.f32.mrb[2].mxu1  ;;  %v818_v9 = vmul.f32 %v1397_v63, %v786_v2 }
 0x29b   : > { %v824_v7 = vmul.f32 %v1401_v3, %v1307_v4  ;;  %v789_v8 = vpop.f32.mrb[3].mxu1 }
 0x29c   : > { %v820_v10 = vmul.f32 %v1403_v5, %v789_v8 }
 0x29d   : > { %v834_v11 = vpack.c.bf16 %v824_v7, %v822_v6 }
 0x29e   : > { %v833_v12 = vpack.c.bf16 %v820_v10, %v818_v9 }
 0x2a0   : > { %1328 = vmatprep.mubr.bf16.mxu1 %v833_v12 }
 0x2a1   : > { %v1310_v14 = vpop.f32.mrb[4].mxu1  ;;  %1329 = vmatmul.mubr.bf16.vlgmr.msra.gmra.mrb[8].mxu1 %v834_v11 }
 0x2a2   : > { %v802_v16 = vpop.f32.mrb[5].mxu1  ;;  %v830_v20 = vmul.f32 %v1407_v15, %v1310_v14 }
 0x2a3   : > { %v1311_v18 = vpop.f32.mrb[6].mxu1  ;;  %v826_v23 = vmul.f32 %v1405_v13, %v802_v16 }
 0x2a4   : > { %v832_v21 = vmul.f32 %v1409_v17, %v1311_v18  ;;  %v805_v22 = vpop.f32.mrb[7].mxu1 }
 0x2a5   : > { %v828_v24 = vmul.f32 %v1411_v19, %v805_v22 }
 0x2a6   : > { %v836_v25 = vpack.c.bf16 %v832_v21, %v830_v20 }
 0x2a7   : > { %v835_v26 = vpack.c.bf16 %v828_v24, %v826_v23 }
 0x2a9   : > { %1332 = vmatprep.mubr.bf16.mxu1 %v835_v26 }
 0x2aa   : > { %1333 = vmatmul.mubr.bf16.gmra.mrb[12].mxu1 %v836_v25 }
 0x374   : > { %v1330_v31 = vpop.f32.mrb[8].mxu1 }
 0x375   : > { %v951_v34 = vpop.f32.mrb[9].mxu1  ;;  %v960_v36 = vadd.f32 %v1330_v31, %v1216_v29 }
 0x376   : > { %v1331_v35 = vpop.f32.mrb[10].mxu1  ;;  %v952_v39 = vadd.f32 %v1212_v32, %v951_v34 }
 0x377   : > { %v963_v37 = vadd.f32 %v1331_v35, %v1217_v30  ;;  %v954_v38 = vpop.f32.mrb[11].mxu1 }
 0x378   : > { %v955_v40 = vadd.f32 %v1213_v33, %v954_v38 }
 0x379   : > { %v1234_v41 = vpack.c.bf16 %v963_v37, %v960_v36 }
 0x37a   : > { %v1229_v43 = vpack.c.bf16 %v955_v40, %v952_v39 }
 0x37b   : > { %1249 = vst [vmem:[%s474_s12 + $0x8] sm:$0xff] %v1234_v41  }
 0x37c   : > { %1230 = vst [vmem:[%s474_s12] sm:$0xff] %v1229_v43  }
 0x37d   : > { %v1334_v47 = vpop.f32.mrb[12].mxu1 }
 0x37e   : > { %v967_v50 = vpop.f32.mrb[13].mxu1  ;;  %v976_v52 = vadd.f32 %v1334_v47, %v1224_v45 }
 0x37f   : > { %v1335_v51 = vpop.f32.mrb[14].mxu1  ;;  %v968_v55 = vadd.f32 %v1220_v48, %v967_v50 }
 0x380   : > { %v979_v53 = vadd.f32 %v1335_v51, %v1225_v46  ;;  %v970_v54 = vpop.f32.mrb[15].mxu1 }
 0x381   : > { %v971_v56 = vadd.f32 %v1221_v49, %v970_v54 }
 0x382   : > { %v1244_v57 = vpack.c.bf16 %v979_v53, %v976_v52 }
 0x383   : > { %v1239_v58 = vpack.c.bf16 %v971_v56, %v968_v55 }
 0x384   : > { %1251 = vst [vmem:[%s474_s12 + $0x18] sm:$0xff] %v1244_v57  }
 0x385   : > { %1250 = vst [vmem:[%s474_s12 + $0x10] sm:$0xff] %v1239_v58  }
 0x386 PF: > { %p13_p10 = scmp.ge.s32.totalorder %s1490_s25, 4   ;;  %s1609_s21 = smov %s1430_s22 }
 0x387   : > { %s1610_s22 = smov %s1499_s28  ;;  %s1611_s23 = smov %s1490_s25 }
 0x388   :  { %15 = sbr.rel (!%p13_p10) target bundleno = 2 (0x2), region = 178 }

</bundles_post_ra>
